<compile_context>
chip_gen: v7x
topology: tpu7x:2x2x1
jax: 0.10.0
libtpu: 0.0.40
codegen_flags: <defaults>
</compile_context>

<pallas_src>
from functools import partial

import jax
import jax.numpy as jnp
from jax.experimental import pallas as pl
from jax.experimental.pallas import tpu as pltpu


# ------------------------------ small helpers -------------------------------- #
def _round_up(x, m):
    return ((x + m - 1) // m) * m


def _vmem_capacity_bytes(default=128 * 1024 * 1024):
    try:
        cap = getattr(pltpu.get_tpu_info(), "vmem_capacity_bytes", None)
        if cap:
            return int(cap)
    except Exception:
        pass
    return default


def _pick_btile(Bp):
    # Only v7x has 2 TensorCores per chip; splitting the batch on v5e/v6e just halves
    # the matmul M and doubles the number of serial grid steps.
    try:
        kind = jax.devices()[0].device_kind.lower()
    except Exception:
        kind = ""
    if "v7" in kind and Bp >= 16 and Bp % 16 == 0:
        return Bp // 2
    return Bp


def _pick_chunk(T, btile, f_in, Hp, w_bytes, io_bytes, budget, max_chunk):
    """Largest timestep chunk whose per-grid-step VMEM footprint fits the budget."""
    weights = (f_in + Hp) * 3 * Hp * w_bytes          # W_ih^T + W_hh^T (single-buffered)
    small = 4 * Hp * 4 + 3 * btile * Hp * 4           # biases, h0 buffers, h scratch
    fixed = weights + small

    def per_chunk(c):
        rows = c * btile
        return (rows * 3 * Hp * 4 +                   # GI scratch (f32)
                rows * Hp * 4 +                       # output staging scratch (f32)
                2 * rows * f_in * io_bytes +          # x chunk (double-buffered)
                2 * rows * Hp * io_bytes)             # out chunk (double-buffered)

    c = max(1, min(T, max_chunk))
    while c > 1 and fixed + per_chunk(c) > budget:
        c -= 1
    return c


# ------------------ single-buffered constant-weight BlockSpecs ---------------- #
_BUFFERED1_OK = None


def _probe_buffered1():
    """Eagerly check whether pipeline_mode=pl.Buffered(1) is supported on this jax."""
    try:
        def k(x_ref, o_ref):
            o_ref[...] = x_ref[...]

        spec = pl.BlockSpec((8, 128), lambda i: (0, 0), pipeline_mode=pl.Buffered(1))
        x = jnp.arange(8 * 128, dtype=jnp.float32).reshape(8, 128)
        out = pl.pallas_call(
            k,
            out_shape=jax.ShapeDtypeStruct((8, 128), jnp.float32),
            grid=(1,),
            in_specs=[spec],
            out_specs=pl.BlockSpec((8, 128), lambda i: (0, 0)),
        )(x)
        return bool(jnp.all(out == x))        # raises on tracers / failures -> except
    except Exception:
        return False


def _ensure_buffer_probe():
    global _BUFFERED1_OK
    if _BUFFERED1_OK is None:
        _BUFFERED1_OK = _probe_buffered1()


def _const_weight_spec(shape):
    """Spec for a grid-constant weight block; single-buffered when supported."""
    idx = lambda b, c: (0,) * len(shape)
    if _BUFFERED1_OK:
        return pl.BlockSpec(shape, idx, pipeline_mode=pl.Buffered(1))
    return pl.BlockSpec(shape, idx)


# --------------------------------- kernel ------------------------------------ #
def gru_layer_kernel(x_ref, wih_ref, bias_ref, whh_ref, bhn_ref, h0_ref, out_ref,
                     h_scratch, gi_scratch, out_scratch,
                     *, hidden, chunk, btile, unroll):
    """One (batch_tile, time_chunk) grid step of a GRU layer.

    Grid = (n_btiles, n_chunks); time axis is serial, the hidden state of the current
    batch tile is carried across chunks in the f32 VMEM scratch `h_scratch`.
    """
    Hp = hidden

    @pl.when(pl.program_id(1) == 0)
    def _():
        h_scratch[...] = h0_ref[...].astype(jnp.float32)

    wih = wih_ref[...]
    whh = whh_ref[...]

    # Fused input projection for the whole chunk: one MXU matmul, M = chunk*btile.
    # GI stays in VMEM (never written to HBM).
    gi_scratch[...] = (
        jnp.dot(x_ref[...].astype(wih.dtype), wih, preferred_element_type=jnp.float32)
        + bias_ref[...].astype(jnp.float32))

    # Hoisted out of the unrolled time loop (broadcast_in_dim is not CSE'd).
    bhn = jnp.broadcast_to(bhn_ref[...].astype(jnp.float32), (btile, Hp))

    def step(t, h):
        row = pl.multiple_of(t * btile, btile)
        gh = jnp.dot(h.astype(whh.dtype), whh, preferred_element_type=jnp.float32)
        # 128-aligned, lane-dense gate slices read straight from the scratch ref.
        r = jax.nn.sigmoid(gi_scratch[pl.ds(row, btile), 0:Hp] + gh[:, 0:Hp])
        z = jax.nn.sigmoid(gi_scratch[pl.ds(row, btile), Hp:2 * Hp] + gh[:, Hp:2 * Hp])
        n = jnp.tanh(gi_scratch[pl.ds(row, btile), 2 * Hp:3 * Hp]
                     + r * (gh[:, 2 * Hp:3 * Hp] + bhn))
        h_new = (1.0 - z) * n + z * h
        out_scratch[pl.ds(row, btile), :] = h_new
        return h_new

    h_final = jax.lax.fori_loop(0, chunk, step, h_scratch[...], unroll=unroll)
    h_scratch[...] = h_final
    # Single lane-dense full-block store per chunk (no per-step partial/masked stores).
    out_ref[...] = out_scratch[...].astype(out_ref.dtype)


# ---------------------------- pallas_call wrapper ----------------------------- #
def gru_layer(x2, wih_t, bias_gi, whh_t, bhh_n, h0_l, *, chunk, btile, n_chunks,
              out_dtype, vmem_limit):
    """x2: (n_btiles*T_pad*btile, Fin) rows ordered [batch-tile][time][local-batch]."""
    rows, f_in = x2.shape
    Hp = whh_t.shape[0]
    H3 = 3 * Hp
    block_rows = chunk * btile
    n_btiles = rows // (n_chunks * block_rows)
    unroll = min(chunk, 16) if Hp <= 512 else min(chunk, 8)   # bound vreg pressure

    kernel = partial(gru_layer_kernel, hidden=Hp, chunk=chunk, btile=btile, unroll=unroll)
    return pl.pallas_call(
        kernel,
        out_shape=jax.ShapeDtypeStruct((rows, Hp), out_dtype),
        grid_spec=pltpu.PrefetchScalarGridSpec(
            num_scalar_prefetch=0,
            grid=(n_btiles, n_chunks),
            in_specs=[
                pl.BlockSpec((block_rows, f_in), lambda b, c: (b * n_chunks + c, 0)),
                _const_weight_spec((f_in, H3)),                   # W_ih^T (1 buffer)
                pl.BlockSpec((1, H3), lambda b, c: (0, 0)),       # folded input bias
                _const_weight_spec((Hp, H3)),                     # W_hh^T (1 buffer)
                pl.BlockSpec((1, Hp), lambda b, c: (0, 0)),       # n-gate hidden bias
                pl.BlockSpec((btile, Hp), lambda b, c: (b, 0)),   # h0 batch tile
            ],
            out_specs=pl.BlockSpec((block_rows, Hp), lambda b, c: (b * n_chunks + c, 0)),
            scratch_shapes=[
                pltpu.VMEM((btile, Hp), jnp.float32),        # carried hidden state
                pltpu.VMEM((block_rows, H3), jnp.float32),   # GI for the chunk
                pltpu.VMEM((block_rows, Hp), jnp.float32),   # per-chunk output staging
            ],
        ),
        compiler_params=pltpu.CompilerParams(
            dimension_semantics=("parallel", "arbitrary"),
            vmem_limit_bytes=vmem_limit,
        ),
    )(x2, wih_t, bias_gi, whh_t, bhh_n, h0_l)


# -------------------------- parameter preparation ----------------------------- #
def prepare_gru_params(params, compute_dtype=jnp.bfloat16):
    """Pad/transpose PyTorch-shaped GRU params into kernel layout. Call ONCE and reuse."""
    _ensure_buffer_probe()
    H = params["h0"].shape[-1]
    Hp = _round_up(H, 128)
    layers = []
    for l, lp in enumerate(params["layers"]):
        w_ih, w_hh = lp["w_ih"], lp["w_hh"]
        b_ih, b_hh = lp["b_ih"], lp["b_hh"]
        F = w_ih.shape[1]
        Fp = Hp if l > 0 else F          # layer>0 inputs are the padded hidden state

        w_ih3 = jnp.zeros((3, Hp, Fp), jnp.float32).at[:, :H, :F].set(
            w_ih.reshape(3, H, F).astype(jnp.float32))
        wih_t = jnp.transpose(w_ih3, (2, 0, 1)).reshape(Fp, 3 * Hp).astype(compute_dtype)

        w_hh3 = jnp.zeros((3, Hp, Hp), jnp.float32).at[:, :H, :H].set(
            w_hh.reshape(3, H, H).astype(jnp.float32))
        whh_t = jnp.transpose(w_hh3, (2, 0, 1)).reshape(Hp, 3 * Hp).astype(compute_dtype)

        b_ih3 = jnp.zeros((3, Hp), jnp.float32).at[:, :H].set(b_ih.reshape(3, H))
        b_hh3 = jnp.zeros((3, Hp), jnp.float32).at[:, :H].set(b_hh.reshape(3, H))
        # Fold b_hh for r and z into the projection bias; keep the n-gate b_hh separate
        # (it sits inside r * (h @ W_hhn^T + b_hhn), matching PyTorch semantics).
        bias_gi = (b_ih3 + b_hh3.at[2].set(0.0)).reshape(1, 3 * Hp)
        bhh_n = b_hh3[2].reshape(1, Hp)
        layers.append({"wih_t": wih_t, "whh_t": whh_t,
                       "bias_gi": bias_gi, "bhh_n": bhh_n})
    return {"layers": layers, "h0": params["h0"]}


# ------------------------------ module forward -------------------------------- #
def gru_cell_forward(params, x, h0=None, *, prepared=None,
                     compute_dtype=jnp.bfloat16, max_chunk=64):
    """Equivalent of GRUCell.forward. x: (batch, seq, input_size) -> (out, h)."""
    if prepared is None:
        prepared = prepare_gru_params(params, compute_dtype)
    layers = prepared["layers"]
    L = len(layers)
    H = prepared["h0"].shape[-1]
    Hp = layers[0]["whh_t"].shape[0]
    cdt = layers[0]["whh_t"].dtype

    B, T, F = x.shape
    Bp = _round_up(B, 8)           # sublane-aligned batch
    btile = _pick_btile(Bp)
    n_btiles = Bp // btile

    # VMEM budgeting (64 MiB on v7x, 128 MiB on v5e/v6e). chunk = as many timesteps
    # per grid step as fit, amortising the ~0.35us/step pipeline overhead.
    cap = _vmem_capacity_bytes()
    vmem_limit = int(min(cap * 85 // 100, 100 * 1024 * 1024))
    budget = vmem_limit - 2 * 1024 * 1024
    w_bytes = cdt.itemsize
    io_bytes = 2 if cdt == jnp.bfloat16 else 4
    chunk = _pick_chunk(T, btile, max(F, Hp), Hp, w_bytes, io_bytes, budget, max_chunk)
    T_pad = _round_up(T, chunk)
    n_chunks = T_pad // chunk

    # Intermediate layers stream activations in the compute dtype when the block's
    # sublane extent allows the bf16 tiling (halves inter-layer HBM traffic).
    inter_dtype = cdt if (cdt == jnp.bfloat16 and (chunk * btile) % 16 == 0) else x.dtype

    if h0 is None:
        h0 = jnp.broadcast_to(prepared["h0"], (L, B, H))
    h0_p = jnp.zeros((L, Bp, Hp), jnp.float32).at[:, :B, :H].set(h0.astype(jnp.float32))

    # Layer-0 input in [batch-tile][time][local-batch] row order, zero padded in both
    # batch and time (padded tail timesteps never influence out[:T] or h = out[T-1]).
    x_tbf = jnp.zeros((T_pad, Bp, F), x.dtype).at[:T, :B, :].set(
        jnp.transpose(x, (1, 0, 2)))
    layer_in = (x_tbf.reshape(T_pad, n_btiles, btile, F)
                .transpose(1, 0, 2, 3).reshape(n_btiles * T_pad * btile, F))

    h_finals = []
    for l, lp in enumerate(layers):
        out_dtype = x.dtype if l == L - 1 else inter_dtype
        o2 = gru_layer(layer_in, lp["wih_t"], lp["bias_gi"], lp["whh_t"], lp["bhh_n"],
                       h0_p[l], chunk=chunk, btile=btile, n_chunks=n_chunks,
                       out_dtype=out_dtype, vmem_limit=vmem_limit)
        o4 = o2.reshape(n_btiles, T_pad, btile, Hp)
        h_finals.append(o4[:, T - 1].reshape(Bp, Hp)[:B, :H].astype(x.dtype))
        layer_in = o2                       # padded output feeds the next layer directly

    out_tbh = (layer_in.reshape(n_btiles, T_pad, btile, Hp)
               .transpose(1, 0, 2, 3).reshape(T_pad, Bp, Hp))
    out = jnp.transpose(out_tbh[:T, :B, :H], (1, 0, 2))        # (B, T, H)
    h = jnp.stack(h_finals, axis=0)                            # (L, B, H)
    return out, h


# ------------------------------ param init ------------------------------------ #
def init_gru_params(key, input_size, hidden_size, num_layer, dtype=jnp.float32):
    """Deterministic synthetic params with PyTorch GRU shapes / init range."""
    k = 1.0 / jnp.sqrt(jnp.array(hidden_size, dtype))
    layers = []
    for l in range(num_layer):
        in_sz = input_size if l == 0 else hidden_size
        key, k1, k2, k3, k4 = jax.random.split(key, 5)
        layers.append({
            "w_ih": jax.random.uniform(k1, (3 * hidden_size, in_sz), dtype, -k, k),
            "w_hh": jax.random.uniform(k2, (3 * hidden_size, hidden_size), dtype, -k, k),
            "b_ih": jax.random.uniform(k3, (3 * hidden_size,), dtype, -k, k),
            "b_hh": jax.random.uniform(k4, (3 * hidden_size,), dtype, -k, k),
        })
    h0_param = jnp.zeros((num_layer, 1, hidden_size), dtype)   # nn.Parameter(zeros)
    return {"layers": layers, "h0": h0_param}


# --------------------------- Pure-JAX reference ------------------------------- #
def gru_cell_reference(params, x, h0=None):
    B, T, _ = x.shape
    num_layer = len(params["layers"])
    H = params["h0"].shape[-1]
    if h0 is None:
        h0 = jnp.broadcast_to(params["h0"], (num_layer, B, H))

    def layer_step(lp, h, x_t):
        gi = x_t @ lp["w_ih"].T + lp["b_ih"]
        gh = h @ lp["w_hh"].T + lp["b_hh"]
        i_r, i_z, i_n = jnp.split(gi, 3, axis=-1)
        h_r, h_z, h_n = jnp.split(gh, 3, axis=-1)
        r = jax.nn.sigmoid(i_r + h_r)
        z = jax.nn.sigmoid(i_z + h_z)
        n = jnp.tanh(i_n + r * h_n)
        return (1.0 - z) * n + z * h

    layer_in = jnp.transpose(x, (1, 0, 2))
    h_finals = []
    for l, lp in enumerate(params["layers"]):
        def scan_fn(h, x_t, lp=lp):
            h_new = layer_step(lp, h, x_t)
            return h_new, h_new
        h_last, out_tbh = jax.lax.scan(scan_fn, h0[l], layer_in)
        h_finals.append(h_last)
        layer_in = out_tbh
    return jnp.transpose(layer_in, (1, 0, 2)), jnp.stack(h_finals, axis=0)


# ---------------------------------- Main --------------------------------------- #
if __name__ == "__main__":
    input_size, hidden_size, num_layer = 4, 32, 2
    batch, seq = 2, 8

    key = jax.random.PRNGKey(0)
    key, pkey, xkey = jax.random.split(key, 3)
    params = init_gru_params(pkey, input_size, hidden_size, num_layer)
    x = jax.random.normal(xkey, (batch, seq, input_size), jnp.float32)

    out_ref, h_ref = gru_cell_reference(params, x)

    # Kernel-layout weights prepared once and reused (Buffered(1) probe happens here).
    prep_f32 = prepare_gru_params(params, jnp.float32)
    prep_bf16 = prepare_gru_params(params, jnp.bfloat16)

    fwd = jax.jit(lambda prep, xx: gru_cell_forward(None, xx, prepared=prep))

    # f32 MXU operands: tight check against the pure-JAX reference.
    out, h = jax.block_until_ready(fwd(prep_f32, x))
    assert out.shape == (batch, seq, hidden_size)
    assert h.shape == (num_layer, batch, hidden_size)
    assert jnp.allclose(out, out_ref, atol=2e-4, rtol=2e-4), \
        float(jnp.max(jnp.abs(out - out_ref)))
    assert jnp.allclose(h, h_ref, atol=2e-4, rtol=2e-4), \
        float(jnp.max(jnp.abs(h - h_ref)))

    # Default path (bf16 MXU operands, f32 accumulation / f32 hidden carry).
    out_b, h_b = jax.block_until_ready(fwd(prep_bf16, x))
    assert jnp.allclose(out_b, out_ref, atol=5e-2, rtol=5e-2), \
        float(jnp.max(jnp.abs(out_b - out_ref)))
    assert jnp.allclose(h_b, h_ref, atol=5e-2, rtol=5e-2), \
        float(jnp.max(jnp.abs(h_b - h_ref)))

    # Awkward T (time padding, multiple chunks) + padded batch, f32, tight check.
    xb = jax.random.normal(jax.random.PRNGKey(1), (5, 20, input_size), jnp.float32)
    out_ref2, h_ref2 = gru_cell_reference(params, xb)
    fwd_small_chunk = jax.jit(
        lambda prep, xx: gru_cell_forward(None, xx, prepared=prep, max_chunk=8))
    out2, h2 = jax.block_until_ready(fwd_small_chunk(prep_f32, xb))
    assert jnp.allclose(out2, out_ref2, atol=2e-4, rtol=2e-4), \
        float(jnp.max(jnp.abs(out2 - out_ref2)))
    assert jnp.allclose(h2, h_ref2, atol=2e-4, rtol=2e-4), \
        float(jnp.max(jnp.abs(h2 - h_ref2)))

    # Longer sequence under the bf16 default (recurrent error accumulation check).
    xl = jax.random.normal(jax.random.PRNGKey(2), (batch, 32, input_size), jnp.float32)
    out_ref3, h_ref3 = gru_cell_reference(params, xl)
    out3, h3 = jax.block_until_ready(fwd(prep_bf16, xl))
    assert jnp.allclose(out3, out_ref3, atol=1e-1, rtol=1e-1), \
        float(jnp.max(jnp.abs(out3 - out_ref3)))
    assert jnp.allclose(h3, h_ref3, atol=1e-1, rtol=1e-1), \
        float(jnp.max(jnp.abs(h3 - h_ref3)))

    print("KERNEL_OK")
</pallas_src>

<mosaic_0001>
module attributes {stable_mosaic.version = 11 : i64} {
  func.func @k(%arg0: i32, %arg1: memref<8x128xf32, #tpu.memory_space<vmem>>, %arg2: memref<8x128xf32, #tpu.memory_space<vmem>>) attributes {dimension_semantics = [#tpu.dimension_semantics<arbitrary>], iteration_bounds = array<i64: 1>, scalar_prefetch = 0 : i64, scratch_operands = 0 : i64, tpu.core_type = #tpu.core_type<tc>, window_params = [{pipeline_mode = #tpu.pipeline_mode<synchronous>, transform_indices = @transform_0, window_bounds = array<i64: 8, 128>}, {pipeline_mode = #tpu.pipeline_mode<synchronous>, transform_indices = @transform_1, window_bounds = array<i64: 8, 128>}]} {
    %c0 = arith.constant 0 : index
    %c0_0 = arith.constant 0 : index
    %0 = vector.load %arg1[%c0, %c0_0] : memref<8x128xf32, #tpu.memory_space<vmem>>, vector<8x128xf32>
    %c0_1 = arith.constant 0 : index
    %c0_2 = arith.constant 0 : index
    %1 = vector.load %arg2[%c0_1, %c0_2] : memref<8x128xf32, #tpu.memory_space<vmem>>, vector<8x128xf32>
    tpu.vector_store %arg2[%c0_1, %c0_2], %0 {strides = array<i32>} : memref<8x128xf32, #tpu.memory_space<vmem>>, vector<8x128xf32>,
    return
  }
  func.func @transform_0(%arg0: i32) -> (i32, i32) {
    %c0_i32 = arith.constant 0 : i32
    %c0_i32_0 = arith.constant 0 : i32
    %c0_i32_1 = arith.constant 0 : i32
    return %c0_i32, %c0_i32_0 : i32, i32
  }
  func.func @transform_1(%arg0: i32) -> (i32, i32) {
    %c0_i32 = arith.constant 0 : i32
    %c0_i32_0 = arith.constant 0 : i32
    %c0_i32_1 = arith.constant 0 : i32
    return %c0_i32, %c0_i32_0 : i32, i32
  }
}

module attributes {stable_mosaic.version = 11 : i64} {
  func.func @gru_layer_kernel(%arg0: i32, %arg1: i32, %arg2: memref<64x4xf32, #tpu.memory_space<vmem>>, %arg3: memref<4x384xf32, #tpu.memory_space<vmem>>, %arg4: memref<1x384xf32, #tpu.memory_space<vmem>>, %arg5: memref<128x384xf32, #tpu.memory_space<vmem>>, %arg6: memref<1x128xf32, #tpu.memory_space<vmem>>, %arg7: memref<8x128xf32, #tpu.memory_space<vmem>>, %arg8: memref<64x128xf32, #tpu.memory_space<vmem>>, %arg9: memref<8x128xf32, #tpu.memory_space<vmem>>, %arg10: memref<64x384xf32, #tpu.memory_space<vmem>>, %arg11: memref<64x128xf32, #tpu.memory_space<vmem>>) attributes {dimension_semantics = [#tpu.dimension_semantics<parallel>, #tpu.dimension_semantics<arbitrary>], iteration_bounds = array<i64: 1, 1>, scalar_prefetch = 0 : i64, scratch_operands = 3 : i64, tpu.core_type = #tpu.core_type<tc>, window_params = [{transform_indices = @transform_0, window_bounds = array<i64: 64, 4>}, {pipeline_mode = #tpu.pipeline_mode<synchronous>, transform_indices = @transform_1, window_bounds = array<i64: 4, 384>}, {pipeline_mode = #tpu.pipeline_mode<synchronous>, transform_indices = @transform_2, window_bounds = array<i64: 1, 384>}, {pipeline_mode = #tpu.pipeline_mode<synchronous>, transform_indices = @transform_3, window_bounds = array<i64: 128, 384>}, {pipeline_mode = #tpu.pipeline_mode<synchronous>, transform_indices = @transform_4, window_bounds = array<i64: 1, 128>}, {transform_indices = @transform_5, window_bounds = array<i64: 8, 128>}, {transform_indices = @transform_6, window_bounds = array<i64: 64, 128>}]} {
    %c0_i32 = arith.constant 0 : i32
    %0 = arith.cmpi eq, %arg1, %c0_i32 : i32
    %1 = arith.extui %0 : i1 to i32
    %c0_i32_0 = arith.constant 0 : i32
    %2 = arith.cmpi ne, %1, %c0_i32_0 : i32
    scf.if %2 {
      %c0_91 = arith.constant 0 : index
      %c0_92 = arith.constant 0 : index
      %298 = vector.load %arg7[%c0_91, %c0_92] : memref<8x128xf32, #tpu.memory_space<vmem>>, vector<8x128xf32>
      %c0_93 = arith.constant 0 : index
      %c0_94 = arith.constant 0 : index
      %299 = vector.load %arg9[%c0_93, %c0_94] : memref<8x128xf32, #tpu.memory_space<vmem>>, vector<8x128xf32>
      tpu.vector_store %arg9[%c0_93, %c0_94], %298 {strides = array<i32>} : memref<8x128xf32, #tpu.memory_space<vmem>>, vector<8x128xf32>,
    } else {
    }
    %c0 = arith.constant 0 : index
    %c0_1 = arith.constant 0 : index
    %3 = vector.load %arg3[%c0, %c0_1] : memref<4x384xf32, #tpu.memory_space<vmem>>, vector<4x384xf32>
    %c0_2 = arith.constant 0 : index
    %c0_3 = arith.constant 0 : index
    %4 = vector.load %arg5[%c0_2, %c0_3] : memref<128x384xf32, #tpu.memory_space<vmem>>, vector<128x384xf32>
    %c0_4 = arith.constant 0 : index
    %c0_5 = arith.constant 0 : index
    %5 = vector.load %arg2[%c0_4, %c0_5] : memref<64x4xf32, #tpu.memory_space<vmem>>, vector<64x4xf32>
    %cst = arith.constant dense<0.000000e+00> : vector<64x384xf32>
    %6 = tpu.matmul %5, %3, %cst {dimension_numbers = #tpu.dot_dimension_numbers<[1], [0], [0], [1], [0, 0, 1, 1], [], []>} : vector<64x4xf32>, vector<4x384xf32>, vector<64x384xf32> -> vector<64x384xf32>
    %c0_6 = arith.constant 0 : index
    %c0_7 = arith.constant 0 : index
    %7 = vector.load %arg4[%c0_6, %c0_7] : memref<1x384xf32, #tpu.memory_space<vmem>>, vector<1x384xf32>
    %8 = vector.broadcast %7 : vector<1x384xf32> to vector<64x384xf32>
    %9 = arith.addf %6, %8 : vector<64x384xf32>
    %c0_8 = arith.constant 0 : index
    %c0_9 = arith.constant 0 : index
    %10 = vector.load %arg10[%c0_8, %c0_9] : memref<64x384xf32, #tpu.memory_space<vmem>>, vector<64x384xf32>
    tpu.vector_store %arg10[%c0_8, %c0_9], %9 {strides = array<i32>} : memref<64x384xf32, #tpu.memory_space<vmem>>, vector<64x384xf32>,
    %c0_10 = arith.constant 0 : index
    %c0_11 = arith.constant 0 : index
    %11 = vector.load %arg6[%c0_10, %c0_11] : memref<1x128xf32, #tpu.memory_space<vmem>>, vector<1x128xf32>
    %12 = vector.shape_cast %11 : vector<1x128xf32> to vector<1x128xf32>
    %13 = vector.broadcast %12 : vector<1x128xf32> to vector<8x128xf32>
    %c0_12 = arith.constant 0 : index
    %c0_13 = arith.constant 0 : index
    %14 = vector.load %arg9[%c0_12, %c0_13] : memref<8x128xf32, #tpu.memory_space<vmem>>, vector<8x128xf32>
    %c0_i32_14 = arith.constant 0 : i32
    %c8_i32 = arith.constant 8 : i32
    %15 = arith.muli %c0_i32_14, %c8_i32 : i32
    %16 = tpu.assume_multiple %15, 8 : i32
    %cst_15 = arith.constant dense<0.000000e+00> : vector<8x384xf32>
    %17 = tpu.matmul %14, %4, %cst_15 {dimension_numbers = #tpu.dot_dimension_numbers<[1], [0], [0], [1], [0, 0, 1, 1], [], []>} : vector<8x128xf32>, vector<128x384xf32>, vector<8x384xf32> -> vector<8x384xf32>
    %18 = arith.index_cast %16 : i32 to index
    %c0_16 = arith.constant 0 : index
    %19 = vector.load %arg10[%18, %c0_16] : memref<64x384xf32, #tpu.memory_space<vmem>>, vector<8x128xf32>
    %20 = vector.extract_strided_slice %17 {offsets = [0, 0], sizes = [8, 128], strides = [1, 1]} : vector<8x384xf32> to vector<8x128xf32>
    %21 = arith.addf %19, %20 : vector<8x128xf32>
    %22 = arith.negf %21 : vector<8x128xf32>
    %23 = math.exp %22 : vector<8x128xf32>
    %cst_17 = arith.constant 1.000000e+00 : f32
    %24 = vector.broadcast %cst_17 : f32 to vector<8x128xf32>
    %25 = arith.addf %24, %23 : vector<8x128xf32>
    %26 = arith.divf %24, %25 : vector<8x128xf32>
    %27 = arith.index_cast %16 : i32 to index
    %c128 = arith.constant 128 : index
    %28 = vector.load %arg10[%27, %c128] : memref<64x384xf32, #tpu.memory_space<vmem>>, vector<8x128xf32>
    %29 = vector.extract_strided_slice %17 {offsets = [0, 128], sizes = [8, 128], strides = [1, 1]} : vector<8x384xf32> to vector<8x128xf32>
    %30 = arith.addf %28, %29 : vector<8x128xf32>
    %31 = arith.negf %30 : vector<8x128xf32>
    %32 = math.exp %31 : vector<8x128xf32>
    %cst_18 = arith.constant 1.000000e+00 : f32
    %33 = vector.broadcast %cst_18 : f32 to vector<8x128xf32>
    %34 = arith.addf %33, %32 : vector<8x128xf32>
    %35 = arith.divf %33, %34 : vector<8x128xf32>
    %36 = arith.index_cast %16 : i32 to index
    %c256 = arith.constant 256 : index
    %37 = vector.load %arg10[%36, %c256] : memref<64x384xf32, #tpu.memory_space<vmem>>, vector<8x128xf32>
    %38 = vector.extract_strided_slice %17 {offsets = [0, 256], sizes = [8, 128], strides = [1, 1]} : vector<8x384xf32> to vector<8x128xf32>
    %39 = arith.addf %38, %13 : vector<8x128xf32>
    %40 = arith.mulf %26, %39 : vector<8x128xf32>
    %41 = arith.addf %37, %40 : vector<8x128xf32>
    %42 = math.tanh %41 : vector<8x128xf32>
    %cst_19 = arith.constant 1.000000e+00 : f32
    %43 = vector.broadcast %cst_19 : f32 to vector<8x128xf32>
    %44 = arith.subf %43, %35 : vector<8x128xf32>
    %45 = arith.mulf %44, %42 : vector<8x128xf32>
    %46 = arith.mulf %35, %14 : vector<8x128xf32>
    %47 = arith.addf %45, %46 : vector<8x128xf32>
    %48 = arith.index_cast %16 : i32 to index
    %c0_20 = arith.constant 0 : index
    %49 = vector.load %arg11[%48, %c0_20] : memref<64x128xf32, #tpu.memory_space<vmem>>, vector<8x128xf32>
    tpu.vector_store %arg11[%48, %c0_20], %47 {strides = array<i32>} : memref<64x128xf32, #tpu.memory_space<vmem>>, vector<8x128xf32>,
    %c1_i32 = arith.constant 1 : i32
    %c8_i32_21 = arith.constant 8 : i32
    %50 = arith.muli %c1_i32, %c8_i32_21 : i32
    %51 = tpu.assume_multiple %50, 8 : i32
    %cst_22 = arith.constant dense<0.000000e+00> : vector<8x384xf32>
    %52 = tpu.matmul %47, %4, %cst_22 {dimension_numbers = #tpu.dot_dimension_numbers<[1], [0], [0], [1], [0, 0, 1, 1], [], []>} : vector<8x128xf32>, vector<128x384xf32>, vector<8x384xf32> -> vector<8x384xf32>
    %53 = arith.index_cast %51 : i32 to index
    %c0_23 = arith.constant 0 : index
    %54 = vector.load %arg10[%53, %c0_23] : memref<64x384xf32, #tpu.memory_space<vmem>>, vector<8x128xf32>
    %55 = vector.extract_strided_slice %52 {offsets = [0, 0], sizes = [8, 128], strides = [1, 1]} : vector<8x384xf32> to vector<8x128xf32>
    %56 = arith.addf %54, %55 : vector<8x128xf32>
    %57 = arith.negf %56 : vector<8x128xf32>
    %58 = math.exp %57 : vector<8x128xf32>
    %cst_24 = arith.constant 1.000000e+00 : f32
    %59 = vector.broadcast %cst_24 : f32 to vector<8x128xf32>
    %60 = arith.addf %59, %58 : vector<8x128xf32>
    %61 = arith.divf %59, %60 : vector<8x128xf32>
    %62 = arith.index_cast %51 : i32 to index
    %c128_25 = arith.constant 128 : index
    %63 = vector.load %arg10[%62, %c128_25] : memref<64x384xf32, #tpu.memory_space<vmem>>, vector<8x128xf32>
    %64 = vector.extract_strided_slice %52 {offsets = [0, 128], sizes = [8, 128], strides = [1, 1]} : vector<8x384xf32> to vector<8x128xf32>
    %65 = arith.addf %63, %64 : vector<8x128xf32>
    %66 = arith.negf %65 : vector<8x128xf32>
    %67 = math.exp %66 : vector<8x128xf32>
    %cst_26 = arith.constant 1.000000e+00 : f32
    %68 = vector.broadcast %cst_26 : f32 to vector<8x128xf32>
    %69 = arith.addf %68, %67 : vector<8x128xf32>
    %70 = arith.divf %68, %69 : vector<8x128xf32>
    %71 = arith.index_cast %51 : i32 to index
    %c256_27 = arith.constant 256 : index
    %72 = vector.load %arg10[%71, %c256_27] : memref<64x384xf32, #tpu.memory_space<vmem>>, vector<8x128xf32>
    %73 = vector.extract_strided_slice %52 {offsets = [0, 256], sizes = [8, 128], strides = [1, 1]} : vector<8x384xf32> to vector<8x128xf32>
    %74 = arith.addf %73, %13 : vector<8x128xf32>
    %75 = arith.mulf %61, %74 : vector<8x128xf32>
    %76 = arith.addf %72, %75 : vector<8x128xf32>
    %77 = math.tanh %76 : vector<8x128xf32>
    %cst_28 = arith.constant 1.000000e+00 : f32
    %78 = vector.broadcast %cst_28 : f32 to vector<8x128xf32>
    %79 = arith.subf %78, %70 : vector<8x128xf32>
    %80 = arith.mulf %79, %77 : vector<8x128xf32>
    %81 = arith.mulf %70, %47 : vector<8x128xf32>
    %82 = arith.addf %80, %81 : vector<8x128xf32>
    %83 = arith.index_cast %51 : i32 to index
    %c0_29 = arith.constant 0 : index
    %84 = vector.load %arg11[%83, %c0_29] : memref<64x128xf32, #tpu.memory_space<vmem>>, vector<8x128xf32>
    tpu.vector_store %arg11[%83, %c0_29], %82 {strides = array<i32>} : memref<64x128xf32, #tpu.memory_space<vmem>>, vector<8x128xf32>,
    %c2_i32 = arith.constant 2 : i32
    %c8_i32_30 = arith.constant 8 : i32
    %85 = arith.muli %c2_i32, %c8_i32_30 : i32
    %86 = tpu.assume_multiple %85, 8 : i32
    %cst_31 = arith.constant dense<0.000000e+00> : vector<8x384xf32>
    %87 = tpu.matmul %82, %4, %cst_31 {dimension_numbers = #tpu.dot_dimension_numbers<[1], [0], [0], [1], [0, 0, 1, 1], [], []>} : vector<8x128xf32>, vector<128x384xf32>, vector<8x384xf32> -> vector<8x384xf32>
    %88 = arith.index_cast %86 : i32 to index
    %c0_32 = arith.constant 0 : index
    %89 = vector.load %arg10[%88, %c0_32] : memref<64x384xf32, #tpu.memory_space<vmem>>, vector<8x128xf32>
    %90 = vector.extract_strided_slice %87 {offsets = [0, 0], sizes = [8, 128], strides = [1, 1]} : vector<8x384xf32> to vector<8x128xf32>
    %91 = arith.addf %89, %90 : vector<8x128xf32>
    %92 = arith.negf %91 : vector<8x128xf32>
    %93 = math.exp %92 : vector<8x128xf32>
    %cst_33 = arith.constant 1.000000e+00 : f32
    %94 = vector.broadcast %cst_33 : f32 to vector<8x128xf32>
    %95 = arith.addf %94, %93 : vector<8x128xf32>
    %96 = arith.divf %94, %95 : vector<8x128xf32>
    %97 = arith.index_cast %86 : i32 to index
    %c128_34 = arith.constant 128 : index
    %98 = vector.load %arg10[%97, %c128_34] : memref<64x384xf32, #tpu.memory_space<vmem>>, vector<8x128xf32>
    %99 = vector.extract_strided_slice %87 {offsets = [0, 128], sizes = [8, 128], strides = [1, 1]} : vector<8x384xf32> to vector<8x128xf32>
    %100 = arith.addf %98, %99 : vector<8x128xf32>
    %101 = arith.negf %100 : vector<8x128xf32>
    %102 = math.exp %101 : vector<8x128xf32>
    %cst_35 = arith.constant 1.000000e+00 : f32
    %103 = vector.broadcast %cst_35 : f32 to vector<8x128xf32>
    %104 = arith.addf %103, %102 : vector<8x128xf32>
    %105 = arith.divf %103, %104 : vector<8x128xf32>
    %106 = arith.index_cast %86 : i32 to index
    %c256_36 = arith.constant 256 : index
    %107 = vector.load %arg10[%106, %c256_36] : memref<64x384xf32, #tpu.memory_space<vmem>>, vector<8x128xf32>
    %108 = vector.extract_strided_slice %87 {offsets = [0, 256], sizes = [8, 128], strides = [1, 1]} : vector<8x384xf32> to vector<8x128xf32>
    %109 = arith.addf %108, %13 : vector<8x128xf32>
    %110 = arith.mulf %96, %109 : vector<8x128xf32>
    %111 = arith.addf %107, %110 : vector<8x128xf32>
    %112 = math.tanh %111 : vector<8x128xf32>
    %cst_37 = arith.constant 1.000000e+00 : f32
    %113 = vector.broadcast %cst_37 : f32 to vector<8x128xf32>
    %114 = arith.subf %113, %105 : vector<8x128xf32>
    %115 = arith.mulf %114, %112 : vector<8x128xf32>
    %116 = arith.mulf %105, %82 : vector<8x128xf32>
    %117 = arith.addf %115, %116 : vector<8x128xf32>
    %118 = arith.index_cast %86 : i32 to index
    %c0_38 = arith.constant 0 : index
    %119 = vector.load %arg11[%118, %c0_38] : memref<64x128xf32, #tpu.memory_space<vmem>>, vector<8x128xf32>
    tpu.vector_store %arg11[%118, %c0_38], %117 {strides = array<i32>} : memref<64x128xf32, #tpu.memory_space<vmem>>, vector<8x128xf32>,
    %c3_i32 = arith.constant 3 : i32
    %c8_i32_39 = arith.constant 8 : i32
    %120 = arith.muli %c3_i32, %c8_i32_39 : i32
    %121 = tpu.assume_multiple %120, 8 : i32
    %cst_40 = arith.constant dense<0.000000e+00> : vector<8x384xf32>
    %122 = tpu.matmul %117, %4, %cst_40 {dimension_numbers = #tpu.dot_dimension_numbers<[1], [0], [0], [1], [0, 0, 1, 1], [], []>} : vector<8x128xf32>, vector<128x384xf32>, vector<8x384xf32> -> vector<8x384xf32>
    %123 = arith.index_cast %121 : i32 to index
    %c0_41 = arith.constant 0 : index
    %124 = vector.load %arg10[%123, %c0_41] : memref<64x384xf32, #tpu.memory_space<vmem>>, vector<8x128xf32>
    %125 = vector.extract_strided_slice %122 {offsets = [0, 0], sizes = [8, 128], strides = [1, 1]} : vector<8x384xf32> to vector<8x128xf32>
    %126 = arith.addf %124, %125 : vector<8x128xf32>
    %127 = arith.negf %126 : vector<8x128xf32>
    %128 = math.exp %127 : vector<8x128xf32>
    %cst_42 = arith.constant 1.000000e+00 : f32
    %129 = vector.broadcast %cst_42 : f32 to vector<8x128xf32>
    %130 = arith.addf %129, %128 : vector<8x128xf32>
    %131 = arith.divf %129, %130 : vector<8x128xf32>
    %132 = arith.index_cast %121 : i32 to index
    %c128_43 = arith.constant 128 : index
    %133 = vector.load %arg10[%132, %c128_43] : memref<64x384xf32, #tpu.memory_space<vmem>>, vector<8x128xf32>
    %134 = vector.extract_strided_slice %122 {offsets = [0, 128], sizes = [8, 128], strides = [1, 1]} : vector<8x384xf32> to vector<8x128xf32>
    %135 = arith.addf %133, %134 : vector<8x128xf32>
    %136 = arith.negf %135 : vector<8x128xf32>
    %137 = math.exp %136 : vector<8x128xf32>
    %cst_44 = arith.constant 1.000000e+00 : f32
    %138 = vector.broadcast %cst_44 : f32 to vector<8x128xf32>
    %139 = arith.addf %138, %137 : vector<8x128xf32>
    %140 = arith.divf %138, %139 : vector<8x128xf32>
    %141 = arith.index_cast %121 : i32 to index
    %c256_45 = arith.constant 256 : index
    %142 = vector.load %arg10[%141, %c256_45] : memref<64x384xf32, #tpu.memory_space<vmem>>, vector<8x128xf32>
    %143 = vector.extract_strided_slice %122 {offsets = [0, 256], sizes = [8, 128], strides = [1, 1]} : vector<8x384xf32> to vector<8x128xf32>
    %144 = arith.addf %143, %13 : vector<8x128xf32>
    %145 = arith.mulf %131, %144 : vector<8x128xf32>
    %146 = arith.addf %142, %145 : vector<8x128xf32>
    %147 = math.tanh %146 : vector<8x128xf32>
    %cst_46 = arith.constant 1.000000e+00 : f32
    %148 = vector.broadcast %cst_46 : f32 to vector<8x128xf32>
    %149 = arith.subf %148, %140 : vector<8x128xf32>
    %150 = arith.mulf %149, %147 : vector<8x128xf32>
    %151 = arith.mulf %140, %117 : vector<8x128xf32>
    %152 = arith.addf %150, %151 : vector<8x128xf32>
    %153 = arith.index_cast %121 : i32 to index
    %c0_47 = arith.constant 0 : index
    %154 = vector.load %arg11[%153, %c0_47] : memref<64x128xf32, #tpu.memory_space<vmem>>, vector<8x128xf32>
    tpu.vector_store %arg11[%153, %c0_47], %152 {strides = array<i32>} : memref<64x128xf32, #tpu.memory_space<vmem>>, vector<8x128xf32>,
    %c4_i32 = arith.constant 4 : i32
    %c8_i32_48 = arith.constant 8 : i32
    %155 = arith.muli %c4_i32, %c8_i32_48 : i32
    %156 = tpu.assume_multiple %155, 8 : i32
    %cst_49 = arith.constant dense<0.000000e+00> : vector<8x384xf32>
    %157 = tpu.matmul %152, %4, %cst_49 {dimension_numbers = #tpu.dot_dimension_numbers<[1], [0], [0], [1], [0, 0, 1, 1], [], []>} : vector<8x128xf32>, vector<128x384xf32>, vector<8x384xf32> -> vector<8x384xf32>
    %158 = arith.index_cast %156 : i32 to index
    %c0_50 = arith.constant 0 : index
    %159 = vector.load %arg10[%158, %c0_50] : memref<64x384xf32, #tpu.memory_space<vmem>>, vector<8x128xf32>
    %160 = vector.extract_strided_slice %157 {offsets = [0, 0], sizes = [8, 128], strides = [1, 1]} : vector<8x384xf32> to vector<8x128xf32>
    %161 = arith.addf %159, %160 : vector<8x128xf32>
    %162 = arith.negf %161 : vector<8x128xf32>
    %163 = math.exp %162 : vector<8x128xf32>
    %cst_51 = arith.constant 1.000000e+00 : f32
    %164 = vector.broadcast %cst_51 : f32 to vector<8x128xf32>
    %165 = arith.addf %164, %163 : vector<8x128xf32>
    %166 = arith.divf %164, %165 : vector<8x128xf32>
    %167 = arith.index_cast %156 : i32 to index
    %c128_52 = arith.constant 128 : index
    %168 = vector.load %arg10[%167, %c128_52] : memref<64x384xf32, #tpu.memory_space<vmem>>, vector<8x128xf32>
    %169 = vector.extract_strided_slice %157 {offsets = [0, 128], sizes = [8, 128], strides = [1, 1]} : vector<8x384xf32> to vector<8x128xf32>
    %170 = arith.addf %168, %169 : vector<8x128xf32>
    %171 = arith.negf %170 : vector<8x128xf32>
    %172 = math.exp %171 : vector<8x128xf32>
    %cst_53 = arith.constant 1.000000e+00 : f32
    %173 = vector.broadcast %cst_53 : f32 to vector<8x128xf32>
    %174 = arith.addf %173, %172 : vector<8x128xf32>
    %175 = arith.divf %173, %174 : vector<8x128xf32>
    %176 = arith.index_cast %156 : i32 to index
    %c256_54 = arith.constant 256 : index
    %177 = vector.load %arg10[%176, %c256_54] : memref<64x384xf32, #tpu.memory_space<vmem>>, vector<8x128xf32>
    %178 = vector.extract_strided_slice %157 {offsets = [0, 256], sizes = [8, 128], strides = [1, 1]} : vector<8x384xf32> to vector<8x128xf32>
    %179 = arith.addf %178, %13 : vector<8x128xf32>
    %180 = arith.mulf %166, %179 : vector<8x128xf32>
    %181 = arith.addf %177, %180 : vector<8x128xf32>
    %182 = math.tanh %181 : vector<8x128xf32>
    %cst_55 = arith.constant 1.000000e+00 : f32
    %183 = vector.broadcast %cst_55 : f32 to vector<8x128xf32>
    %184 = arith.subf %183, %175 : vector<8x128xf32>
    %185 = arith.mulf %184, %182 : vector<8x128xf32>
    %186 = arith.mulf %175, %152 : vector<8x128xf32>
    %187 = arith.addf %185, %186 : vector<8x128xf32>
    %188 = arith.index_cast %156 : i32 to index
    %c0_56 = arith.constant 0 : index
    %189 = vector.load %arg11[%188, %c0_56] : memref<64x128xf32, #tpu.memory_space<vmem>>, vector<8x128xf32>
    tpu.vector_store %arg11[%188, %c0_56], %187 {strides = array<i32>} : memref<64x128xf32, #tpu.memory_space<vmem>>, vector<8x128xf32>,
    %c5_i32 = arith.constant 5 : i32
    %c8_i32_57 = arith.constant 8 : i32
    %190 = arith.muli %c5_i32, %c8_i32_57 : i32
    %191 = tpu.assume_multiple %190, 8 : i32
    %cst_58 = arith.constant dense<0.000000e+00> : vector<8x384xf32>
    %192 = tpu.matmul %187, %4, %cst_58 {dimension_numbers = #tpu.dot_dimension_numbers<[1], [0], [0], [1], [0, 0, 1, 1], [], []>} : vector<8x128xf32>, vector<128x384xf32>, vector<8x384xf32> -> vector<8x384xf32>
    %193 = arith.index_cast %191 : i32 to index
    %c0_59 = arith.constant 0 : index
    %194 = vector.load %arg10[%193, %c0_59] : memref<64x384xf32, #tpu.memory_space<vmem>>, vector<8x128xf32>
    %195 = vector.extract_strided_slice %192 {offsets = [0, 0], sizes = [8, 128], strides = [1, 1]} : vector<8x384xf32> to vector<8x128xf32>
    %196 = arith.addf %194, %195 : vector<8x128xf32>
    %197 = arith.negf %196 : vector<8x128xf32>
    %198 = math.exp %197 : vector<8x128xf32>
    %cst_60 = arith.constant 1.000000e+00 : f32
    %199 = vector.broadcast %cst_60 : f32 to vector<8x128xf32>
    %200 = arith.addf %199, %198 : vector<8x128xf32>
    %201 = arith.divf %199, %200 : vector<8x128xf32>
    %202 = arith.index_cast %191 : i32 to index
    %c128_61 = arith.constant 128 : index
    %203 = vector.load %arg10[%202, %c128_61] : memref<64x384xf32, #tpu.memory_space<vmem>>, vector<8x128xf32>
    %204 = vector.extract_strided_slice %192 {offsets = [0, 128], sizes = [8, 128], strides = [1, 1]} : vector<8x384xf32> to vector<8x128xf32>
    %205 = arith.addf %203, %204 : vector<8x128xf32>
    %206 = arith.negf %205 : vector<8x128xf32>
    %207 = math.exp %206 : vector<8x128xf32>
    %cst_62 = arith.constant 1.000000e+00 : f32
    %208 = vector.broadcast %cst_62 : f32 to vector<8x128xf32>
    %209 = arith.addf %208, %207 : vector<8x128xf32>
    %210 = arith.divf %208, %209 : vector<8x128xf32>
    %211 = arith.index_cast %191 : i32 to index
    %c256_63 = arith.constant 256 : index
    %212 = vector.load %arg10[%211, %c256_63] : memref<64x384xf32, #tpu.memory_space<vmem>>, vector<8x128xf32>
    %213 = vector.extract_strided_slice %192 {offsets = [0, 256], sizes = [8, 128], strides = [1, 1]} : vector<8x384xf32> to vector<8x128xf32>
    %214 = arith.addf %213, %13 : vector<8x128xf32>
    %215 = arith.mulf %201, %214 : vector<8x128xf32>
    %216 = arith.addf %212, %215 : vector<8x128xf32>
    %217 = math.tanh %216 : vector<8x128xf32>
    %cst_64 = arith.constant 1.000000e+00 : f32
    %218 = vector.broadcast %cst_64 : f32 to vector<8x128xf32>
    %219 = arith.subf %218, %210 : vector<8x128xf32>
    %220 = arith.mulf %219, %217 : vector<8x128xf32>
    %221 = arith.mulf %210, %187 : vector<8x128xf32>
    %222 = arith.addf %220, %221 : vector<8x128xf32>
    %223 = arith.index_cast %191 : i32 to index
    %c0_65 = arith.constant 0 : index
    %224 = vector.load %arg11[%223, %c0_65] : memref<64x128xf32, #tpu.memory_space<vmem>>, vector<8x128xf32>
    tpu.vector_store %arg11[%223, %c0_65], %222 {strides = array<i32>} : memref<64x128xf32, #tpu.memory_space<vmem>>, vector<8x128xf32>,
    %c6_i32 = arith.constant 6 : i32
    %c8_i32_66 = arith.constant 8 : i32
    %225 = arith.muli %c6_i32, %c8_i32_66 : i32
    %226 = tpu.assume_multiple %225, 8 : i32
    %cst_67 = arith.constant dense<0.000000e+00> : vector<8x384xf32>
    %227 = tpu.matmul %222, %4, %cst_67 {dimension_numbers = #tpu.dot_dimension_numbers<[1], [0], [0], [1], [0, 0, 1, 1], [], []>} : vector<8x128xf32>, vector<128x384xf32>, vector<8x384xf32> -> vector<8x384xf32>
    %228 = arith.index_cast %226 : i32 to index
    %c0_68 = arith.constant 0 : index
    %229 = vector.load %arg10[%228, %c0_68] : memref<64x384xf32, #tpu.memory_space<vmem>>, vector<8x128xf32>
    %230 = vector.extract_strided_slice %227 {offsets = [0, 0], sizes = [8, 128], strides = [1, 1]} : vector<8x384xf32> to vector<8x128xf32>
    %231 = arith.addf %229, %230 : vector<8x128xf32>
    %232 = arith.negf %231 : vector<8x128xf32>
    %233 = math.exp %232 : vector<8x128xf32>
    %cst_69 = arith.constant 1.000000e+00 : f32
    %234 = vector.broadcast %cst_69 : f32 to vector<8x128xf32>
    %235 = arith.addf %234, %233 : vector<8x128xf32>
    %236 = arith.divf %234, %235 : vector<8x128xf32>
    %237 = arith.index_cast %226 : i32 to index
    %c128_70 = arith.constant 128 : index
    %238 = vector.load %arg10[%237, %c128_70] : memref<64x384xf32, #tpu.memory_space<vmem>>, vector<8x128xf32>
    %239 = vector.extract_strided_slice %227 {offsets = [0, 128], sizes = [8, 128], strides = [1, 1]} : vector<8x384xf32> to vector<8x128xf32>
    %240 = arith.addf %238, %239 : vector<8x128xf32>
    %241 = arith.negf %240 : vector<8x128xf32>
    %242 = math.exp %241 : vector<8x128xf32>
    %cst_71 = arith.constant 1.000000e+00 : f32
    %243 = vector.broadcast %cst_71 : f32 to vector<8x128xf32>
    %244 = arith.addf %243, %242 : vector<8x128xf32>
    %245 = arith.divf %243, %244 : vector<8x128xf32>
    %246 = arith.index_cast %226 : i32 to index
    %c256_72 = arith.constant 256 : index
    %247 = vector.load %arg10[%246, %c256_72] : memref<64x384xf32, #tpu.memory_space<vmem>>, vector<8x128xf32>
    %248 = vector.extract_strided_slice %227 {offsets = [0, 256], sizes = [8, 128], strides = [1, 1]} : vector<8x384xf32> to vector<8x128xf32>
    %249 = arith.addf %248, %13 : vector<8x128xf32>
    %250 = arith.mulf %236, %249 : vector<8x128xf32>
    %251 = arith.addf %247, %250 : vector<8x128xf32>
    %252 = math.tanh %251 : vector<8x128xf32>
    %cst_73 = arith.constant 1.000000e+00 : f32
    %253 = vector.broadcast %cst_73 : f32 to vector<8x128xf32>
    %254 = arith.subf %253, %245 : vector<8x128xf32>
    %255 = arith.mulf %254, %252 : vector<8x128xf32>
    %256 = arith.mulf %245, %222 : vector<8x128xf32>
    %257 = arith.addf %255, %256 : vector<8x128xf32>
    %258 = arith.index_cast %226 : i32 to index
    %c0_74 = arith.constant 0 : index
    %259 = vector.load %arg11[%258, %c0_74] : memref<64x128xf32, #tpu.memory_space<vmem>>, vector<8x128xf32>
    tpu.vector_store %arg11[%258, %c0_74], %257 {strides = array<i32>} : memref<64x128xf32, #tpu.memory_space<vmem>>, vector<8x128xf32>,
    %c7_i32 = arith.constant 7 : i32
    %c8_i32_75 = arith.constant 8 : i32
    %260 = arith.muli %c7_i32, %c8_i32_75 : i32
    %261 = tpu.assume_multiple %260, 8 : i32
    %cst_76 = arith.constant dense<0.000000e+00> : vector<8x384xf32>
    %262 = tpu.matmul %257, %4, %cst_76 {dimension_numbers = #tpu.dot_dimension_numbers<[1], [0], [0], [1], [0, 0, 1, 1], [], []>} : vector<8x128xf32>, vector<128x384xf32>, vector<8x384xf32> -> vector<8x384xf32>
    %263 = arith.index_cast %261 : i32 to index
    %c0_77 = arith.constant 0 : index
    %264 = vector.load %arg10[%263, %c0_77] : memref<64x384xf32, #tpu.memory_space<vmem>>, vector<8x128xf32>
    %265 = vector.extract_strided_slice %262 {offsets = [0, 0], sizes = [8, 128], strides = [1, 1]} : vector<8x384xf32> to vector<8x128xf32>
    %266 = arith.addf %264, %265 : vector<8x128xf32>
    %267 = arith.negf %266 : vector<8x128xf32>
    %268 = math.exp %267 : vector<8x128xf32>
    %cst_78 = arith.constant 1.000000e+00 : f32
    %269 = vector.broadcast %cst_78 : f32 to vector<8x128xf32>
    %270 = arith.addf %269, %268 : vector<8x128xf32>
    %271 = arith.divf %269, %270 : vector<8x128xf32>
    %272 = arith.index_cast %261 : i32 to index
    %c128_79 = arith.constant 128 : index
    %273 = vector.load %arg10[%272, %c128_79] : memref<64x384xf32, #tpu.memory_space<vmem>>, vector<8x128xf32>
    %274 = vector.extract_strided_slice %262 {offsets = [0, 128], sizes = [8, 128], strides = [1, 1]} : vector<8x384xf32> to vector<8x128xf32>
    %275 = arith.addf %273, %274 : vector<8x128xf32>
    %276 = arith.negf %275 : vector<8x128xf32>
    %277 = math.exp %276 : vector<8x128xf32>
    %cst_80 = arith.constant 1.000000e+00 : f32
    %278 = vector.broadcast %cst_80 : f32 to vector<8x128xf32>
    %279 = arith.addf %278, %277 : vector<8x128xf32>
    %280 = arith.divf %278, %279 : vector<8x128xf32>
    %281 = arith.index_cast %261 : i32 to index
    %c256_81 = arith.constant 256 : index
    %282 = vector.load %arg10[%281, %c256_81] : memref<64x384xf32, #tpu.memory_space<vmem>>, vector<8x128xf32>
    %283 = vector.extract_strided_slice %262 {offsets = [0, 256], sizes = [8, 128], strides = [1, 1]} : vector<8x384xf32> to vector<8x128xf32>
    %284 = arith.addf %283, %13 : vector<8x128xf32>
    %285 = arith.mulf %271, %284 : vector<8x128xf32>
    %286 = arith.addf %282, %285 : vector<8x128xf32>
    %287 = math.tanh %286 : vector<8x128xf32>
    %cst_82 = arith.constant 1.000000e+00 : f32
    %288 = vector.broadcast %cst_82 : f32 to vector<8x128xf32>
    %289 = arith.subf %288, %280 : vector<8x128xf32>
    %290 = arith.mulf %289, %287 : vector<8x128xf32>
    %291 = arith.mulf %280, %257 : vector<8x128xf32>
    %292 = arith.addf %290, %291 : vector<8x128xf32>
    %293 = arith.index_cast %261 : i32 to index
    %c0_83 = arith.constant 0 : index
    %294 = vector.load %arg11[%293, %c0_83] : memref<64x128xf32, #tpu.memory_space<vmem>>, vector<8x128xf32>
    tpu.vector_store %arg11[%293, %c0_83], %292 {strides = array<i32>} : memref<64x128xf32, #tpu.memory_space<vmem>>, vector<8x128xf32>,
    %c8_i32_84 = arith.constant 8 : i32
    %c0_85 = arith.constant 0 : index
    %c0_86 = arith.constant 0 : index
    %295 = vector.load %arg9[%c0_85, %c0_86] : memref<8x128xf32, #tpu.memory_space<vmem>>, vector<8x128xf32>
    tpu.vector_store %arg9[%c0_85, %c0_86], %292 {strides = array<i32>} : memref<8x128xf32, #tpu.memory_space<vmem>>, vector<8x128xf32>,
    %c0_87 = arith.constant 0 : index
    %c0_88 = arith.constant 0 : index
    %296 = vector.load %arg11[%c0_87, %c0_88] : memref<64x128xf32, #tpu.memory_space<vmem>>, vector<64x128xf32>
    %c0_89 = arith.constant 0 : index
    %c0_90 = arith.constant 0 : index
    %297 = vector.load %arg8[%c0_89, %c0_90] : memref<64x128xf32, #tpu.memory_space<vmem>>, vector<64x128xf32>
    tpu.vector_store %arg8[%c0_89, %c0_90], %296 {strides = array<i32>} : memref<64x128xf32, #tpu.memory_space<vmem>>, vector<64x128xf32>,
    return
  }
  func.func @transform_0(%arg0: i32, %arg1: i32) -> (i32, i32) {
    %c1_i32 = arith.constant 1 : i32
    %0 = arith.muli %arg0, %c1_i32 : i32
    %1 = arith.addi %0, %arg1 : i32
    %c0_i32 = arith.constant 0 : i32
    %c0_i32_0 = arith.constant 0 : i32
    return %1, %c0_i32 : i32, i32
  }
  func.func @transform_1(%arg0: i32, %arg1: i32) -> (i32, i32) {
    %c0_i32 = arith.constant 0 : i32
    %c0_i32_0 = arith.constant 0 : i32
    %c0_i32_1 = arith.constant 0 : i32
    return %c0_i32, %c0_i32_0 : i32, i32
  }
  func.func @transform_2(%arg0: i32, %arg1: i32) -> (i32, i32) {
    %c0_i32 = arith.constant 0 : i32
    %c0_i32_0 = arith.constant 0 : i32
    %c0_i32_1 = arith.constant 0 : i32
    return %c0_i32, %c0_i32_0 : i32, i32
  }
  func.func @transform_3(%arg0: i32, %arg1: i32) -> (i32, i32) {
    %c0_i32 = arith.constant 0 : i32
    %c0_i32_0 = arith.constant 0 : i32
    %c0_i32_1 = arith.constant 0 : i32
    return %c0_i32, %c0_i32_0 : i32, i32
  }
  func.func @transform_4(%arg0: i32, %arg1: i32) -> (i32, i32) {
    %c0_i32 = arith.constant 0 : i32
    %c0_i32_0 = arith.constant 0 : i32
    %c0_i32_1 = arith.constant 0 : i32
    return %c0_i32, %c0_i32_0 : i32, i32
  }
  func.func @transform_5(%arg0: i32, %arg1: i32) -> (i32, i32) {
    %c0_i32 = arith.constant 0 : i32
    %c0_i32_0 = arith.constant 0 : i32
    return %arg0, %c0_i32 : i32, i32
  }
  func.func @transform_6(%arg0: i32, %arg1: i32) -> (i32, i32) {
    %c1_i32 = arith.constant 1 : i32
    %0 = arith.muli %arg0, %c1_i32 : i32
    %1 = arith.addi %0, %arg1 : i32
    %c0_i32 = arith.constant 0 : i32
    %c0_i32_0 = arith.constant 0 : i32
    return %1, %c0_i32 : i32, i32
  }
}

module attributes {stable_mosaic.version = 11 : i64} {
  func.func @gru_layer_kernel(%arg0: i32, %arg1: i32, %arg2: memref<64x128xf32, #tpu.memory_space<vmem>>, %arg3: memref<128x384xf32, #tpu.memory_space<vmem>>, %arg4: memref<1x384xf32, #tpu.memory_space<vmem>>, %arg5: memref<128x384xf32, #tpu.memory_space<vmem>>, %arg6: memref<1x128xf32, #tpu.memory_space<vmem>>, %arg7: memref<8x128xf32, #tpu.memory_space<vmem>>, %arg8: memref<64x128xf32, #tpu.memory_space<vmem>>, %arg9: memref<8x128xf32, #tpu.memory_space<vmem>>, %arg10: memref<64x384xf32, #tpu.memory_space<vmem>>, %arg11: memref<64x128xf32, #tpu.memory_space<vmem>>) attributes {dimension_semantics = [#tpu.dimension_semantics<parallel>, #tpu.dimension_semantics<arbitrary>], iteration_bounds = array<i64: 1, 1>, scalar_prefetch = 0 : i64, scratch_operands = 3 : i64, tpu.core_type = #tpu.core_type<tc>, window_params = [{transform_indices = @transform_0, window_bounds = array<i64: 64, 128>}, {pipeline_mode = #tpu.pipeline_mode<synchronous>, transform_indices = @transform_1, window_bounds = array<i64: 128, 384>}, {pipeline_mode = #tpu.pipeline_mode<synchronous>, transform_indices = @transform_2, window_bounds = array<i64: 1, 384>}, {pipeline_mode = #tpu.pipeline_mode<synchronous>, transform_indices = @transform_3, window_bounds = array<i64: 128, 384>}, {pipeline_mode = #tpu.pipeline_mode<synchronous>, transform_indices = @transform_4, window_bounds = array<i64: 1, 128>}, {transform_indices = @transform_5, window_bounds = array<i64: 8, 128>}, {transform_indices = @transform_6, window_bounds = array<i64: 64, 128>}]} {
    %c0_i32 = arith.constant 0 : i32
    %0 = arith.cmpi eq, %arg1, %c0_i32 : i32
    %1 = arith.extui %0 : i1 to i32
    %c0_i32_0 = arith.constant 0 : i32
    %2 = arith.cmpi ne, %1, %c0_i32_0 : i32
    scf.if %2 {
      %c0_91 = arith.constant 0 : index
      %c0_92 = arith.constant 0 : index
      %298 = vector.load %arg7[%c0_91, %c0_92] : memref<8x128xf32, #tpu.memory_space<vmem>>, vector<8x128xf32>
      %c0_93 = arith.constant 0 : index
      %c0_94 = arith.constant 0 : index
      %299 = vector.load %arg9[%c0_93, %c0_94] : memref<8x128xf32, #tpu.memory_space<vmem>>, vector<8x128xf32>
      tpu.vector_store %arg9[%c0_93, %c0_94], %298 {strides = array<i32>} : memref<8x128xf32, #tpu.memory_space<vmem>>, vector<8x128xf32>,
    } else {
    }
    %c0 = arith.constant 0 : index
    %c0_1 = arith.constant 0 : index
    %3 = vector.load %arg3[%c0, %c0_1] : memref<128x384xf32, #tpu.memory_space<vmem>>, vector<128x384xf32>
    %c0_2 = arith.constant 0 : index
    %c0_3 = arith.constant 0 : index
    %4 = vector.load %arg5[%c0_2, %c0_3] : memref<128x384xf32, #tpu.memory_space<vmem>>, vector<128x384xf32>
    %c0_4 = arith.constant 0 : index
    %c0_5 = arith.constant 0 : index
    %5 = vector.load %arg2[%c0_4, %c0_5] : memref<64x128xf32, #tpu.memory_space<vmem>>, vector<64x128xf32>
    %cst = arith.constant dense<0.000000e+00> : vector<64x384xf32>
    %6 = tpu.matmul %5, %3, %cst {dimension_numbers = #tpu.dot_dimension_numbers<[1], [0], [0], [1], [0, 0, 1, 1], [], []>} : vector<64x128xf32>, vector<128x384xf32>, vector<64x384xf32> -> vector<64x384xf32>
    %c0_6 = arith.constant 0 : index
    %c0_7 = arith.constant 0 : index
    %7 = vector.load %arg4[%c0_6, %c0_7] : memref<1x384xf32, #tpu.memory_space<vmem>>, vector<1x384xf32>
    %8 = vector.broadcast %7 : vector<1x384xf32> to vector<64x384xf32>
    %9 = arith.addf %6, %8 : vector<64x384xf32>
    %c0_8 = arith.constant 0 : index
    %c0_9 = arith.constant 0 : index
    %10 = vector.load %arg10[%c0_8, %c0_9] : memref<64x384xf32, #tpu.memory_space<vmem>>, vector<64x384xf32>
    tpu.vector_store %arg10[%c0_8, %c0_9], %9 {strides = array<i32>} : memref<64x384xf32, #tpu.memory_space<vmem>>, vector<64x384xf32>,
    %c0_10 = arith.constant 0 : index
    %c0_11 = arith.constant 0 : index
    %11 = vector.load %arg6[%c0_10, %c0_11] : memref<1x128xf32, #tpu.memory_space<vmem>>, vector<1x128xf32>
    %12 = vector.shape_cast %11 : vector<1x128xf32> to vector<1x128xf32>
    %13 = vector.broadcast %12 : vector<1x128xf32> to vector<8x128xf32>
    %c0_12 = arith.constant 0 : index
    %c0_13 = arith.constant 0 : index
    %14 = vector.load %arg9[%c0_12, %c0_13] : memref<8x128xf32, #tpu.memory_space<vmem>>, vector<8x128xf32>
    %c0_i32_14 = arith.constant 0 : i32
    %c8_i32 = arith.constant 8 : i32
    %15 = arith.muli %c0_i32_14, %c8_i32 : i32
    %16 = tpu.assume_multiple %15, 8 : i32
    %cst_15 = arith.constant dense<0.000000e+00> : vector<8x384xf32>
    %17 = tpu.matmul %14, %4, %cst_15 {dimension_numbers = #tpu.dot_dimension_numbers<[1], [0], [0], [1], [0, 0, 1, 1], [], []>} : vector<8x128xf32>, vector<128x384xf32>, vector<8x384xf32> -> vector<8x384xf32>
    %18 = arith.index_cast %16 : i32 to index
    %c0_16 = arith.constant 0 : index
    %19 = vector.load %arg10[%18, %c0_16] : memref<64x384xf32, #tpu.memory_space<vmem>>, vector<8x128xf32>
    %20 = vector.extract_strided_slice %17 {offsets = [0, 0], sizes = [8, 128], strides = [1, 1]} : vector<8x384xf32> to vector<8x128xf32>
    %21 = arith.addf %19, %20 : vector<8x128xf32>
    %22 = arith.negf %21 : vector<8x128xf32>
    %23 = math.exp %22 : vector<8x128xf32>
    %cst_17 = arith.constant 1.000000e+00 : f32
    %24 = vector.broadcast %cst_17 : f32 to vector<8x128xf32>
    %25 = arith.addf %24, %23 : vector<8x128xf32>
    %26 = arith.divf %24, %25 : vector<8x128xf32>
    %27 = arith.index_cast %16 : i32 to index
    %c128 = arith.constant 128 : index
    %28 = vector.load %arg10[%27, %c128] : memref<64x384xf32, #tpu.memory_space<vmem>>, vector<8x128xf32>
    %29 = vector.extract_strided_slice %17 {offsets = [0, 128], sizes = [8, 128], strides = [1, 1]} : vector<8x384xf32> to vector<8x128xf32>
    %30 = arith.addf %28, %29 : vector<8x128xf32>
    %31 = arith.negf %30 : vector<8x128xf32>
    %32 = math.exp %31 : vector<8x128xf32>
    %cst_18 = arith.constant 1.000000e+00 : f32
    %33 = vector.broadcast %cst_18 : f32 to vector<8x128xf32>
    %34 = arith.addf %33, %32 : vector<8x128xf32>
    %35 = arith.divf %33, %34 : vector<8x128xf32>
    %36 = arith.index_cast %16 : i32 to index
    %c256 = arith.constant 256 : index
    %37 = vector.load %arg10[%36, %c256] : memref<64x384xf32, #tpu.memory_space<vmem>>, vector<8x128xf32>
    %38 = vector.extract_strided_slice %17 {offsets = [0, 256], sizes = [8, 128], strides = [1, 1]} : vector<8x384xf32> to vector<8x128xf32>
    %39 = arith.addf %38, %13 : vector<8x128xf32>
    %40 = arith.mulf %26, %39 : vector<8x128xf32>
    %41 = arith.addf %37, %40 : vector<8x128xf32>
    %42 = math.tanh %41 : vector<8x128xf32>
    %cst_19 = arith.constant 1.000000e+00 : f32
    %43 = vector.broadcast %cst_19 : f32 to vector<8x128xf32>
    %44 = arith.subf %43, %35 : vector<8x128xf32>
    %45 = arith.mulf %44, %42 : vector<8x128xf32>
    %46 = arith.mulf %35, %14 : vector<8x128xf32>
    %47 = arith.addf %45, %46 : vector<8x128xf32>
    %48 = arith.index_cast %16 : i32 to index
    %c0_20 = arith.constant 0 : index
    %49 = vector.load %arg11[%48, %c0_20] : memref<64x128xf32, #tpu.memory_space<vmem>>, vector<8x128xf32>
    tpu.vector_store %arg11[%48, %c0_20], %47 {strides = array<i32>} : memref<64x128xf32, #tpu.memory_space<vmem>>, vector<8x128xf32>,
    %c1_i32 = arith.constant 1 : i32
    %c8_i32_21 = arith.constant 8 : i32
    %50 = arith.muli %c1_i32, %c8_i32_21 : i32
    %51 = tpu.assume_multiple %50, 8 : i32
    %cst_22 = arith.constant dense<0.000000e+00> : vector<8x384xf32>
    %52 = tpu.matmul %47, %4, %cst_22 {dimension_numbers = #tpu.dot_dimension_numbers<[1], [0], [0], [1], [0, 0, 1, 1], [], []>} : vector<8x128xf32>, vector<128x384xf32>, vector<8x384xf32> -> vector<8x384xf32>
    %53 = arith.index_cast %51 : i32 to index
    %c0_23 = arith.constant 0 : index
    %54 = vector.load %arg10[%53, %c0_23] : memref<64x384xf32, #tpu.memory_space<vmem>>, vector<8x128xf32>
    %55 = vector.extract_strided_slice %52 {offsets = [0, 0], sizes = [8, 128], strides = [1, 1]} : vector<8x384xf32> to vector<8x128xf32>
    %56 = arith.addf %54, %55 : vector<8x128xf32>
    %57 = arith.negf %56 : vector<8x128xf32>
    %58 = math.exp %57 : vector<8x128xf32>
    %cst_24 = arith.constant 1.000000e+00 : f32
    %59 = vector.broadcast %cst_24 : f32 to vector<8x128xf32>
    %60 = arith.addf %59, %58 : vector<8x128xf32>
    %61 = arith.divf %59, %60 : vector<8x128xf32>
    %62 = arith.index_cast %51 : i32 to index
    %c128_25 = arith.constant 128 : index
    %63 = vector.load %arg10[%62, %c128_25] : memref<64x384xf32, #tpu.memory_space<vmem>>, vector<8x128xf32>
    %64 = vector.extract_strided_slice %52 {offsets = [0, 128], sizes = [8, 128], strides = [1, 1]} : vector<8x384xf32> to vector<8x128xf32>
    %65 = arith.addf %63, %64 : vector<8x128xf32>
    %66 = arith.negf %65 : vector<8x128xf32>
    %67 = math.exp %66 : vector<8x128xf32>
    %cst_26 = arith.constant 1.000000e+00 : f32
    %68 = vector.broadcast %cst_26 : f32 to vector<8x128xf32>
    %69 = arith.addf %68, %67 : vector<8x128xf32>
    %70 = arith.divf %68, %69 : vector<8x128xf32>
    %71 = arith.index_cast %51 : i32 to index
    %c256_27 = arith.constant 256 : index
    %72 = vector.load %arg10[%71, %c256_27] : memref<64x384xf32, #tpu.memory_space<vmem>>, vector<8x128xf32>
    %73 = vector.extract_strided_slice %52 {offsets = [0, 256], sizes = [8, 128], strides = [1, 1]} : vector<8x384xf32> to vector<8x128xf32>
    %74 = arith.addf %73, %13 : vector<8x128xf32>
    %75 = arith.mulf %61, %74 : vector<8x128xf32>
    %76 = arith.addf %72, %75 : vector<8x128xf32>
    %77 = math.tanh %76 : vector<8x128xf32>
    %cst_28 = arith.constant 1.000000e+00 : f32
    %78 = vector.broadcast %cst_28 : f32 to vector<8x128xf32>
    %79 = arith.subf %78, %70 : vector<8x128xf32>
    %80 = arith.mulf %79, %77 : vector<8x128xf32>
    %81 = arith.mulf %70, %47 : vector<8x128xf32>
    %82 = arith.addf %80, %81 : vector<8x128xf32>
    %83 = arith.index_cast %51 : i32 to index
    %c0_29 = arith.constant 0 : index
    %84 = vector.load %arg11[%83, %c0_29] : memref<64x128xf32, #tpu.memory_space<vmem>>, vector<8x128xf32>
    tpu.vector_store %arg11[%83, %c0_29], %82 {strides = array<i32>} : memref<64x128xf32, #tpu.memory_space<vmem>>, vector<8x128xf32>,
    %c2_i32 = arith.constant 2 : i32
    %c8_i32_30 = arith.constant 8 : i32
    %85 = arith.muli %c2_i32, %c8_i32_30 : i32
    %86 = tpu.assume_multiple %85, 8 : i32
    %cst_31 = arith.constant dense<0.000000e+00> : vector<8x384xf32>
    %87 = tpu.matmul %82, %4, %cst_31 {dimension_numbers = #tpu.dot_dimension_numbers<[1], [0], [0], [1], [0, 0, 1, 1], [], []>} : vector<8x128xf32>, vector<128x384xf32>, vector<8x384xf32> -> vector<8x384xf32>
    %88 = arith.index_cast %86 : i32 to index
    %c0_32 = arith.constant 0 : index
    %89 = vector.load %arg10[%88, %c0_32] : memref<64x384xf32, #tpu.memory_space<vmem>>, vector<8x128xf32>
    %90 = vector.extract_strided_slice %87 {offsets = [0, 0], sizes = [8, 128], strides = [1, 1]} : vector<8x384xf32> to vector<8x128xf32>
    %91 = arith.addf %89, %90 : vector<8x128xf32>
    %92 = arith.negf %91 : vector<8x128xf32>
    %93 = math.exp %92 : vector<8x128xf32>
    %cst_33 = arith.constant 1.000000e+00 : f32
    %94 = vector.broadcast %cst_33 : f32 to vector<8x128xf32>
    %95 = arith.addf %94, %93 : vector<8x128xf32>
    %96 = arith.divf %94, %95 : vector<8x128xf32>
    %97 = arith.index_cast %86 : i32 to index
    %c128_34 = arith.constant 128 : index
    %98 = vector.load %arg10[%97, %c128_34] : memref<64x384xf32, #tpu.memory_space<vmem>>, vector<8x128xf32>
    %99 = vector.extract_strided_slice %87 {offsets = [0, 128], sizes = [8, 128], strides = [1, 1]} : vector<8x384xf32> to vector<8x128xf32>
    %100 = arith.addf %98, %99 : vector<8x128xf32>
    %101 = arith.negf %100 : vector<8x128xf32>
    %102 = math.exp %101 : vector<8x128xf32>
    %cst_35 = arith.constant 1.000000e+00 : f32
    %103 = vector.broadcast %cst_35 : f32 to vector<8x128xf32>
    %104 = arith.addf %103, %102 : vector<8x128xf32>
    %105 = arith.divf %103, %104 : vector<8x128xf32>
    %106 = arith.index_cast %86 : i32 to index
    %c256_36 = arith.constant 256 : index
    %107 = vector.load %arg10[%106, %c256_36] : memref<64x384xf32, #tpu.memory_space<vmem>>, vector<8x128xf32>
    %108 = vector.extract_strided_slice %87 {offsets = [0, 256], sizes = [8, 128], strides = [1, 1]} : vector<8x384xf32> to vector<8x128xf32>
    %109 = arith.addf %108, %13 : vector<8x128xf32>
    %110 = arith.mulf %96, %109 : vector<8x128xf32>
    %111 = arith.addf %107, %110 : vector<8x128xf32>
    %112 = math.tanh %111 : vector<8x128xf32>
    %cst_37 = arith.constant 1.000000e+00 : f32
    %113 = vector.broadcast %cst_37 : f32 to vector<8x128xf32>
    %114 = arith.subf %113, %105 : vector<8x128xf32>
    %115 = arith.mulf %114, %112 : vector<8x128xf32>
    %116 = arith.mulf %105, %82 : vector<8x128xf32>
    %117 = arith.addf %115, %116 : vector<8x128xf32>
    %118 = arith.index_cast %86 : i32 to index
    %c0_38 = arith.constant 0 : index
    %119 = vector.load %arg11[%118, %c0_38] : memref<64x128xf32, #tpu.memory_space<vmem>>, vector<8x128xf32>
    tpu.vector_store %arg11[%118, %c0_38], %117 {strides = array<i32>} : memref<64x128xf32, #tpu.memory_space<vmem>>, vector<8x128xf32>,
    %c3_i32 = arith.constant 3 : i32
    %c8_i32_39 = arith.constant 8 : i32
    %120 = arith.muli %c3_i32, %c8_i32_39 : i32
    %121 = tpu.assume_multiple %120, 8 : i32
    %cst_40 = arith.constant dense<0.000000e+00> : vector<8x384xf32>
    %122 = tpu.matmul %117, %4, %cst_40 {dimension_numbers = #tpu.dot_dimension_numbers<[1], [0], [0], [1], [0, 0, 1, 1], [], []>} : vector<8x128xf32>, vector<128x384xf32>, vector<8x384xf32> -> vector<8x384xf32>
    %123 = arith.index_cast %121 : i32 to index
    %c0_41 = arith.constant 0 : index
    %124 = vector.load %arg10[%123, %c0_41] : memref<64x384xf32, #tpu.memory_space<vmem>>, vector<8x128xf32>
    %125 = vector.extract_strided_slice %122 {offsets = [0, 0], sizes = [8, 128], strides = [1, 1]} : vector<8x384xf32> to vector<8x128xf32>
    %126 = arith.addf %124, %125 : vector<8x128xf32>
    %127 = arith.negf %126 : vector<8x128xf32>
    %128 = math.exp %127 : vector<8x128xf32>
    %cst_42 = arith.constant 1.000000e+00 : f32
    %129 = vector.broadcast %cst_42 : f32 to vector<8x128xf32>
    %130 = arith.addf %129, %128 : vector<8x128xf32>
    %131 = arith.divf %129, %130 : vector<8x128xf32>
    %132 = arith.index_cast %121 : i32 to index
    %c128_43 = arith.constant 128 : index
    %133 = vector.load %arg10[%132, %c128_43] : memref<64x384xf32, #tpu.memory_space<vmem>>, vector<8x128xf32>
    %134 = vector.extract_strided_slice %122 {offsets = [0, 128], sizes = [8, 128], strides = [1, 1]} : vector<8x384xf32> to vector<8x128xf32>
    %135 = arith.addf %133, %134 : vector<8x128xf32>
    %136 = arith.negf %135 : vector<8x128xf32>
    %137 = math.exp %136 : vector<8x128xf32>
    %cst_44 = arith.constant 1.000000e+00 : f32
    %138 = vector.broadcast %cst_44 : f32 to vector<8x128xf32>
    %139 = arith.addf %138, %137 : vector<8x128xf32>
    %140 = arith.divf %138, %139 : vector<8x128xf32>
    %141 = arith.index_cast %121 : i32 to index
    %c256_45 = arith.constant 256 : index
    %142 = vector.load %arg10[%141, %c256_45] : memref<64x384xf32, #tpu.memory_space<vmem>>, vector<8x128xf32>
    %143 = vector.extract_strided_slice %122 {offsets = [0, 256], sizes = [8, 128], strides = [1, 1]} : vector<8x384xf32> to vector<8x128xf32>
    %144 = arith.addf %143, %13 : vector<8x128xf32>
    %145 = arith.mulf %131, %144 : vector<8x128xf32>
    %146 = arith.addf %142, %145 : vector<8x128xf32>
    %147 = math.tanh %146 : vector<8x128xf32>
    %cst_46 = arith.constant 1.000000e+00 : f32
    %148 = vector.broadcast %cst_46 : f32 to vector<8x128xf32>
    %149 = arith.subf %148, %140 : vector<8x128xf32>
    %150 = arith.mulf %149, %147 : vector<8x128xf32>
    %151 = arith.mulf %140, %117 : vector<8x128xf32>
    %152 = arith.addf %150, %151 : vector<8x128xf32>
    %153 = arith.index_cast %121 : i32 to index
    %c0_47 = arith.constant 0 : index
    %154 = vector.load %arg11[%153, %c0_47] : memref<64x128xf32, #tpu.memory_space<vmem>>, vector<8x128xf32>
    tpu.vector_store %arg11[%153, %c0_47], %152 {strides = array<i32>} : memref<64x128xf32, #tpu.memory_space<vmem>>, vector<8x128xf32>,
    %c4_i32 = arith.constant 4 : i32
    %c8_i32_48 = arith.constant 8 : i32
    %155 = arith.muli %c4_i32, %c8_i32_48 : i32
    %156 = tpu.assume_multiple %155, 8 : i32
    %cst_49 = arith.constant dense<0.000000e+00> : vector<8x384xf32>
    %157 = tpu.matmul %152, %4, %cst_49 {dimension_numbers = #tpu.dot_dimension_numbers<[1], [0], [0], [1], [0, 0, 1, 1], [], []>} : vector<8x128xf32>, vector<128x384xf32>, vector<8x384xf32> -> vector<8x384xf32>
    %158 = arith.index_cast %156 : i32 to index
    %c0_50 = arith.constant 0 : index
    %159 = vector.load %arg10[%158, %c0_50] : memref<64x384xf32, #tpu.memory_space<vmem>>, vector<8x128xf32>
    %160 = vector.extract_strided_slice %157 {offsets = [0, 0], sizes = [8, 128], strides = [1, 1]} : vector<8x384xf32> to vector<8x128xf32>
    %161 = arith.addf %159, %160 : vector<8x128xf32>
    %162 = arith.negf %161 : vector<8x128xf32>
    %163 = math.exp %162 : vector<8x128xf32>
    %cst_51 = arith.constant 1.000000e+00 : f32
    %164 = vector.broadcast %cst_51 : f32 to vector<8x128xf32>
    %165 = arith.addf %164, %163 : vector<8x128xf32>
    %166 = arith.divf %164, %165 : vector<8x128xf32>
    %167 = arith.index_cast %156 : i32 to index
    %c128_52 = arith.constant 128 : index
    %168 = vector.load %arg10[%167, %c128_52] : memref<64x384xf32, #tpu.memory_space<vmem>>, vector<8x128xf32>
    %169 = vector.extract_strided_slice %157 {offsets = [0, 128], sizes = [8, 128], strides = [1, 1]} : vector<8x384xf32> to vector<8x128xf32>
    %170 = arith.addf %168, %169 : vector<8x128xf32>
    %171 = arith.negf %170 : vector<8x128xf32>
    %172 = math.exp %171 : vector<8x128xf32>
    %cst_53 = arith.constant 1.000000e+00 : f32
    %173 = vector.broadcast %cst_53 : f32 to vector<8x128xf32>
    %174 = arith.addf %173, %172 : vector<8x128xf32>
    %175 = arith.divf %173, %174 : vector<8x128xf32>
    %176 = arith.index_cast %156 : i32 to index
    %c256_54 = arith.constant 256 : index
    %177 = vector.load %arg10[%176, %c256_54] : memref<64x384xf32, #tpu.memory_space<vmem>>, vector<8x128xf32>
    %178 = vector.extract_strided_slice %157 {offsets = [0, 256], sizes = [8, 128], strides = [1, 1]} : vector<8x384xf32> to vector<8x128xf32>
    %179 = arith.addf %178, %13 : vector<8x128xf32>
    %180 = arith.mulf %166, %179 : vector<8x128xf32>
    %181 = arith.addf %177, %180 : vector<8x128xf32>
    %182 = math.tanh %181 : vector<8x128xf32>
    %cst_55 = arith.constant 1.000000e+00 : f32
    %183 = vector.broadcast %cst_55 : f32 to vector<8x128xf32>
    %184 = arith.subf %183, %175 : vector<8x128xf32>
    %185 = arith.mulf %184, %182 : vector<8x128xf32>
    %186 = arith.mulf %175, %152 : vector<8x128xf32>
    %187 = arith.addf %185, %186 : vector<8x128xf32>
    %188 = arith.index_cast %156 : i32 to index
    %c0_56 = arith.constant 0 : index
    %189 = vector.load %arg11[%188, %c0_56] : memref<64x128xf32, #tpu.memory_space<vmem>>, vector<8x128xf32>
    tpu.vector_store %arg11[%188, %c0_56], %187 {strides = array<i32>} : memref<64x128xf32, #tpu.memory_space<vmem>>, vector<8x128xf32>,
    %c5_i32 = arith.constant 5 : i32
    %c8_i32_57 = arith.constant 8 : i32
    %190 = arith.muli %c5_i32, %c8_i32_57 : i32
    %191 = tpu.assume_multiple %190, 8 : i32
    %cst_58 = arith.constant dense<0.000000e+00> : vector<8x384xf32>
    %192 = tpu.matmul %187, %4, %cst_58 {dimension_numbers = #tpu.dot_dimension_numbers<[1], [0], [0], [1], [0, 0, 1, 1], [], []>} : vector<8x128xf32>, vector<128x384xf32>, vector<8x384xf32> -> vector<8x384xf32>
    %193 = arith.index_cast %191 : i32 to index
    %c0_59 = arith.constant 0 : index
    %194 = vector.load %arg10[%193, %c0_59] : memref<64x384xf32, #tpu.memory_space<vmem>>, vector<8x128xf32>
    %195 = vector.extract_strided_slice %192 {offsets = [0, 0], sizes = [8, 128], strides = [1, 1]} : vector<8x384xf32> to vector<8x128xf32>
    %196 = arith.addf %194, %195 : vector<8x128xf32>
    %197 = arith.negf %196 : vector<8x128xf32>
    %198 = math.exp %197 : vector<8x128xf32>
    %cst_60 = arith.constant 1.000000e+00 : f32
    %199 = vector.broadcast %cst_60 : f32 to vector<8x128xf32>
    %200 = arith.addf %199, %198 : vector<8x128xf32>
    %201 = arith.divf %199, %200 : vector<8x128xf32>
    %202 = arith.index_cast %191 : i32 to index
    %c128_61 = arith.constant 128 : index
    %203 = vector.load %arg10[%202, %c128_61] : memref<64x384xf32, #tpu.memory_space<vmem>>, vector<8x128xf32>
    %204 = vector.extract_strided_slice %192 {offsets = [0, 128], sizes = [8, 128], strides = [1, 1]} : vector<8x384xf32> to vector<8x128xf32>
    %205 = arith.addf %203, %204 : vector<8x128xf32>
    %206 = arith.negf %205 : vector<8x128xf32>
    %207 = math.exp %206 : vector<8x128xf32>
    %cst_62 = arith.constant 1.000000e+00 : f32
    %208 = vector.broadcast %cst_62 : f32 to vector<8x128xf32>
    %209 = arith.addf %208, %207 : vector<8x128xf32>
    %210 = arith.divf %208, %209 : vector<8x128xf32>
    %211 = arith.index_cast %191 : i32 to index
    %c256_63 = arith.constant 256 : index
    %212 = vector.load %arg10[%211, %c256_63] : memref<64x384xf32, #tpu.memory_space<vmem>>, vector<8x128xf32>
    %213 = vector.extract_strided_slice %192 {offsets = [0, 256], sizes = [8, 128], strides = [1, 1]} : vector<8x384xf32> to vector<8x128xf32>
    %214 = arith.addf %213, %13 : vector<8x128xf32>
    %215 = arith.mulf %201, %214 : vector<8x128xf32>
    %216 = arith.addf %212, %215 : vector<8x128xf32>
    %217 = math.tanh %216 : vector<8x128xf32>
    %cst_64 = arith.constant 1.000000e+00 : f32
    %218 = vector.broadcast %cst_64 : f32 to vector<8x128xf32>
    %219 = arith.subf %218, %210 : vector<8x128xf32>
    %220 = arith.mulf %219, %217 : vector<8x128xf32>
    %221 = arith.mulf %210, %187 : vector<8x128xf32>
    %222 = arith.addf %220, %221 : vector<8x128xf32>
    %223 = arith.index_cast %191 : i32 to index
    %c0_65 = arith.constant 0 : index
    %224 = vector.load %arg11[%223, %c0_65] : memref<64x128xf32, #tpu.memory_space<vmem>>, vector<8x128xf32>
    tpu.vector_store %arg11[%223, %c0_65], %222 {strides = array<i32>} : memref<64x128xf32, #tpu.memory_space<vmem>>, vector<8x128xf32>,
    %c6_i32 = arith.constant 6 : i32
    %c8_i32_66 = arith.constant 8 : i32
    %225 = arith.muli %c6_i32, %c8_i32_66 : i32
    %226 = tpu.assume_multiple %225, 8 : i32
    %cst_67 = arith.constant dense<0.000000e+00> : vector<8x384xf32>
    %227 = tpu.matmul %222, %4, %cst_67 {dimension_numbers = #tpu.dot_dimension_numbers<[1], [0], [0], [1], [0, 0, 1, 1], [], []>} : vector<8x128xf32>, vector<128x384xf32>, vector<8x384xf32> -> vector<8x384xf32>
    %228 = arith.index_cast %226 : i32 to index
    %c0_68 = arith.constant 0 : index
    %229 = vector.load %arg10[%228, %c0_68] : memref<64x384xf32, #tpu.memory_space<vmem>>, vector<8x128xf32>
    %230 = vector.extract_strided_slice %227 {offsets = [0, 0], sizes = [8, 128], strides = [1, 1]} : vector<8x384xf32> to vector<8x128xf32>
    %231 = arith.addf %229, %230 : vector<8x128xf32>
    %232 = arith.negf %231 : vector<8x128xf32>
    %233 = math.exp %232 : vector<8x128xf32>
    %cst_69 = arith.constant 1.000000e+00 : f32
    %234 = vector.broadcast %cst_69 : f32 to vector<8x128xf32>
    %235 = arith.addf %234, %233 : vector<8x128xf32>
    %236 = arith.divf %234, %235 : vector<8x128xf32>
    %237 = arith.index_cast %226 : i32 to index
    %c128_70 = arith.constant 128 : index
    %238 = vector.load %arg10[%237, %c128_70] : memref<64x384xf32, #tpu.memory_space<vmem>>, vector<8x128xf32>
    %239 = vector.extract_strided_slice %227 {offsets = [0, 128], sizes = [8, 128], strides = [1, 1]} : vector<8x384xf32> to vector<8x128xf32>
    %240 = arith.addf %238, %239 : vector<8x128xf32>
    %241 = arith.negf %240 : vector<8x128xf32>
    %242 = math.exp %241 : vector<8x128xf32>
    %cst_71 = arith.constant 1.000000e+00 : f32
    %243 = vector.broadcast %cst_71 : f32 to vector<8x128xf32>
    %244 = arith.addf %243, %242 : vector<8x128xf32>
    %245 = arith.divf %243, %244 : vector<8x128xf32>
    %246 = arith.index_cast %226 : i32 to index
    %c256_72 = arith.constant 256 : index
    %247 = vector.load %arg10[%246, %c256_72] : memref<64x384xf32, #tpu.memory_space<vmem>>, vector<8x128xf32>
    %248 = vector.extract_strided_slice %227 {offsets = [0, 256], sizes = [8, 128], strides = [1, 1]} : vector<8x384xf32> to vector<8x128xf32>
    %249 = arith.addf %248, %13 : vector<8x128xf32>
    %250 = arith.mulf %236, %249 : vector<8x128xf32>
    %251 = arith.addf %247, %250 : vector<8x128xf32>
    %252 = math.tanh %251 : vector<8x128xf32>
    %cst_73 = arith.constant 1.000000e+00 : f32
    %253 = vector.broadcast %cst_73 : f32 to vector<8x128xf32>
    %254 = arith.subf %253, %245 : vector<8x128xf32>
    %255 = arith.mulf %254, %252 : vector<8x128xf32>
    %256 = arith.mulf %245, %222 : vector<8x128xf32>
    %257 = arith.addf %255, %256 : vector<8x128xf32>
    %258 = arith.index_cast %226 : i32 to index
    %c0_74 = arith.constant 0 : index
    %259 = vector.load %arg11[%258, %c0_74] : memref<64x128xf32, #tpu.memory_space<vmem>>, vector<8x128xf32>
    tpu.vector_store %arg11[%258, %c0_74], %257 {strides = array<i32>} : memref<64x128xf32, #tpu.memory_space<vmem>>, vector<8x128xf32>,
    %c7_i32 = arith.constant 7 : i32
    %c8_i32_75 = arith.constant 8 : i32
    %260 = arith.muli %c7_i32, %c8_i32_75 : i32
    %261 = tpu.assume_multiple %260, 8 : i32
    %cst_76 = arith.constant dense<0.000000e+00> : vector<8x384xf32>
    %262 = tpu.matmul %257, %4, %cst_76 {dimension_numbers = #tpu.dot_dimension_numbers<[1], [0], [0], [1], [0, 0, 1, 1], [], []>} : vector<8x128xf32>, vector<128x384xf32>, vector<8x384xf32> -> vector<8x384xf32>
    %263 = arith.index_cast %261 : i32 to index
    %c0_77 = arith.constant 0 : index
    %264 = vector.load %arg10[%263, %c0_77] : memref<64x384xf32, #tpu.memory_space<vmem>>, vector<8x128xf32>
    %265 = vector.extract_strided_slice %262 {offsets = [0, 0], sizes = [8, 128], strides = [1, 1]} : vector<8x384xf32> to vector<8x128xf32>
    %266 = arith.addf %264, %265 : vector<8x128xf32>
    %267 = arith.negf %266 : vector<8x128xf32>
    %268 = math.exp %267 : vector<8x128xf32>
    %cst_78 = arith.constant 1.000000e+00 : f32
    %269 = vector.broadcast %cst_78 : f32 to vector<8x128xf32>
    %270 = arith.addf %269, %268 : vector<8x128xf32>
    %271 = arith.divf %269, %270 : vector<8x128xf32>
    %272 = arith.index_cast %261 : i32 to index
    %c128_79 = arith.constant 128 : index
    %273 = vector.load %arg10[%272, %c128_79] : memref<64x384xf32, #tpu.memory_space<vmem>>, vector<8x128xf32>
    %274 = vector.extract_strided_slice %262 {offsets = [0, 128], sizes = [8, 128], strides = [1, 1]} : vector<8x384xf32> to vector<8x128xf32>
    %275 = arith.addf %273, %274 : vector<8x128xf32>
    %276 = arith.negf %275 : vector<8x128xf32>
    %277 = math.exp %276 : vector<8x128xf32>
    %cst_80 = arith.constant 1.000000e+00 : f32
    %278 = vector.broadcast %cst_80 : f32 to vector<8x128xf32>
    %279 = arith.addf %278, %277 : vector<8x128xf32>
    %280 = arith.divf %278, %279 : vector<8x128xf32>
    %281 = arith.index_cast %261 : i32 to index
    %c256_81 = arith.constant 256 : index
    %282 = vector.load %arg10[%281, %c256_81] : memref<64x384xf32, #tpu.memory_space<vmem>>, vector<8x128xf32>
    %283 = vector.extract_strided_slice %262 {offsets = [0, 256], sizes = [8, 128], strides = [1, 1]} : vector<8x384xf32> to vector<8x128xf32>
    %284 = arith.addf %283, %13 : vector<8x128xf32>
    %285 = arith.mulf %271, %284 : vector<8x128xf32>
    %286 = arith.addf %282, %285 : vector<8x128xf32>
    %287 = math.tanh %286 : vector<8x128xf32>
    %cst_82 = arith.constant 1.000000e+00 : f32
    %288 = vector.broadcast %cst_82 : f32 to vector<8x128xf32>
    %289 = arith.subf %288, %280 : vector<8x128xf32>
    %290 = arith.mulf %289, %287 : vector<8x128xf32>
    %291 = arith.mulf %280, %257 : vector<8x128xf32>
    %292 = arith.addf %290, %291 : vector<8x128xf32>
    %293 = arith.index_cast %261 : i32 to index
    %c0_83 = arith.constant 0 : index
    %294 = vector.load %arg11[%293, %c0_83] : memref<64x128xf32, #tpu.memory_space<vmem>>, vector<8x128xf32>
    tpu.vector_store %arg11[%293, %c0_83], %292 {strides = array<i32>} : memref<64x128xf32, #tpu.memory_space<vmem>>, vector<8x128xf32>,
    %c8_i32_84 = arith.constant 8 : i32
    %c0_85 = arith.constant 0 : index
    %c0_86 = arith.constant 0 : index
    %295 = vector.load %arg9[%c0_85, %c0_86] : memref<8x128xf32, #tpu.memory_space<vmem>>, vector<8x128xf32>
    tpu.vector_store %arg9[%c0_85, %c0_86], %292 {strides = array<i32>} : memref<8x128xf32, #tpu.memory_space<vmem>>, vector<8x128xf32>,
    %c0_87 = arith.constant 0 : index
    %c0_88 = arith.constant 0 : index
    %296 = vector.load %arg11[%c0_87, %c0_88] : memref<64x128xf32, #tpu.memory_space<vmem>>, vector<64x128xf32>
    %c0_89 = arith.constant 0 : index
    %c0_90 = arith.constant 0 : index
    %297 = vector.load %arg8[%c0_89, %c0_90] : memref<64x128xf32, #tpu.memory_space<vmem>>, vector<64x128xf32>
    tpu.vector_store %arg8[%c0_89, %c0_90], %296 {strides = array<i32>} : memref<64x128xf32, #tpu.memory_space<vmem>>, vector<64x128xf32>,
    return
  }
  func.func @transform_0(%arg0: i32, %arg1: i32) -> (i32, i32) {
    %c1_i32 = arith.constant 1 : i32
    %0 = arith.muli %arg0, %c1_i32 : i32
    %1 = arith.addi %0, %arg1 : i32
    %c0_i32 = arith.constant 0 : i32
    %c0_i32_0 = arith.constant 0 : i32
    return %1, %c0_i32 : i32, i32
  }
  func.func @transform_1(%arg0: i32, %arg1: i32) -> (i32, i32) {
    %c0_i32 = arith.constant 0 : i32
    %c0_i32_0 = arith.constant 0 : i32
    %c0_i32_1 = arith.constant 0 : i32
    return %c0_i32, %c0_i32_0 : i32, i32
  }
  func.func @transform_2(%arg0: i32, %arg1: i32) -> (i32, i32) {
    %c0_i32 = arith.constant 0 : i32
    %c0_i32_0 = arith.constant 0 : i32
    %c0_i32_1 = arith.constant 0 : i32
    return %c0_i32, %c0_i32_0 : i32, i32
  }
  func.func @transform_3(%arg0: i32, %arg1: i32) -> (i32, i32) {
    %c0_i32 = arith.constant 0 : i32
    %c0_i32_0 = arith.constant 0 : i32
    %c0_i32_1 = arith.constant 0 : i32
    return %c0_i32, %c0_i32_0 : i32, i32
  }
  func.func @transform_4(%arg0: i32, %arg1: i32) -> (i32, i32) {
    %c0_i32 = arith.constant 0 : i32
    %c0_i32_0 = arith.constant 0 : i32
    %c0_i32_1 = arith.constant 0 : i32
    return %c0_i32, %c0_i32_0 : i32, i32
  }
  func.func @transform_5(%arg0: i32, %arg1: i32) -> (i32, i32) {
    %c0_i32 = arith.constant 0 : i32
    %c0_i32_0 = arith.constant 0 : i32
    return %arg0, %c0_i32 : i32, i32
  }
  func.func @transform_6(%arg0: i32, %arg1: i32) -> (i32, i32) {
    %c1_i32 = arith.constant 1 : i32
    %0 = arith.muli %arg0, %c1_i32 : i32
    %1 = arith.addi %0, %arg1 : i32
    %c0_i32 = arith.constant 0 : i32
    %c0_i32_0 = arith.constant 0 : i32
    return %1, %c0_i32 : i32, i32
  }
}

</mosaic_0001>

<bundles_post_ra>
// kernel: tpu_custom_call.1
= control target key start
LH: loop header
LB: loop body
LE: loop exit
PB: predicated region body
PF: predicated region fallthrough
CT: control target
= control target key end

     0   :  { %6 = vsyncpa [#allocation3], 0  ;;  %s124_s0 = inlined_call_operand.hbm [shape: f32[8,128], index: 0, kind: input, shape index: {}]   ;;  %s125_s1 = inlined_call_operand.hbm [shape: f32[8,128], index: 1, kind: output, shape index: {}]  }
   0x1   :  { %7 = vsyncpa [#allocation4], 0  ;;  %s88_s6 = smov [#allocation2]   ;;  %s40_s10 = scalar_lea.hbm %s124_s0, 128 }
   0x2   :  { %s14_s7 = sshll.u32 %s88_s6, 4  ;;  %p41_p0 = scmp.ne.s32.totalorder %s124_s0, %s40_s10  ;;  %s15_s7 = int_to_ptr.vmem [resolvable:$true] %s14_s7 }
   0x3   :  { %p44_p1 = scmp.lt.u32.totalorder %s40_s10, %s124_s0 }
   0x5   :  { %p46_p2 = pnand %p44_p1, %p41_p0 }
   0x7   :  { %49 = shalt.err (!%p46_p2)
}
   0x8   :  { %s50_s15 = scalar_lea.vmem %s15_s7, 128  ;;  %p55_p4 = scmp.lt.s32.totalorder %s15_s7, %s15_s7 }
   0x9   :  { %p51_p3 = scmp.ne.s32.totalorder %s15_s7, %s50_s15  ;;  %p56_p5 = scmp.lt.s32.totalorder %s50_s15, %s50_s15 }
   0xb   :  { %p57_p6 = por %p56_p5, %p55_p4 }
   0xd   :  { %p58_p7 = pnand %p57_p6, %p51_p3 }
   0xf   :  { %61 = shalt.err (!%p58_p7)
}
  0x10   :  { %17 = dma.hbm_to_vmem [thread:$0]  %s124_s0, 128, %s15_s7, [#allocation3]  }
  0x11   :  { %84 = dma.done.wait [#allocation3], 128  }
  0x12   :  { %85 = vsyncadd [#allocation3], 4294967168  ;;  %s89_s18 = smov [#allocation5]   ;;  %v21_v0 = vld [vmem:[#allocation2] sm:$0xff] }
  0x13   :  { %s29_s19 = sshll.u32 %s89_s18, 4  ;;  %22 = vst [vmem:[#allocation5] sm:$0xff] %v21_v0  ;;  %s30_s19 = int_to_ptr.vmem [resolvable:$true] %s29_s19 }
  0x14   :  { %s62_s20 = scalar_lea.vmem %s30_s19, 128  ;;  %p67_p9 = scmp.lt.s32.totalorder %s30_s19, %s30_s19 }
  0x15   :  { %p63_p8 = scmp.ne.s32.totalorder %s30_s19, %s62_s20  ;;  %p68_p10 = scmp.lt.s32.totalorder %s62_s20, %s62_s20 }
  0x17   :  { %p69_p11 = por %p68_p10, %p67_p9 }
  0x19   :  { %p70_p12 = pnand %p69_p11, %p63_p8 }
  0x1b   :  { %73 = shalt.err (!%p70_p12)
}
  0x1c   :  { %s74_s23 = scalar_lea.hbm %s125_s1, 128 }
  0x1d   :  { %p75_p13 = scmp.ne.s32.totalorder %s125_s1, %s74_s23  ;;  %p78_p0 = scmp.lt.u32.totalorder %s74_s23, %s125_s1 }
  0x1f   :  { %p80_p1 = pnand %p78_p0, %p75_p13 }
  0x21   :  { %83 = shalt.err (!%p80_p1)
}
  0x22   :  { %32 = dma.vmem_to_hbm [thread:$0]  %s30_s19, 128, %s125_s1, [#allocation4]  }
  0x23   :  { %86 = dma.done.wait [#allocation4], 128  }
  0x24   :  { %87 = vsyncadd [#allocation4], 4294967168 }
  0x25   :  { %36 = vsyncpa [#allocation3], 1 }
  0x26   :  { %37 = vsyncpa [#allocation4], 1 }

// kernel: _lambda_.2
= control target key start
LH: loop header
LB: loop body
LE: loop exit
PB: predicated region body
PF: predicated region fallthrough
CT: control target
= control target key end

     0   :  { %11 = vsyncpa [#allocation6], 0  ;;  %s3689_s0 = inlined_call_operand.hbm [shape: f32[64,4], index: 0, kind: input, shape index: {}]   ;;  %s3690_s1 = inlined_call_operand.hbm [shape: f32[4,384], index: 1, kind: input, shape index: {}]   ;;  %s3691_s2 = inlined_call_operand.hbm [shape: f32[1,384], index: 2, kind: input, shape index: {}]   ;;  %s3692_s3 = inlined_call_operand.hbm [shape: f32[128,384], index: 3, kind: input, shape index: {}]   ;;  %s3693_s4 = inlined_call_operand.hbm [shape: f32[1,128], index: 4, kind: input, shape index: {}]   ;;  %s3694_s5 = inlined_call_operand.hbm [shape: f32[8,128], index: 5, kind: input, shape index: {}]   ;;  %s3695_s6 = inlined_call_operand.hbm [shape: f32[64,128], index: 6, kind: output, shape index: {}]  }
   0x1   :  { %12 = vsyncpa [#allocation9], 0 }
   0x2   :  { %13 = vsyncpa [#allocation12], 0 }
   0x3   :  { %14 = vsyncpa [#allocation15], 0 }
   0x4   :  { %15 = vsyncpa [#allocation7], 0  ;;  %s3101_s21 = smov [#allocation8]   ;;  %s3102_s23 = smov [#allocation11]  }
   0x5   :  { %s38_s22 = sshll.u32 %s3101_s21, 4  ;;  %s57_s24 = sshll.u32 %s3102_s23, 4  ;;  %s39_s22 = int_to_ptr.vmem [resolvable:$true] %s38_s22  ;;  %s3150_s24 = int_to_ptr.vmem [resolvable:$true] %s57_s24 }
   0x6   :  { %s2937_s27 = scalar_lea.hbm %s3690_s1, 192 }
   0x7   :  { %p2938_p0 = scmp.ne.s32.totalorder %s3690_s1, %s2937_s27  ;;  %p2941_p1 = scmp.lt.u32.totalorder %s2937_s27, %s3690_s1 }
   0x9   :  { %p2943_p2 = pnand %p2941_p1, %p2938_p0 }
   0xb   :  { %2946 = shalt.err (!%p2943_p2)
}
   0xc   :  { %s2947_s8 = scalar_lea.vmem %s39_s22, 192  ;;  %p2952_p4 = scmp.lt.s32.totalorder %s39_s22, %s39_s22 }
   0xd   :  { %p2948_p3 = scmp.ne.s32.totalorder %s39_s22, %s2947_s8  ;;  %p2953_p5 = scmp.lt.s32.totalorder %s2947_s8, %s2947_s8 }
   0xf   :  { %p2954_p6 = por %p2953_p5, %p2952_p4 }
  0x11   :  { %p2955_p7 = pnand %p2954_p6, %p2948_p3 }
  0x13   :  { %2958 = shalt.err (!%p2955_p7)
}
  0x14   :  { %41 = dma.hbm_to_vmem [thread:$0]  %s3690_s1, 192, %s39_s22, [#allocation9]  }
  0x15   :  { %s2959_s13 = scalar_lea.hbm %s3692_s3, 6144 }
  0x16   :  { %p2960_p8 = scmp.ne.s32.totalorder %s3692_s3, %s2959_s13  ;;  %p2963_p9 = scmp.lt.u32.totalorder %s2959_s13, %s3692_s3 }
  0x18   :  { %p2965_p10 = pnand %p2963_p9, %p2960_p8 }
  0x1a   :  { %2968 = shalt.err (!%p2965_p10)
}
  0x1b   :  { %s2969_s18 = scalar_lea.vmem %s3150_s24, 6144  ;;  %p2974_p12 = scmp.lt.s32.totalorder %s3150_s24, %s3150_s24 }
  0x1c   :  { %p2970_p11 = scmp.ne.s32.totalorder %s3150_s24, %s2969_s18  ;;  %p2975_p13 = scmp.lt.s32.totalorder %s2969_s18, %s2969_s18 }
  0x1e   :  { %p2976_p0 = por %p2975_p13, %p2974_p12 }
  0x20   :  { %p2977_p1 = pnand %p2976_p0, %p2970_p11 }
  0x22   :  { %2980 = shalt.err (!%p2977_p1)
}
  0x23   :  { %s3103_s1 = smov 384   ;;  %s3104_s19 = smov 24  }
  0x24   :  { %63 = dma.hbm_to_vmem [thread:$0]  %s3692_s3, 6144, %s3150_s24, [#allocation12], %s3103_s1, %s3103_s1, %s3104_s19  }
  0x25   :  { %s3105_s22 = smov [#allocation5]   ;;  %s2981_s27 = scalar_lea.hbm %s3689_s0, 1024 }
  0x26   :  { %s25_s23 = sshll.u32 %s3105_s22, 4  ;;  %p2982_p2 = scmp.ne.s32.totalorder %s3689_s0, %s2981_s27  ;;  %s26_s23 = int_to_ptr.vmem [resolvable:$true] %s25_s23 }
  0x27   :  { %p2985_p3 = scmp.lt.u32.totalorder %s2981_s27, %s3689_s0 }
  0x29   :  { %p2987_p4 = pnand %p2985_p3, %p2982_p2 }
  0x2b   :  { %2990 = shalt.err (!%p2987_p4)
}
  0x2c   :  { %s2991_s8 = scalar_lea.vmem %s26_s23, 1024  ;;  %p2996_p6 = scmp.lt.s32.totalorder %s26_s23, %s26_s23 }
  0x2d   :  { %p2992_p5 = scmp.ne.s32.totalorder %s26_s23, %s2991_s8  ;;  %p2997_p7 = scmp.lt.s32.totalorder %s2991_s8, %s2991_s8 }
  0x2f   :  { %p2998_p8 = por %p2997_p7, %p2996_p6 }
  0x31   :  { %p2999_p9 = pnand %p2998_p8, %p2992_p5 }
  0x33   :  { %3002 = shalt.err (!%p2999_p9)
}
  0x34   :  { %s3106_s3 = smov 128   ;;  %s3107_s24 = smov 8  }
  0x35   :  { %31 = dma.hbm_to_vmem [thread:$0]  %s3689_s0, 1024, %s26_s23, [#allocation6], %s3106_s3, %s3106_s3, %s3107_s24  }
  0x36   :  { %s3108_s11 = smov [#allocation10]   ;;  %s3109_s13 = smov [#allocation13]  }
  0x37   :  { %s48_s12 = sshll.u32 %s3108_s11, 4  ;;  %s70_s14 = sshll.u32 %s3109_s13, 4  ;;  %s49_s12 = int_to_ptr.vmem [resolvable:$true] %s48_s12  ;;  %s71_s14 = int_to_ptr.vmem [resolvable:$true] %s70_s14 }
  0x38   :  { %s3003_s17 = scalar_lea.hbm %s3691_s2, 48 }
  0x39   :  { %p3004_p10 = scmp.ne.s32.totalorder %s3691_s2, %s3003_s17  ;;  %p3007_p11 = scmp.lt.u32.totalorder %s3003_s17, %s3691_s2 }
  0x3b   :  { %p3009_p12 = pnand %p3007_p11, %p3004_p10 }
  0x3d   :  { %3012 = shalt.err (!%p3009_p12)
}
  0x3e   :  { %s3013_s0 = scalar_lea.vmem %s49_s12, 48  ;;  %s3017_s21 = scalar_lea.vmem %s49_s12, 64 }
  0x3f   :  { %p3014_p13 = scmp.ne.s32.totalorder %s49_s12, %s3013_s0  ;;  %p3018_p0 = scmp.lt.s32.totalorder %s49_s12, %s49_s12 }
  0x40   :  { %p3019_p1 = scmp.lt.s32.totalorder %s3017_s21, %s3013_s0 }
  0x42   :  { %p3020_p2 = por %p3019_p1, %p3018_p0 }
  0x44   :  { %p3021_p3 = pnand %p3020_p2, %p3014_p13 }
  0x46   :  { %3024 = shalt.err (!%p3021_p3)
}
  0x47   :  { %51 = dma.hbm_to_vmem [thread:$0]  %s3691_s2, 48, %s49_s12, [#allocation9]  }
  0x48   :  { %s3025_s27 = scalar_lea.hbm %s3693_s4, 16 }
  0x49   :  { %p3026_p4 = scmp.ne.s32.totalorder %s3693_s4, %s3025_s27  ;;  %p3029_p5 = scmp.lt.u32.totalorder %s3025_s27, %s3693_s4 }
  0x4b   :  { %p3031_p6 = pnand %p3029_p5, %p3026_p4 }
  0x4d   :  { %3034 = shalt.err (!%p3031_p6)
}
  0x4e   :  { %s3035_s8 = scalar_lea.vmem %s71_s14, 16  ;;  %s3039_s9 = scalar_lea.vmem %s71_s14, 32 }
  0x4f   :  { %p3036_p7 = scmp.ne.s32.totalorder %s71_s14, %s3035_s8  ;;  %p3040_p8 = scmp.lt.s32.totalorder %s71_s14, %s71_s14 }
  0x50   :  { %p3041_p9 = scmp.lt.s32.totalorder %s3039_s9, %s3035_s8 }
  0x52   :  { %p3042_p10 = por %p3041_p9, %p3040_p8 }
  0x54   :  { %p3043_p11 = pnand %p3042_p10, %p3036_p7 }
  0x56   :  { %3046 = shalt.err (!%p3043_p11)
}
  0x57   :  { %73 = dma.hbm_to_vmem [thread:$0]  %s3693_s4, 16, %s71_s14, [#allocation12]  }
  0x58   :  { %s3110_s11 = smov [#allocation14]   ;;  %s3047_s16 = scalar_lea.hbm %s3694_s5, 128 }
  0x59   :  { %s80_s12 = sshll.u32 %s3110_s11, 4  ;;  %p3048_p12 = scmp.ne.s32.totalorder %s3694_s5, %s3047_s16  ;;  %s81_s12 = int_to_ptr.vmem [resolvable:$true] %s80_s12 }
  0x5a   :  { %p3051_p13 = scmp.lt.u32.totalorder %s3047_s16, %s3694_s5 }
  0x5c   :  { %p3053_p0 = pnand %p3051_p13, %p3048_p12 }
  0x5e   :  { %3056 = shalt.err (!%p3053_p0)
}
  0x5f   :  { %s3057_s20 = scalar_lea.vmem %s81_s12, 128  ;;  %p3062_p2 = scmp.lt.s32.totalorder %s81_s12, %s81_s12 }
  0x60   :  { %p3058_p1 = scmp.ne.s32.totalorder %s81_s12, %s3057_s20  ;;  %p3063_p3 = scmp.lt.s32.totalorder %s3057_s20, %s3057_s20 }
  0x62   :  { %p3064_p4 = por %p3063_p3, %p3062_p2 }
  0x64   :  { %p3065_p5 = pnand %p3064_p4, %p3058_p1 }
  0x66   :  { %3068 = shalt.err (!%p3065_p5)
}
  0x67   :  { %83 = dma.hbm_to_vmem [thread:$0]  %s3694_s5, 128, %s81_s12, [#allocation15]  }
  0x68   :  { %3091 = dma.done.wait [#allocation6], 1024  }
  0x69   :  { %3092 = vsyncadd [#allocation6], 4294966272 }
  0x6a   :  { %3093 = dma.done.wait [#allocation9], 240  }
  0x6b   :  { %3094 = vsyncadd [#allocation9], 4294967056 }
  0x6c   :  { %3095 = dma.done.wait [#allocation12], 6160  }
  0x6d   :  { %3096 = vsyncadd [#allocation12], 4294961136 }
  0x6e   :  { %3097 = dma.done.wait [#allocation15], 128  }
  0x6f   :  { %3098 = vsyncadd [#allocation15], 4294967168  ;;  %v3111_v0 = vmov 0.0   ;;  %v112_v1 = vld [vmem:[#allocation8] sm:$0xff]  ;;  %vm215_vm0 = vcmask 1043456   ;;  %vm190_vm1 = vcmask 31744  }
  0x70   :  { %286 = vmatprep.mubr.f32.mxu0 %v3111_v0  ;;  %v162_v2 = vld [vmem:[#allocation5] sm:$0xff]  ;;  %v115_v3 = vld [vmem:[#allocation11 + $0x8] sm:$0xff]  ;;  %v189_v4 = vcombine.high %v112_v1, %v112_v1  ;;  %v118_v5 = vld [vmem:[#allocation11 + $0x20] sm:$0xff]  ;;  %v3112_v34 = vmov 0.0|0.0   ;;  %vm3113_vm2 = vmmov 0   ;;  %s3114_s5 = smov [#allocation16]  }
  0x71   :  { %v114_v6 = vld [vmem:[#allocation11] sm:$0xff]  ;;  %v117_v7 = vld [vmem:[#allocation11 + $0x18] sm:$0xff]  ;;  %2070 = vmatprep.mubr.msk.f32.mxu1 %vm190_vm1, %v162_v2  ;;  %v3234_v8 = vpack.c.bf16 %v118_v5, %v115_v3  ;;  %v124_v11 = vld [vmem:[#allocation11 + $0x50] sm:$0xff]  ;;  %s1865_s0 = sshll.u32 %s3114_s5, 4  ;;  %s1866_s0 = int_to_ptr.vmem [resolvable:$true] %s1865_s0 }
  0x72   :  { %v3236_v9 = vpack.c.bf16 %v117_v7, %v114_v6  ;;  %v121_v10 = vld [vmem:[#allocation11 + $0x38] sm:$0xff]  ;;  %1887 = vmatprep.subr.msk.mxu0 %vm215_vm0, %v189_v4  ;;  %v120_v13 = vld [vmem:[#allocation11 + $0x30] sm:$0xff]  ;;  %v123_v14 = vld [vmem:[#allocation11 + $0x48] sm:$0xff]  ;;  %s3069_s21 = scalar_lea.vmem %s1866_s0, 1024  ;;  %p3074_p7 = scmp.lt.s32.totalorder %s1866_s0, %s1866_s0 }
  0x73   :  { %v3239_v12 = vpack.c.bf16 %v124_v11, %v121_v10  ;;  %1888 = vmatpush1.msk.msra.mxu0 %vm215_vm0, %v112_v1  ;;  %v127_v15 = vld [vmem:[#allocation11 + $0x68] sm:$0xff]  ;;  %v130_v16 = vld [vmem:[#allocation11 + $0x80] sm:$0xff]  ;;  %v163_v17 = vld [vmem:[#allocation5 + $0x8] sm:$0xff]  ;;  %v3246_v18 = vpack.c.bf16 %v123_v14, %v120_v13  ;;  %p3070_p6 = scmp.ne.s32.totalorder %s1866_s0, %s3069_s21  ;;  %p3075_p8 = scmp.lt.s32.totalorder %s3069_s21, %s3069_s21 }
  0x74   :  { %1889 = vmatmul.mubr.msk.f32.vlgmr.msra.gmra.mrb[0].mxu0 %vm190_vm1, %v162_v2  ;;  %2363 = vmatprep.subr.bf16.mxu0 %v3234_v8  ;;  %v3249_v19 = vpack.c.bf16 %v130_v16, %v127_v15  ;;  %v126_v20 = vld [vmem:[#allocation11 + $0x60] sm:$0xff]  ;;  %v129_v21 = vld [vmem:[#allocation11 + $0x78] sm:$0xff]  ;;  %v136_v23 = vld [vmem:[#allocation11 + $0xb0] sm:$0xff] }
  0x75   :  { %2365 = vmatpush1.bf16.msra.mxu0 %v3236_v9  ;;  %292 = vmatprep.mubr.f32.mxu0 %v3111_v0  ;;  %v133_v22 = vld [vmem:[#allocation11 + $0x98] sm:$0xff]  ;;  %v164_v24 = vld [vmem:[#allocation5 + $0x10] sm:$0xff]  ;;  %v3254_v25 = vpack.c.bf16 %v129_v21, %v126_v20  ;;  %v132_v28 = vld [vmem:[#allocation11 + $0x90] sm:$0xff]  ;;  %p3076_p9 = por %p3075_p8, %p3074_p7 }
  0x76   :  { %2367 = vmatprep.subr.bf16.mxu0 %v3239_v12  ;;  %v113_v26 = vld [vmem:[#allocation8 + $0x8] sm:$0xf]  ;;  %v3257_v27 = vpack.c.bf16 %v136_v23, %v133_v22  ;;  %v135_v29 = vld [vmem:[#allocation11 + $0xa8] sm:$0xff]  ;;  %v142_v31 = vld [vmem:[#allocation11 + $0xe0] sm:$0xff] }
  0x77   :  { %v139_v30 = vld [vmem:[#allocation11 + $0xc8] sm:$0xff]  ;;  %2068 = vmatprep.subr.msk.mxu1 %vm215_vm0, %v113_v26  ;;  %v116_v32 = vld [vmem:[#allocation11 + $0x10] sm:$0xff]  ;;  %v3267_v37 = vpack.c.bf16 %v135_v29, %v132_v28  ;;  %v122_v38 = vld [vmem:[#allocation11 + $0x40] sm:$0xff]  ;;  %p3077_p10 = pnand %p3076_p9, %p3070_p6 }
  0x78   :  { %1890 = vmatmul.mubr.msk.f32.gmra.mrb[2].mxu0 %vm190_vm1, %v163_v17  ;;  %2069 = vmatpush3.msk.msra.mxu1 %vm215_vm0, %v113_v26  ;;  %v119_v33 = vld [vmem:[#allocation11 + $0x28] sm:$0xff]  ;;  %v3270_v39 = vpack.c.bf16 %v142_v31, %v139_v30  ;;  %v138_v40 = vld [vmem:[#allocation11 + $0xc0] sm:$0xff]  ;;  %v141_v41 = vld [vmem:[#allocation11 + $0xd8] sm:$0xff]  ;;  %v172_v30 = vlaneseq }
  0x79   :  { %2369 = vmatpush1.bf16.msra.mxu0 %v3246_v18  ;;  %298 = vmatprep.mubr.f32.mxu0 %v3111_v0  ;;  %v3263_v35 = vpack.c.bf16 %v119_v33, %v116_v32  ;;  %v165_v36 = vld [vmem:[#allocation5 + $0x18] sm:$0xff]  ;;  %v125_v42 = vld [vmem:[#allocation11 + $0x58] sm:$0xff]  ;;  %v148_v44 = vld [vmem:[#allocation11 + $0x110] sm:$0xff]  ;;  %v3281_v49 = vpack.c.bf16 %v141_v41, %v138_v40 }
  0x7a   :  { %2371 = vmatprep.subr.bf16.mxu0 %v3249_v19  ;;  %2394 = vmatprep.subr.bf16.mxu1 %v3112_v34  ;;  %v145_v43 = vld [vmem:[#allocation11 + $0xf8] sm:$0xff]  ;;  %v3274_v45 = vpack.c.bf16 %v125_v42, %v122_v38  ;;  %v128_v46 = vld [vmem:[#allocation11 + $0x70] sm:$0xff]  ;;  %v131_v47 = vld [vmem:[#allocation11 + $0x88] sm:$0xff]  ;;  %v173_v31 = vshrl.u32 %v172_v30, 7 }
  0x7b   :  { %2071 = vmatmul.mubr.msk.f32.vlgmr.msra.gmra.mrb[0].mxu1 %vm190_vm1, %v163_v17  ;;  %v166_v48 = vld [vmem:[#allocation5 + $0x20] sm:$0xff]  ;;  %v3284_v50 = vpack.c.bf16 %v148_v44, %v145_v43  ;;  %v147_v52 = vld [vmem:[#allocation11 + $0x108] sm:$0xff]  ;;  %v154_v54 = vld [vmem:[#allocation11 + $0x140] sm:$0xff]  ;;  %v3288_v55 = vpack.c.bf16 %v131_v47, %v128_v46 }
  0x7c   :  { %1891 = vmatmul.mubr.msk.f32.gmra.mrb[4].mxu0 %vm190_vm1, %v164_v24  ;;  %2396 = vmatpush3.bf16.msra.mxu1 %v3263_v35  ;;  %v144_v51 = vld [vmem:[#allocation11 + $0xf0] sm:$0xff]  ;;  %v151_v53 = vld [vmem:[#allocation11 + $0x128] sm:$0xff]  ;;  %v134_v56 = vld [vmem:[#allocation11 + $0xa0] sm:$0xff]  ;;  %v182_v32 = vsub.s32 2, %v173_v31 }
  0x7d   :  { %2373 = vmatpush1.bf16.msra.mxu0 %v3254_v25  ;;  %304 = vmatprep.mubr.f32.mxu0 %v3111_v0  ;;  %v137_v57 = vld [vmem:[#allocation11 + $0xb8] sm:$0xff]  ;;  %v3295_v59 = vpack.c.bf16 %v147_v52, %v144_v51  ;;  %v168_v60 = vld [vmem:[#allocation5 + $0x30] sm:$0xff]  ;;  %v3298_v61 = vpack.c.bf16 %v154_v54, %v151_v53  ;;  %v160_v2 = vld [vmem:[#allocation11 + $0x170] sm:$0xff] }
  0x7e   :  { %2375 = vmatprep.subr.bf16.mxu0 %v3257_v27  ;;  %2073 = vmatprep.mubr.msk.f32.mxu1 %vm190_vm1, %v164_v24  ;;  %v167_v58 = vld [vmem:[#allocation5 + $0x28] sm:$0xff]  ;;  %v150_v62 = vld [vmem:[#allocation11 + $0x120] sm:$0xff]  ;;  %v3302_v3 = vpack.c.bf16 %v137_v57, %v134_v56  ;;  %v140_v4 = vld [vmem:[#allocation11 + $0xd0] sm:$0xff] }
  0x7f   :  { %2397 = vmatprep.subr.bf16.mxu1 %v3112_v34  ;;  %2074 = vmatmul.mubr.msk.f32.gmra.mrb[2].mxu1 %vm190_vm1, %v165_v36  ;;  %v153_v63 = vld [vmem:[#allocation11 + $0x138] sm:$0xff]  ;;  %v143_v5 = vld [vmem:[#allocation11 + $0xe8] sm:$0xff]  ;;  %v156_v11 = vld [vmem:[#allocation11 + $0x150] sm:$0xff] }
  0x80   :  { %1892 = vmatmul.mubr.msk.f32.gmra.mrb[6].mxu0 %vm190_vm1, %v165_v36  ;;  %2399 = vmatpush3.bf16.msra.mxu1 %v3274_v45  ;;  %v157_v1 = vld [vmem:[#allocation11 + $0x158] sm:$0xff]  ;;  %v3309_v6 = vpack.c.bf16 %v153_v63, %v150_v62  ;;  %v169_v7 = vld [vmem:[#allocation5 + $0x38] sm:$0xff]  ;;  %v3316_v14 = vpack.c.bf16 %v143_v5, %v140_v4  ;;  %v146_v15 = vld [vmem:[#allocation11 + $0x100] sm:$0xff] }
  0x81   :  { %2377 = vmatpush1.bf16.msra.mxu0 %v3267_v37  ;;  %310 = vmatprep.mubr.f32.mxu0 %v3111_v0  ;;  %v3312_v10 = vpack.c.bf16 %v160_v2, %v157_v1  ;;  %v159_v13 = vld [vmem:[#allocation11 + $0x168] sm:$0xff]  ;;  %v149_v16 = vld [vmem:[#allocation11 + $0x118] sm:$0xff]  ;;  %v152_v21 = vld [vmem:[#allocation11 + $0x130] sm:$0xff] }
  0x82   :  { %2379 = vmatprep.subr.bf16.mxu0 %v3270_v39  ;;  %2076 = vmatprep.mubr.msk.f32.mxu1 %vm190_vm1, %v166_v48  ;;  %v3324_v17 = vpack.c.bf16 %v159_v13, %v156_v11  ;;  %v3328_v20 = vpack.c.bf16 %v149_v16, %v146_v15  ;;  %v155_v22 = vld [vmem:[#allocation11 + $0x148] sm:$0xff]  ;;  %v158_v26 = vld [vmem:[#allocation11 + $0x160] sm:$0xff]  ;;  %v161_v28 = vld [vmem:[#allocation11 + $0x178] sm:$0xff] }
  0x83   :  { %2400 = vmatprep.subr.bf16.mxu1 %v3112_v34  ;;  %2077 = vmatmul.mubr.msk.f32.gmra.mrb[4].mxu1 %vm190_vm1, %v167_v58  ;;  %v3334_v23 = vld [vmem:[#allocation14] sm:$0xff]  ;;  %v3338_v24 = vpack.c.bf16 %v155_v22, %v152_v21  ;;  %v3346_v29 = vpack.c.bf16 %v161_v28, %v158_v26  ;;  %v170_v33 = vld [vmem:[#allocation10] sm:$0x7]  ;;  %v3404_v26 = vld [vmem:[#allocation13] ss:$0 sm:$0xff] }
  0x84   :  { %1893 = vmatmul.mubr.msk.f32.gmra.mrb[8].mxu0 %vm190_vm1, %v166_v48  ;;  %2402 = vmatpush3.bf16.msra.mxu1 %v3288_v55  ;;  %v183_v36 = vrot.slane %v170_v33, %v182_v32 }
  0x85   :  { %2381 = vmatpush1.bf16.msra.mxu0 %v3281_v49  ;;  %316 = vmatprep.mubr.f32.mxu0 %v3111_v0 }
  0x86   :  { %2383 = vmatprep.subr.bf16.mxu0 %v3284_v50  ;;  %2079 = vmatprep.mubr.msk.f32.mxu1 %vm190_vm1, %v168_v60 }
  0x87   :  { %2403 = vmatprep.subr.bf16.mxu1 %v3112_v34  ;;  %2080 = vmatmul.mubr.msk.f32.gmra.mrb[6].mxu1 %vm190_vm1, %v169_v7 }
  0x88   :  { %1894 = vmatmul.mubr.msk.f32.gmra.mrb[10].mxu0 %vm190_vm1, %v167_v58  ;;  %2405 = vmatpush3.bf16.msra.mxu1 %v3302_v3  ;;  %v174_v58 = vsub.s32 0, %v173_v31 }
  0x89   :  { %2385 = vmatpush1.bf16.msra.mxu0 %v3295_v59  ;;  %322 = vmatprep.mubr.f32.mxu0 %v3111_v0 }
  0x8a   :  { %2387 = vmatprep.subr.bf16.mxu0 %v3298_v61  ;;  %2114 = vmatprep.mubr.msk.f32.mxu1 %vm3113_vm2, %v3111_v0  ;;  %v3398_v62 = vrot.slane %v170_v33, %v174_v58 }
  0x8b   :  { %2406 = vmatprep.subr.bf16.mxu1 %v3112_v34 }
  0x8c   :  { %1895 = vmatmul.mubr.msk.f32.gmra.mrb[12].mxu0 %vm190_vm1, %v168_v60  ;;  %2408 = vmatpush3.bf16.msra.mxu1 %v3316_v14  ;;  %v178_v60 = vsub.s32 1, %v173_v31 }
  0x8d   :  { %2389 = vmatpush1.bf16.msra.mxu0 %v3309_v6  ;;  %328 = vmatprep.mubr.f32.mxu0 %v3111_v0 }
  0x8e   :  { %2391 = vmatprep.subr.bf16.mxu0 %v3312_v10  ;;  %2409 = vmatprep.subr.bf16.mxu1 %v3112_v34  ;;  %v3400_v1 = vrot.slane %v170_v33, %v178_v60 }
  0x90   :  { %1896 = vmatmul.mubr.msk.f32.gmra.mrb[14].mxu0 %vm190_vm1, %v169_v7  ;;  %2411 = vmatpush3.bf16.msra.mxu1 %v3328_v20 }
  0x91   :  { %2393 = vmatpush1.bf16.msra.mxu0 %v3324_v17  ;;  %536 = vmatprep.mubr.f32.mxu0 %v3111_v0 }
  0x92   :  { %2419 = vmatprep.subr.bf16.mxu0 %v3234_v8  ;;  %2412 = vmatprep.subr.bf16.mxu1 %v3112_v34 }
  0x94   :  { %537 = vmatmul.mubr.f32.vlgmr.msra.gmra.mrb[0].mxu0 %v3334_v23  ;;  %2414 = vmatpush3.bf16.msra.mxu1 %v3338_v24 }
  0x95   :  { %2421 = vmatpush1.bf16.msra.mxu0 %v3236_v9  ;;  %706 = vmatprep.mubr.f32.mxu0 %v3111_v0 }
  0x96   :  { %2423 = vmatprep.subr.bf16.mxu0 %v3239_v12  ;;  %2415 = vmatprep.subr.bf16.mxu1 %v3112_v34 }
  0x98   :  { %2417 = vmatpush3.bf16.msra.mxu1 %v3346_v29 }
  0x99   :  { %2425 = vmatpush1.bf16.msra.mxu0 %v3246_v18  ;;  %2450 = vmatprep.subr.bf16.mxu1 %v3112_v34 }
  0x9a   :  { %2427 = vmatprep.subr.bf16.mxu0 %v3249_v19 }
  0x9b   :  { %2115 = vmatmul.mubr.f32.vlgmr.msra.gmra.mrb[8].mxu1 %v3334_v23 }
  0x9c   :  { %2452 = vmatpush3.bf16.msra.mxu1 %v3263_v35  ;;  %2149 = vmatprep.mubr.msk.f32.mxu1 %vm3113_vm2, %v3111_v0 }
  0x9d   :  { %2429 = vmatpush1.bf16.msra.mxu0 %v3254_v25  ;;  %2453 = vmatprep.subr.bf16.mxu1 %v3112_v34 }
  0x9e   :  { %2431 = vmatprep.subr.bf16.mxu0 %v3257_v27 }
  0xa0   :  { %2455 = vmatpush3.bf16.msra.mxu1 %v3274_v45 }
  0xa1   :  { %2433 = vmatpush1.bf16.msra.mxu0 %v3267_v37  ;;  %2456 = vmatprep.subr.bf16.mxu1 %v3112_v34 }
  0xa2   :  { %2435 = vmatprep.subr.bf16.mxu0 %v3270_v39 }
  0xa4   :  { %2458 = vmatpush3.bf16.msra.mxu1 %v3288_v55 }
  0xa5   :  { %2437 = vmatpush1.bf16.msra.mxu0 %v3281_v49  ;;  %2459 = vmatprep.subr.bf16.mxu1 %v3112_v34 }
  0xa6   :  { %2439 = vmatprep.subr.bf16.mxu0 %v3284_v50 }
  0xa8   :  { %2461 = vmatpush3.bf16.msra.mxu1 %v3302_v3 }
  0xa9   :  { %2441 = vmatpush1.bf16.msra.mxu0 %v3295_v59  ;;  %2462 = vmatprep.subr.bf16.mxu1 %v3112_v34 }
  0xaa   :  { %2443 = vmatprep.subr.bf16.mxu0 %v3298_v61 }
  0xac   :  { %2464 = vmatpush3.bf16.msra.mxu1 %v3316_v14 }
  0xad   :  { %2445 = vmatpush1.bf16.msra.mxu0 %v3309_v6  ;;  %2465 = vmatprep.subr.bf16.mxu1 %v3112_v34 }
  0xae   :  { %2447 = vmatprep.subr.bf16.mxu0 %v3312_v10 }
  0xb0   :  { %2467 = vmatpush3.bf16.msra.mxu1 %v3328_v20 }
  0xb1   :  { %2449 = vmatpush1.bf16.msra.mxu0 %v3324_v17  ;;  %2468 = vmatprep.subr.bf16.mxu1 %v3112_v34 }
  0xb2   :  { %2475 = vmatprep.subr.bf16.mxu0 %v3234_v8 }
  0xb4   :  { %2470 = vmatpush3.bf16.msra.mxu1 %v3338_v24 }
  0xb5   :  { %2471 = vmatprep.subr.bf16.mxu1 %v3112_v34 }
  0xb8   :  { %2473 = vmatpush3.bf16.msra.mxu1 %v3346_v29 }
  0xb9   :  { %2506 = vmatprep.subr.bf16.mxu1 %v3112_v34 }
 0x14e   :  { %v2072_v38 = vpop.f32.mrb[0].mxu1 }
 0x14f   :  { %v3384_v40 = vadd.f32 %v2072_v38, %v183_v36  ;;  %v401_v41 = vpop.f32.mrb[1].mxu1 }
 0x150   :  { %v402_v32 = vadd.f32 %v401_v41, %v183_v36 }
 0x152   :  { %v2075_v42 = vpop.f32.mrb[2].mxu1 }
 0x153   :  { %v3386_v43 = vadd.f32 %v2075_v42, %v183_v36  ;;  %v411_v44 = vpop.f32.mrb[3].mxu1 }
 0x154   :  { %v3388_v46 = vadd.f32 %v411_v44, %v183_v36 }
 0x156   :  { %v2078_v47 = vpop.f32.mrb[4].mxu1 }
 0x157   :  { %v3390_v48 = vadd.f32 %v2078_v47, %v183_v36  ;;  %v421_v51 = vpop.f32.mrb[5].mxu1 }
 0x158   :  { %v3392_v52 = vadd.f32 %v421_v51, %v183_v36 }
 0x15a   :  { %v2081_v53 = vpop.f32.mrb[6].mxu1 }
 0x15b   :  { %v3394_v54 = vadd.f32 %v2081_v53, %v183_v36  ;;  %v431_v56 = vpop.f32.mrb[7].mxu1 }
 0x15c   :  { %v3396_v57 = vadd.f32 %v431_v56, %v183_v36 }
 0x167   :  { %v538_v63 = vpop.f32.mrb[0].mxu0 }
 0x168   :  { %v2810_v2 = vadd.f32 %v538_v63, %v3398_v62  ;;  %v540_v4 = vpop.f32.mrb[1].mxu0 }
 0x169   :  { %v2811_v7 = vadd.f32 %v540_v4, %v3400_v1 }
 0x16a   :  { %v1907_v5 = vmul.f32 -1.442695, %v2810_v2 }
 0x16b   :  { %v1908_v11 = vmul.f32 -1.442695, %v2811_v7 }
 0x16c   :  { %2857 = vpow2.f32 %v1907_v5 }
 0x16d   :  { %2859 = vpow2.f32 %v1908_v11 }
 0x16e   :  { %v609_v13 = vpop.f32.mrb[8].mxu1 }
 0x16f   :  { %v2116_v15 = vpop.f32.mrb[9].mxu1  ;;  %v633_v30 = vadd.f32 %v3404_v26, %v609_v13 }
 0x176   :  { %v2858_v16 = vpop.eup %2857 }
 0x177   :  { %v621_v21 = vadd.f32 1.0, %v2858_v16  ;;  %v2860_v22 = vpop.eup %2859 }
 0x178   :  { %v629_v28 = vadd.f32 1.0, %v2860_v22 }
 0x179   :  { %2861 = vrcp.f32 %v621_v21 }
 0x17a   :  { %2863 = vrcp.f32 %v629_v28 }
 0x183   :  { %v2862_v31 = vpop.eup %2861 }
 0x184   :  { %v634_v33 = vmul.f32 %v2862_v31, %v633_v30  ;;  %v2864_v42 = vpop.eup %2863 }
 0x185   :  { %v637_v44 = vsub.f32 1.0, %v2864_v42  ;;  %v639_v53 = vmul.f32 %v2864_v42, %v3334_v23 }
 0x186   :  { %v635_v38 = vadd.f32 %v634_v33, %v402_v32 }
 0x188   :  { %2865 = vtanh.f32 %v635_v38 }
 0x192   :  { %v2866_v47 = vpop.eup %2865 }
 0x193   :  { %v638_v51 = vmul.f32 %v2866_v47, %v637_v44 }
 0x195   :  { %v3408_v56 = vadd.f32 %v639_v53, %v638_v51 }
 0x197   :  { %707 = vmatmul.mubr.f32.vlgmr.msra.gmra.mrb[2].mxu0 %v3408_v56  ;;  %1848 = vst [vmem:[#allocation16] sm:$0xff] %v3408_v56  ;;  %2150 = vmatmul.mubr.f32.vlgmr.msra.gmra.mrb[10].mxu1 %v3408_v56 }
 0x198   :  { %2477 = vmatpush1.bf16.msra.mxu0 %v3236_v9  ;;  %2508 = vmatpush3.bf16.msra.mxu1 %v3263_v35 }
 0x199   :  { %2479 = vmatprep.subr.bf16.mxu0 %v3239_v12  ;;  %2509 = vmatprep.subr.bf16.mxu1 %v3112_v34 }
 0x19a   :  { %877 = vmatprep.mubr.f32.mxu0 %v3111_v0  ;;  %2184 = vmatprep.mubr.msk.f32.mxu1 %vm3113_vm2, %v3111_v0 }
 0x19c   :  { %2481 = vmatpush1.bf16.msra.mxu0 %v3246_v18  ;;  %2511 = vmatpush3.bf16.msra.mxu1 %v3274_v45 }
 0x19d   :  { %2483 = vmatprep.subr.bf16.mxu0 %v3249_v19  ;;  %2512 = vmatprep.subr.bf16.mxu1 %v3112_v34 }
 0x1a0   :  { %2485 = vmatpush1.bf16.msra.mxu0 %v3254_v25  ;;  %2514 = vmatpush3.bf16.msra.mxu1 %v3288_v55 }
 0x1a1   :  { %2487 = vmatprep.subr.bf16.mxu0 %v3257_v27  ;;  %2515 = vmatprep.subr.bf16.mxu1 %v3112_v34 }
 0x1a4   :  { %2489 = vmatpush1.bf16.msra.mxu0 %v3267_v37  ;;  %2517 = vmatpush3.bf16.msra.mxu1 %v3302_v3 }
 0x1a5   :  { %2491 = vmatprep.subr.bf16.mxu0 %v3270_v39  ;;  %2518 = vmatprep.subr.bf16.mxu1 %v3112_v34 }
 0x1a8   :  { %2493 = vmatpush1.bf16.msra.mxu0 %v3281_v49  ;;  %2520 = vmatpush3.bf16.msra.mxu1 %v3316_v14 }
 0x1a9   :  { %2495 = vmatprep.subr.bf16.mxu0 %v3284_v50  ;;  %2521 = vmatprep.subr.bf16.mxu1 %v3112_v34 }
 0x1ac   :  { %2497 = vmatpush1.bf16.msra.mxu0 %v3295_v59  ;;  %2523 = vmatpush3.bf16.msra.mxu1 %v3328_v20 }
 0x1ad   :  { %2499 = vmatprep.subr.bf16.mxu0 %v3298_v61  ;;  %2524 = vmatprep.subr.bf16.mxu1 %v3112_v34 }
 0x1b0   :  { %2501 = vmatpush1.bf16.msra.mxu0 %v3309_v6  ;;  %2526 = vmatpush3.bf16.msra.mxu1 %v3338_v24 }
 0x1b1   :  { %2503 = vmatprep.subr.bf16.mxu0 %v3312_v10  ;;  %2527 = vmatprep.subr.bf16.mxu1 %v3112_v34 }
 0x1b4   :  { %2505 = vmatpush1.bf16.msra.mxu0 %v3324_v17  ;;  %2529 = vmatpush3.bf16.msra.mxu1 %v3346_v29 }
 0x1b5   :  { %2531 = vmatprep.subr.bf16.mxu0 %v3234_v8  ;;  %2562 = vmatprep.subr.bf16.mxu1 %v3112_v34 }
 0x26a   :  { %v708_v23 = vpop.f32.mrb[2].mxu0  ;;  %v779_v36 = vpop.f32.mrb[10].mxu1 }
 0x26b   :  { %v2812_v41 = vadd.f32 %v708_v23, %v3398_v62  ;;  %v710_v58 = vpop.f32.mrb[3].mxu0  ;;  %v2151_v60 = vpop.f32.mrb[11].mxu1  ;;  %v803_v15 = vadd.f32 %v3404_v26, %v779_v36 }
 0x26c   :  { %v2813_v2 = vadd.f32 %v710_v58, %v3400_v1 }
 0x26d   :  { %v1909_v63 = vmul.f32 -1.442695, %v2812_v41 }
 0x26e   :  { %v1910_v4 = vmul.f32 -1.442695, %v2813_v2 }
 0x26f   :  { %2867 = vpow2.f32 %v1909_v63 }
 0x270   :  { %2869 = vpow2.f32 %v1910_v4 }
 0x279   :  { %v2868_v5 = vpop.eup %2867 }
 0x27a   :  { %v791_v7 = vadd.f32 1.0, %v2868_v5  ;;  %v2870_v11 = vpop.eup %2869 }
 0x27b   :  { %v799_v13 = vadd.f32 1.0, %v2870_v11 }
 0x27c   :  { %2871 = vrcp.f32 %v791_v7 }
 0x27d   :  { %2873 = vrcp.f32 %v799_v13 }
 0x286   :  { %v2872_v16 = vpop.eup %2871 }
 0x287   :  { %v804_v21 = vmul.f32 %v2872_v16, %v803_v15  ;;  %v2874_v28 = vpop.eup %2873 }
 0x288   :  { %v807_v30 = vsub.f32 1.0, %v2874_v28  ;;  %v809_v33 = vmul.f32 %v2874_v28, %v3408_v56 }
 0x289   :  { %v805_v22 = vadd.f32 %v804_v21, %v3384_v40 }
 0x28b   :  { %2875 = vtanh.f32 %v805_v22 }
 0x295   :  { %v2876_v31 = vpop.eup %2875 }
 0x296   :  { %v808_v32 = vmul.f32 %v2876_v31, %v807_v30 }
 0x298   :  { %v3453_v38 = vadd.f32 %v809_v33, %v808_v32 }
 0x29a   :  { %878 = vmatmul.mubr.f32.vlgmr.msra.gmra.mrb[4].mxu0 %v3453_v38  ;;  %1849 = vst [vmem:[#allocation16 + $0x8] sm:$0xff] %v3453_v38  ;;  %2185 = vmatmul.mubr.f32.vlgmr.msra.gmra.mrb[12].mxu1 %v3453_v38 }
 0x29b   :  { %2533 = vmatpush1.bf16.msra.mxu0 %v3236_v9  ;;  %2564 = vmatpush3.bf16.msra.mxu1 %v3263_v35 }
 0x29c   :  { %2535 = vmatprep.subr.bf16.mxu0 %v3239_v12  ;;  %2565 = vmatprep.subr.bf16.mxu1 %v3112_v34 }
 0x29d   :  { %1048 = vmatprep.mubr.f32.mxu0 %v3111_v0  ;;  %2219 = vmatprep.mubr.msk.f32.mxu1 %vm3113_vm2, %v3111_v0 }
 0x29f   :  { %2537 = vmatpush1.bf16.msra.mxu0 %v3246_v18  ;;  %2567 = vmatpush3.bf16.msra.mxu1 %v3274_v45 }
 0x2a0   :  { %2539 = vmatprep.subr.bf16.mxu0 %v3249_v19  ;;  %2568 = vmatprep.subr.bf16.mxu1 %v3112_v34 }
 0x2a3   :  { %2541 = vmatpush1.bf16.msra.mxu0 %v3254_v25  ;;  %2570 = vmatpush3.bf16.msra.mxu1 %v3288_v55 }
 0x2a4   :  { %2543 = vmatprep.subr.bf16.mxu0 %v3257_v27  ;;  %2571 = vmatprep.subr.bf16.mxu1 %v3112_v34 }
 0x2a7   :  { %2545 = vmatpush1.bf16.msra.mxu0 %v3267_v37  ;;  %2573 = vmatpush3.bf16.msra.mxu1 %v3302_v3 }
 0x2a8   :  { %2547 = vmatprep.subr.bf16.mxu0 %v3270_v39  ;;  %2574 = vmatprep.subr.bf16.mxu1 %v3112_v34 }
 0x2ab   :  { %2549 = vmatpush1.bf16.msra.mxu0 %v3281_v49  ;;  %2576 = vmatpush3.bf16.msra.mxu1 %v3316_v14 }
 0x2ac   :  { %2551 = vmatprep.subr.bf16.mxu0 %v3284_v50  ;;  %2577 = vmatprep.subr.bf16.mxu1 %v3112_v34 }
 0x2af   :  { %2553 = vmatpush1.bf16.msra.mxu0 %v3295_v59  ;;  %2579 = vmatpush3.bf16.msra.mxu1 %v3328_v20 }
 0x2b0   :  { %2555 = vmatprep.subr.bf16.mxu0 %v3298_v61  ;;  %2580 = vmatprep.subr.bf16.mxu1 %v3112_v34 }
 0x2b3   :  { %2557 = vmatpush1.bf16.msra.mxu0 %v3309_v6  ;;  %2582 = vmatpush3.bf16.msra.mxu1 %v3338_v24 }
 0x2b4   :  { %2559 = vmatprep.subr.bf16.mxu0 %v3312_v10  ;;  %2583 = vmatprep.subr.bf16.mxu1 %v3112_v34 }
 0x2b7   :  { %2561 = vmatpush1.bf16.msra.mxu0 %v3324_v17  ;;  %2585 = vmatpush3.bf16.msra.mxu1 %v3346_v29 }
 0x2b8   :  { %2587 = vmatprep.subr.bf16.mxu0 %v3234_v8  ;;  %2618 = vmatprep.subr.bf16.mxu1 %v3112_v34 }
 0x36d   :  { %v879_v40 = vpop.f32.mrb[4].mxu0  ;;  %v950_v42 = vpop.f32.mrb[12].mxu1 }
 0x36e   :  { %v2814_v44 = vadd.f32 %v879_v40, %v3398_v62  ;;  %v881_v47 = vpop.f32.mrb[5].mxu0  ;;  %v2186_v51 = vpop.f32.mrb[13].mxu1  ;;  %v974_v63 = vadd.f32 %v3404_v26, %v950_v42 }
 0x36f   :  { %v2815_v56 = vadd.f32 %v881_v47, %v3400_v1 }
 0x370   :  { %v1911_v53 = vmul.f32 -1.442695, %v2814_v44 }
 0x371   :  { %v1912_v23 = vmul.f32 -1.442695, %v2815_v56 }
 0x372   :  { %2877 = vpow2.f32 %v1911_v53 }
 0x373   :  { %2879 = vpow2.f32 %v1912_v23 }
 0x37c   :  { %v2878_v36 = vpop.eup %2877 }
 0x37d   :  { %v962_v41 = vadd.f32 1.0, %v2878_v36  ;;  %v2880_v58 = vpop.eup %2879 }
 0x37e   :  { %v970_v60 = vadd.f32 1.0, %v2880_v58 }
 0x37f   :  { %2881 = vrcp.f32 %v962_v41 }
 0x380   :  { %2883 = vrcp.f32 %v970_v60 }
 0x389   :  { %v2882_v2 = vpop.eup %2881 }
 0x38a   :  { %v975_v4 = vmul.f32 %v2882_v2, %v974_v63  ;;  %v2884_v7 = vpop.eup %2883 }
 0x38b   :  { %v978_v11 = vsub.f32 1.0, %v2884_v7  ;;  %v980_v16 = vmul.f32 %v2884_v7, %v3453_v38 }
 0x38c   :  { %v976_v5 = vadd.f32 %v975_v4, %v3388_v46 }
 0x38e   :  { %2885 = vtanh.f32 %v976_v5 }
 0x398   :  { %v2886_v13 = vpop.eup %2885 }
 0x399   :  { %v979_v15 = vmul.f32 %v2886_v13, %v978_v11 }
 0x39b   :  { %v3498_v21 = vadd.f32 %v980_v16, %v979_v15 }
 0x39d   :  { %1049 = vmatmul.mubr.f32.vlgmr.msra.gmra.mrb[6].mxu0 %v3498_v21  ;;  %1850 = vst [vmem:[#allocation16 + $0x10] sm:$0xff] %v3498_v21  ;;  %2220 = vmatmul.mubr.f32.vlgmr.msra.gmra.mrb[14].mxu1 %v3498_v21 }
 0x39e   :  { %2589 = vmatpush1.bf16.msra.mxu0 %v3236_v9  ;;  %2620 = vmatpush3.bf16.msra.mxu1 %v3263_v35 }
 0x39f   :  { %2591 = vmatprep.subr.bf16.mxu0 %v3239_v12  ;;  %2621 = vmatprep.subr.bf16.mxu1 %v3112_v34 }
 0x3a0   :  { %1219 = vmatprep.mubr.f32.mxu0 %v3111_v0  ;;  %2254 = vmatprep.mubr.msk.f32.mxu1 %vm3113_vm2, %v3111_v0 }
 0x3a2   :  { %2593 = vmatpush1.bf16.msra.mxu0 %v3246_v18  ;;  %2623 = vmatpush3.bf16.msra.mxu1 %v3274_v45 }
 0x3a3   :  { %2595 = vmatprep.subr.bf16.mxu0 %v3249_v19  ;;  %2624 = vmatprep.subr.bf16.mxu1 %v3112_v34 }
 0x3a6   :  { %2597 = vmatpush1.bf16.msra.mxu0 %v3254_v25  ;;  %2626 = vmatpush3.bf16.msra.mxu1 %v3288_v55 }
 0x3a7   :  { %2599 = vmatprep.subr.bf16.mxu0 %v3257_v27  ;;  %2627 = vmatprep.subr.bf16.mxu1 %v3112_v34 }
 0x3aa   :  { %2601 = vmatpush1.bf16.msra.mxu0 %v3267_v37  ;;  %2629 = vmatpush3.bf16.msra.mxu1 %v3302_v3 }
 0x3ab   :  { %2603 = vmatprep.subr.bf16.mxu0 %v3270_v39  ;;  %2630 = vmatprep.subr.bf16.mxu1 %v3112_v34 }
 0x3ae   :  { %2605 = vmatpush1.bf16.msra.mxu0 %v3281_v49  ;;  %2632 = vmatpush3.bf16.msra.mxu1 %v3316_v14 }
 0x3af   :  { %2607 = vmatprep.subr.bf16.mxu0 %v3284_v50  ;;  %2633 = vmatprep.subr.bf16.mxu1 %v3112_v34 }
 0x3b2   :  { %2609 = vmatpush1.bf16.msra.mxu0 %v3295_v59  ;;  %2635 = vmatpush3.bf16.msra.mxu1 %v3328_v20 }
 0x3b3   :  { %2611 = vmatprep.subr.bf16.mxu0 %v3298_v61  ;;  %2636 = vmatprep.subr.bf16.mxu1 %v3112_v34 }
 0x3b6   :  { %2613 = vmatpush1.bf16.msra.mxu0 %v3309_v6  ;;  %2638 = vmatpush3.bf16.msra.mxu1 %v3338_v24 }
 0x3b7   :  { %2615 = vmatprep.subr.bf16.mxu0 %v3312_v10  ;;  %2639 = vmatprep.subr.bf16.mxu1 %v3112_v34 }
 0x3ba   :  { %2617 = vmatpush1.bf16.msra.mxu0 %v3324_v17  ;;  %2641 = vmatpush3.bf16.msra.mxu1 %v3346_v29 }
 0x3bb   :  { %2643 = vmatprep.subr.bf16.mxu0 %v3234_v8  ;;  %2674 = vmatprep.subr.bf16.mxu1 %v3112_v34 }
 0x470   :  { %v1050_v46 = vpop.f32.mrb[6].mxu0  ;;  %v1121_v22 = vpop.f32.mrb[14].mxu1 }
 0x471   :  { %v2816_v28 = vadd.f32 %v1050_v46, %v3398_v62  ;;  %v1052_v30 = vpop.f32.mrb[7].mxu0  ;;  %v2221_v31 = vpop.f32.mrb[15].mxu1  ;;  %v1145_v51 = vadd.f32 %v3404_v26, %v1121_v22 }
 0x472   :  { %v2817_v33 = vadd.f32 %v1052_v30, %v3400_v1 }
 0x473   :  { %v1913_v32 = vmul.f32 -1.442695, %v2816_v28 }
 0x474   :  { %v1914_v38 = vmul.f32 -1.442695, %v2817_v33 }
 0x475   :  { %2887 = vpow2.f32 %v1913_v32 }
 0x476   :  { %2889 = vpow2.f32 %v1914_v38 }
 0x47f   :  { %v2888_v40 = vpop.eup %2887 }
 0x480   :  { %v1133_v42 = vadd.f32 1.0, %v2888_v40  ;;  %v2890_v44 = vpop.eup %2889 }
 0x481   :  { %v1141_v47 = vadd.f32 1.0, %v2890_v44 }
 0x482   :  { %2891 = vrcp.f32 %v1133_v42 }
 0x483   :  { %2893 = vrcp.f32 %v1141_v47 }
 0x48c   :  { %v2892_v53 = vpop.eup %2891 }
 0x48d   :  { %v1146_v56 = vmul.f32 %v2892_v53, %v1145_v51  ;;  %v2894_v36 = vpop.eup %2893 }
 0x48e   :  { %v1149_v41 = vsub.f32 1.0, %v2894_v36  ;;  %v1151_v63 = vmul.f32 %v2894_v36, %v3498_v21 }
 0x48f   :  { %v1147_v23 = vadd.f32 %v1146_v56, %v3386_v43 }
 0x491   :  { %2895 = vtanh.f32 %v1147_v23 }
 0x49b   :  { %v2896_v58 = vpop.eup %2895 }
 0x49c   :  { %v1150_v60 = vmul.f32 %v2896_v58, %v1149_v41 }
 0x49e   :  { %v3543_v2 = vadd.f32 %v1151_v63, %v1150_v60 }
 0x4a0   :  { %1220 = vmatmul.mubr.f32.vlgmr.msra.gmra.mrb[8].mxu0 %v3543_v2  ;;  %1851 = vst [vmem:[#allocation16 + $0x18] sm:$0xff] %v3543_v2  ;;  %2255 = vmatmul.mubr.f32.vlgmr.msra.gmra.mrb[16].mxu1 %v3543_v2 }
 0x4a1   :  { %2645 = vmatpush1.bf16.msra.mxu0 %v3236_v9  ;;  %2676 = vmatpush3.bf16.msra.mxu1 %v3263_v35 }
 0x4a2   :  { %2647 = vmatprep.subr.bf16.mxu0 %v3239_v12  ;;  %2677 = vmatprep.subr.bf16.mxu1 %v3112_v34 }
 0x4a3   :  { %1390 = vmatprep.mubr.f32.mxu0 %v3111_v0  ;;  %2289 = vmatprep.mubr.msk.f32.mxu1 %vm3113_vm2, %v3111_v0 }
 0x4a5   :  { %2649 = vmatpush1.bf16.msra.mxu0 %v3246_v18  ;;  %2679 = vmatpush3.bf16.msra.mxu1 %v3274_v45 }
 0x4a6   :  { %2651 = vmatprep.subr.bf16.mxu0 %v3249_v19  ;;  %2680 = vmatprep.subr.bf16.mxu1 %v3112_v34 }
 0x4a9   :  { %2653 = vmatpush1.bf16.msra.mxu0 %v3254_v25  ;;  %2682 = vmatpush3.bf16.msra.mxu1 %v3288_v55 }
 0x4aa   :  { %2655 = vmatprep.subr.bf16.mxu0 %v3257_v27  ;;  %2683 = vmatprep.subr.bf16.mxu1 %v3112_v34 }
 0x4ad   :  { %2657 = vmatpush1.bf16.msra.mxu0 %v3267_v37  ;;  %2685 = vmatpush3.bf16.msra.mxu1 %v3302_v3 }
 0x4ae   :  { %2659 = vmatprep.subr.bf16.mxu0 %v3270_v39  ;;  %2686 = vmatprep.subr.bf16.mxu1 %v3112_v34 }
 0x4b1   :  { %2661 = vmatpush1.bf16.msra.mxu0 %v3281_v49  ;;  %2688 = vmatpush3.bf16.msra.mxu1 %v3316_v14 }
 0x4b2   :  { %2663 = vmatprep.subr.bf16.mxu0 %v3284_v50  ;;  %2689 = vmatprep.subr.bf16.mxu1 %v3112_v34 }
 0x4b5   :  { %2665 = vmatpush1.bf16.msra.mxu0 %v3295_v59  ;;  %2691 = vmatpush3.bf16.msra.mxu1 %v3328_v20 }
 0x4b6   :  { %2667 = vmatprep.subr.bf16.mxu0 %v3298_v61  ;;  %2692 = vmatprep.subr.bf16.mxu1 %v3112_v34 }
 0x4b9   :  { %2669 = vmatpush1.bf16.msra.mxu0 %v3309_v6  ;;  %2694 = vmatpush3.bf16.msra.mxu1 %v3338_v24 }
 0x4ba   :  { %2671 = vmatprep.subr.bf16.mxu0 %v3312_v10  ;;  %2695 = vmatprep.subr.bf16.mxu1 %v3112_v34 }
 0x4bd   :  { %2673 = vmatpush1.bf16.msra.mxu0 %v3324_v17  ;;  %2697 = vmatpush3.bf16.msra.mxu1 %v3346_v29 }
 0x4be   :  { %2699 = vmatprep.subr.bf16.mxu0 %v3234_v8  ;;  %2730 = vmatprep.subr.bf16.mxu1 %v3112_v34 }
 0x573   :  { %v1221_v43 = vpop.f32.mrb[8].mxu0  ;;  %v1292_v4 = vpop.f32.mrb[16].mxu1 }
 0x574   :  { %v2818_v5 = vadd.f32 %v1221_v43, %v3398_v62  ;;  %v1223_v7 = vpop.f32.mrb[9].mxu0  ;;  %v2256_v11 = vpop.f32.mrb[17].mxu1  ;;  %v1316_v30 = vadd.f32 %v3404_v26, %v1292_v4 }
 0x575   :  { %v2819_v15 = vadd.f32 %v1223_v7, %v3400_v1 }
 0x576   :  { %v1915_v13 = vmul.f32 -1.442695, %v2818_v5 }
 0x577   :  { %v1916_v16 = vmul.f32 -1.442695, %v2819_v15 }
 0x578   :  { %2897 = vpow2.f32 %v1915_v13 }
 0x579   :  { %2899 = vpow2.f32 %v1916_v16 }
 0x582   :  { %v2898_v21 = vpop.eup %2897 }
 0x583   :  { %v1304_v46 = vadd.f32 1.0, %v2898_v21  ;;  %v2900_v22 = vpop.eup %2899 }
 0x584   :  { %v1312_v28 = vadd.f32 1.0, %v2900_v22 }
 0x585   :  { %2901 = vrcp.f32 %v1304_v46 }
 0x586   :  { %2903 = vrcp.f32 %v1312_v28 }
 0x58f   :  { %v2902_v31 = vpop.eup %2901 }
 0x590   :  { %v1317_v32 = vmul.f32 %v2902_v31, %v1316_v30  ;;  %v2904_v38 = vpop.eup %2903 }
 0x591   :  { %v1320_v40 = vsub.f32 1.0, %v2904_v38  ;;  %v1322_v47 = vmul.f32 %v2904_v38, %v3543_v2 }
 0x592   :  { %v1318_v33 = vadd.f32 %v1317_v32, %v3392_v52 }
 0x594   :  { %2905 = vtanh.f32 %v1318_v33 }
 0x59e   :  { %v2906_v42 = vpop.eup %2905 }
 0x59f   :  { %v1321_v44 = vmul.f32 %v2906_v42, %v1320_v40 }
 0x5a1   :  { %v3588_v51 = vadd.f32 %v1322_v47, %v1321_v44 }
 0x5a3   :  { %1391 = vmatmul.mubr.f32.vlgmr.msra.gmra.mrb[10].mxu0 %v3588_v51  ;;  %1852 = vst [vmem:[#allocation16 + $0x20] sm:$0xff] %v3588_v51  ;;  %2290 = vmatmul.mubr.f32.vlgmr.msra.gmra.mrb[18].mxu1 %v3588_v51 }
 0x5a4   :  { %2701 = vmatpush1.bf16.msra.mxu0 %v3236_v9  ;;  %2732 = vmatpush3.bf16.msra.mxu1 %v3263_v35 }
 0x5a5   :  { %2703 = vmatprep.subr.bf16.mxu0 %v3239_v12  ;;  %2733 = vmatprep.subr.bf16.mxu1 %v3112_v34 }
 0x5a6   :  { %1561 = vmatprep.mubr.f32.mxu0 %v3111_v0  ;;  %2324 = vmatprep.mubr.msk.f32.mxu1 %vm3113_vm2, %v3111_v0 }
 0x5a8   :  { %2705 = vmatpush1.bf16.msra.mxu0 %v3246_v18  ;;  %2735 = vmatpush3.bf16.msra.mxu1 %v3274_v45 }
 0x5a9   :  { %2707 = vmatprep.subr.bf16.mxu0 %v3249_v19  ;;  %2736 = vmatprep.subr.bf16.mxu1 %v3112_v34 }
 0x5ac   :  { %2709 = vmatpush1.bf16.msra.mxu0 %v3254_v25  ;;  %2738 = vmatpush3.bf16.msra.mxu1 %v3288_v55 }
 0x5ad   :  { %2711 = vmatprep.subr.bf16.mxu0 %v3257_v27  ;;  %2739 = vmatprep.subr.bf16.mxu1 %v3112_v34 }
 0x5b0   :  { %2713 = vmatpush1.bf16.msra.mxu0 %v3267_v37  ;;  %2741 = vmatpush3.bf16.msra.mxu1 %v3302_v3 }
 0x5b1   :  { %2715 = vmatprep.subr.bf16.mxu0 %v3270_v39  ;;  %2742 = vmatprep.subr.bf16.mxu1 %v3112_v34 }
 0x5b4   :  { %2717 = vmatpush1.bf16.msra.mxu0 %v3281_v49  ;;  %2744 = vmatpush3.bf16.msra.mxu1 %v3316_v14 }
 0x5b5   :  { %2719 = vmatprep.subr.bf16.mxu0 %v3284_v50  ;;  %2745 = vmatprep.subr.bf16.mxu1 %v3112_v34 }
 0x5b8   :  { %2721 = vmatpush1.bf16.msra.mxu0 %v3295_v59  ;;  %2747 = vmatpush3.bf16.msra.mxu1 %v3328_v20 }
 0x5b9   :  { %2723 = vmatprep.subr.bf16.mxu0 %v3298_v61  ;;  %2748 = vmatprep.subr.bf16.mxu1 %v3112_v34 }
 0x5bc   :  { %2725 = vmatpush1.bf16.msra.mxu0 %v3309_v6  ;;  %2750 = vmatpush3.bf16.msra.mxu1 %v3338_v24 }
 0x5bd   :  { %2727 = vmatprep.subr.bf16.mxu0 %v3312_v10  ;;  %2751 = vmatprep.subr.bf16.mxu1 %v3112_v34 }
 0x5c0   :  { %2729 = vmatpush1.bf16.msra.mxu0 %v3324_v17  ;;  %2753 = vmatpush3.bf16.msra.mxu1 %v3346_v29 }
 0x5c1   :  { %2755 = vmatprep.subr.bf16.mxu0 %v3234_v8  ;;  %2786 = vmatprep.subr.bf16.mxu1 %v3112_v34 }
 0x676   :  { %v1392_v52 = vpop.f32.mrb[10].mxu0  ;;  %v1463_v53 = vpop.f32.mrb[18].mxu1 }
 0x677   :  { %v2820_v56 = vadd.f32 %v1392_v52, %v3398_v62  ;;  %v1394_v23 = vpop.f32.mrb[11].mxu0  ;;  %v2291_v36 = vpop.f32.mrb[19].mxu1  ;;  %v1487_v8 = vadd.f32 %v3404_v26, %v1463_v53 }
 0x678   :  { %v2821_v58 = vadd.f32 %v1394_v23, %v3400_v1 }
 0x679   :  { %v1917_v41 = vmul.f32 -1.442695, %v2820_v56 }
 0x67a   :  { %v1918_v60 = vmul.f32 -1.442695, %v2821_v58 }
 0x67b   :  { %2907 = vpow2.f32 %v1917_v41 }
 0x67c   :  { %2909 = vpow2.f32 %v1918_v60 }
 0x685   :  { %v2908_v63 = vpop.eup %2907 }
 0x686   :  { %v1475_v2 = vadd.f32 1.0, %v2908_v63  ;;  %v2910_v43 = vpop.eup %2909 }
 0x687   :  { %v1483_v4 = vadd.f32 1.0, %v2910_v43 }
 0x688   :  { %2911 = vrcp.f32 %v1475_v2 }
 0x689   :  { %2913 = vrcp.f32 %v1483_v4 }
 0x692   :  { %v2912_v5 = vpop.eup %2911 }
 0x693   :  { %v1488_v7 = vmul.f32 %v2912_v5, %v1487_v8  ;;  %v2914_v13 = vpop.eup %2913 }
 0x694   :  { %v1491_v15 = vsub.f32 1.0, %v2914_v13  ;;  %v1493_v46 = vmul.f32 %v2914_v13, %v3588_v51 }
 0x695   :  { %v1489_v11 = vadd.f32 %v1488_v7, %v3390_v48 }
 0x697   :  { %2915 = vtanh.f32 %v1489_v11 }
 0x6a1   :  { %v2916_v16 = vpop.eup %2915 }
 0x6a2   :  { %v1492_v21 = vmul.f32 %v2916_v16, %v1491_v15 }
 0x6a4   :  { %v1494_v22 = vadd.f32 %v1493_v46, %v1492_v21 }
 0x6a6   :  { %1562 = vmatmul.mubr.f32.vlgmr.msra.gmra.mrb[12].mxu0 %v1494_v22  ;;  %1853 = vst [vmem:[#allocation16 + $0x28] sm:$0xff] %v1494_v22  ;;  %2325 = vmatmul.mubr.f32.vlgmr.msra.gmra.mrb[20].mxu1 %v1494_v22 }
 0x6a7   :  { %2757 = vmatpush1.bf16.msra.mxu0 %v3236_v9  ;;  %2788 = vmatpush3.bf16.msra.mxu1 %v3263_v35 }
 0x6a8   :  { %2759 = vmatprep.subr.bf16.mxu0 %v3239_v12  ;;  %2789 = vmatprep.subr.bf16.mxu1 %v3112_v34 }
 0x6a9   :  { %1732 = vmatprep.mubr.f32.mxu0 %v3111_v0  ;;  %2359 = vmatprep.mubr.msk.f32.mxu1 %vm3113_vm2, %v3111_v0 }
 0x6ab   :  { %2761 = vmatpush1.bf16.msra.mxu0 %v3246_v18  ;;  %2791 = vmatpush3.bf16.msra.mxu1 %v3274_v45 }
 0x6ac   :  { %2763 = vmatprep.subr.bf16.mxu0 %v3249_v19  ;;  %2792 = vmatprep.subr.bf16.mxu1 %v3112_v34 }
 0x6af   :  { %2765 = vmatpush1.bf16.msra.mxu0 %v3254_v25  ;;  %2794 = vmatpush3.bf16.msra.mxu1 %v3288_v55 }
 0x6b0   :  { %2767 = vmatprep.subr.bf16.mxu0 %v3257_v27  ;;  %2795 = vmatprep.subr.bf16.mxu1 %v3112_v34 }
 0x6b3   :  { %2769 = vmatpush1.bf16.msra.mxu0 %v3267_v37  ;;  %2797 = vmatpush3.bf16.msra.mxu1 %v3302_v3 }
 0x6b4   :  { %2771 = vmatprep.subr.bf16.mxu0 %v3270_v39  ;;  %2798 = vmatprep.subr.bf16.mxu1 %v3112_v34 }
 0x6b7   :  { %2773 = vmatpush1.bf16.msra.mxu0 %v3281_v49  ;;  %2800 = vmatpush3.bf16.msra.mxu1 %v3316_v14 }
 0x6b8   :  { %2775 = vmatprep.subr.bf16.mxu0 %v3284_v50  ;;  %2801 = vmatprep.subr.bf16.mxu1 %v3112_v34 }
 0x6bb   :  { %2777 = vmatpush1.bf16.msra.mxu0 %v3295_v59  ;;  %2803 = vmatpush3.bf16.msra.mxu1 %v3328_v20 }
 0x6bc   :  { %2779 = vmatprep.subr.bf16.mxu0 %v3298_v61  ;;  %2804 = vmatprep.subr.bf16.mxu1 %v3112_v34 }
 0x6bf   :  { %2781 = vmatpush1.bf16.msra.mxu0 %v3309_v6  ;;  %2806 = vmatpush3.bf16.msra.mxu1 %v3338_v24 }
 0x6c0   :  { %2783 = vmatprep.subr.bf16.mxu0 %v3312_v10  ;;  %2807 = vmatprep.subr.bf16.mxu1 %v3112_v34 }
 0x6c3   :  { %2785 = vmatpush1.bf16.msra.mxu0 %v3324_v17  ;;  %2809 = vmatpush3.bf16.msra.mxu1 %v3346_v29 }
 0x779   :  { %v1563_v0 = vpop.f32.mrb[12].mxu0  ;;  %v1634_v9 = vpop.f32.mrb[20].mxu1 }
 0x77a   :  { %v2822_v12 = vadd.f32 %v1563_v0, %v3398_v62  ;;  %v1565_v18 = vpop.f32.mrb[13].mxu0  ;;  %v2326_v19 = vpop.f32.mrb[21].mxu1  ;;  %v1658_v49 = vadd.f32 %v3404_v26, %v1634_v9 }
 0x77b   :  { %v2823_v27 = vadd.f32 %v1565_v18, %v3400_v1 }
 0x77c   :  { %v1919_v25 = vmul.f32 -1.442695, %v2822_v12 }
 0x77d   :  { %v1920_v35 = vmul.f32 -1.442695, %v2823_v27 }
 0x77e   :  { %2917 = vpow2.f32 %v1919_v25 }
 0x77f   :  { %2919 = vpow2.f32 %v1920_v35 }
 0x788   :  { %v2918_v37 = vpop.eup %2917 }
 0x789   :  { %v1646_v39 = vadd.f32 1.0, %v2918_v37  ;;  %v2920_v34 = vpop.eup %2919 }
 0x78a   :  { %v1654_v45 = vadd.f32 1.0, %v2920_v34 }
 0x78b   :  { %2921 = vrcp.f32 %v1646_v39 }
 0x78c   :  { %2923 = vrcp.f32 %v1654_v45 }
 0x795   :  { %v2922_v50 = vpop.eup %2921 }
 0x796   :  { %v1659_v55 = vmul.f32 %v2922_v50, %v1658_v49  ;;  %v2924_v61 = vpop.eup %2923 }
 0x797   :  { %v1662_v3 = vsub.f32 1.0, %v2924_v61  ;;  %v1664_v14 = vmul.f32 %v2924_v61, %v1494_v22 }
 0x798   :  { %v1660_v59 = vadd.f32 %v1659_v55, %v3396_v57 }
 0x79a   :  { %2925 = vtanh.f32 %v1660_v59 }
 0x7a4   :  { %v2926_v6 = vpop.eup %2925 }
 0x7a5   :  { %v1663_v10 = vmul.f32 %v2926_v6, %v1662_v3 }
 0x7a7   :  { %v1665_v17 = vadd.f32 %v1664_v14, %v1663_v10 }
 0x7a9   :  { %1733 = vmatmul.mubr.f32.vlgmr.msra.gmra.mrb[14].mxu0 %v1665_v17  ;;  %1854 = vst [vmem:[#allocation16 + $0x30] sm:$0xff] %v1665_v17  ;;  %2360 = vmatmul.mubr.f32.vlgmr.msra.gmra.mrb[22].mxu1 %v1665_v17 }
 0x87c   :  { %v1734_v20 = vpop.f32.mrb[14].mxu0  ;;  %v1805_v24 = vpop.f32.mrb[22].mxu1 }
 0x87d   :  { %v2824_v29 = vadd.f32 %v1734_v20, %v3398_v62  ;;  %v1736_v48 = vpop.f32.mrb[15].mxu0  ;;  %v2361_v28 = vpop.f32.mrb[23].mxu1  ;;  %v1829_v42 = vadd.f32 %v3404_v26, %v1805_v24 }
 0x87e   :  { %v2825_v31 = vadd.f32 %v1736_v48, %v3400_v1 }
 0x87f   :  { %v1921_v30 = vmul.f32 -1.442695, %v2824_v29 }
 0x880   :  { %v1922_v57 = vmul.f32 -1.442695, %v2825_v31 }
 0x881   :  { %2927 = vpow2.f32 %v1921_v30 }
 0x882   :  { %2929 = vpow2.f32 %v1922_v57 }
 0x88b   :  { %v2928_v32 = vpop.eup %2927 }
 0x88c   :  { %v1817_v33 = vadd.f32 1.0, %v2928_v32  ;;  %v2930_v38 = vpop.eup %2929 }
 0x88d   :  { %v1825_v40 = vadd.f32 1.0, %v2930_v38 }
 0x88e   :  { %2931 = vrcp.f32 %v1817_v33 }
 0x88f   :  { %2933 = vrcp.f32 %v1825_v40 }
 0x898   :  { %v2932_v44 = vpop.eup %2931 }
 0x899   :  { %v1830_v47 = vmul.f32 %v2932_v44, %v1829_v42  ;;  %v2934_v51 = vpop.eup %2933 }
 0x89a   :  { %v1833_v52 = vsub.f32 1.0, %v2934_v51  ;;  %v1835_v56 = vmul.f32 %v2934_v51, %v1665_v17 }
 0x89b   :  { %v1831_v62 = vadd.f32 %v1830_v47, %v3394_v54 }
 0x89d   :  { %2935 = vtanh.f32 %v1831_v62 }
 0x8a7   :  { %v2936_v53 = vpop.eup %2935 }
 0x8a8   :  { %v1834_v1 = vmul.f32 %v2936_v53, %v1833_v52 }
 0x8aa   :  { %v1836_v23 = vadd.f32 %v1835_v56, %v1834_v1 }
 0x8ac   :  { %1855 = vst [vmem:[#allocation16 + $0x38] sm:$0xff] %v1836_v23 }
 0x8ad   :  { %3080 = shalt.err (!%p3077_p10)
}
 0x8ae   :  { %s3081_s25 = scalar_lea.hbm %s3695_s6, 1024 }
 0x8af   :  { %p3082_p11 = scmp.ne.s32.totalorder %s3695_s6, %s3081_s25  ;;  %p3085_p12 = scmp.lt.u32.totalorder %s3081_s25, %s3695_s6 }
 0x8b1   :  { %p3087_p13 = pnand %p3085_p12, %p3082_p11 }
 0x8b3   :  { %3090 = shalt.err (!%p3087_p13)
}
 0x8b4   :  { %1871 = dma.vmem_to_hbm [thread:$0]  %s1866_s0, 1024, %s3695_s6, [#allocation7], %s3106_s3, %s3106_s3, %s3107_s24  }
 0x8b5   :  { %3099 = dma.done.wait [#allocation7], 1024  }
 0x8b6   :  { %3100 = vsyncadd [#allocation7], 4294966272 }
 0x8b7   :  { %1875 = vsyncpa [#allocation6], 1 }
 0x8b8   :  { %1876 = vsyncpa [#allocation9], 1 }
 0x8b9   :  { %1877 = vsyncpa [#allocation12], 1 }
 0x8ba   :  { %1878 = vsyncpa [#allocation15], 1 }
 0x8bb   :  { %1879 = vsyncpa [#allocation7], 1 }

// kernel: _lambda_.3
= control target key start
LH: loop header
LB: loop body
LE: loop exit
PB: predicated region body
PF: predicated region fallthrough
CT: control target
= control target key end

     0   :  { %11 = vsyncpa [#allocation6], 0  ;;  %s3768_s0 = inlined_call_operand.hbm [shape: f32[64,128], index: 0, kind: input, shape index: {}]   ;;  %s3769_s1 = inlined_call_operand.hbm [shape: f32[128,384], index: 1, kind: input, shape index: {}]   ;;  %s3770_s2 = inlined_call_operand.hbm [shape: f32[1,384], index: 2, kind: input, shape index: {}]   ;;  %s3771_s3 = inlined_call_operand.hbm [shape: f32[128,384], index: 3, kind: input, shape index: {}]   ;;  %s3772_s4 = inlined_call_operand.hbm [shape: f32[1,128], index: 4, kind: input, shape index: {}]   ;;  %s3773_s5 = inlined_call_operand.hbm [shape: f32[8,128], index: 5, kind: input, shape index: {}]   ;;  %s3774_s6 = inlined_call_operand.hbm [shape: f32[64,128], index: 6, kind: output, shape index: {}]  }
   0x1   :  { %12 = vsyncpa [#allocation9], 0 }
   0x2   :  { %13 = vsyncpa [#allocation12], 0 }
   0x3   :  { %14 = vsyncpa [#allocation15], 0 }
   0x4   :  { %15 = vsyncpa [#allocation7], 0  ;;  %s3203_s21 = smov [#allocation8]   ;;  %s3039_s25 = scalar_lea.hbm %s3769_s1, 6144 }
   0x5   :  { %s37_s22 = sshll.u32 %s3203_s21, 4  ;;  %p3040_p0 = scmp.ne.s32.totalorder %s3769_s1, %s3039_s25  ;;  %s38_s22 = int_to_ptr.vmem [resolvable:$true] %s37_s22 }
   0x6   :  { %p3043_p1 = scmp.lt.u32.totalorder %s3039_s25, %s3769_s1 }
   0x8   :  { %p3045_p2 = pnand %p3043_p1, %p3040_p0 }
   0xa   :  { %3048 = shalt.err (!%p3045_p2)
}
   0xb   :  { %s3049_s30 = scalar_lea.vmem %s38_s22, 6144  ;;  %p3054_p4 = scmp.lt.s32.totalorder %s38_s22, %s38_s22 }
   0xc   :  { %p3050_p3 = scmp.ne.s32.totalorder %s38_s22, %s3049_s30  ;;  %p3055_p5 = scmp.lt.s32.totalorder %s3049_s30, %s3049_s30 }
   0xe   :  { %p3056_p6 = por %p3055_p5, %p3054_p4 }
  0x10   :  { %p3057_p7 = pnand %p3056_p6, %p3050_p3 }
  0x12   :  { %3060 = shalt.err (!%p3057_p7)
}
  0x13   :  { %s3204_s7 = smov 384   ;;  %s3205_s8 = smov 24  }
  0x14   :  { %43 = dma.hbm_to_vmem [thread:$0]  %s3769_s1, 6144, %s38_s22, [#allocation9], %s3204_s7, %s3204_s7, %s3205_s8  }
  0x15   :  { %s3206_s11 = smov [#allocation11]   ;;  %s3207_s13 = smov [#allocation5]  }
  0x16   :  { %s59_s12 = sshll.u32 %s3206_s11, 4  ;;  %s25_s14 = sshll.u32 %s3207_s13, 4  ;;  %s60_s12 = int_to_ptr.vmem [resolvable:$true] %s59_s12  ;;  %s26_s14 = int_to_ptr.vmem [resolvable:$true] %s25_s14 }
  0x17   :  { %s3061_s17 = scalar_lea.hbm %s3771_s3, 6144 }
  0x18   :  { %p3062_p8 = scmp.ne.s32.totalorder %s3771_s3, %s3061_s17  ;;  %p3065_p9 = scmp.lt.u32.totalorder %s3061_s17, %s3771_s3 }
  0x1a   :  { %p3067_p10 = pnand %p3065_p9, %p3062_p8 }
  0x1c   :  { %3070 = shalt.err (!%p3067_p10)
}
  0x1d   :  { %s3071_s1 = scalar_lea.vmem %s60_s12, 6144  ;;  %p3076_p12 = scmp.lt.s32.totalorder %s60_s12, %s60_s12 }
  0x1e   :  { %p3072_p11 = scmp.ne.s32.totalorder %s60_s12, %s3071_s1  ;;  %p3077_p13 = scmp.lt.s32.totalorder %s3071_s1, %s3071_s1 }
  0x20   :  { %p3078_p0 = por %p3077_p13, %p3076_p12 }
  0x22   :  { %p3079_p1 = pnand %p3078_p0, %p3072_p11 }
  0x24   :  { %3082 = shalt.err (!%p3079_p1)
}
  0x25   :  { %65 = dma.hbm_to_vmem [thread:$0]  %s3771_s3, 6144, %s60_s12, [#allocation12], %s3204_s7, %s3204_s7, %s3205_s8  }
  0x26   :  { %s3083_s26 = scalar_lea.hbm %s3768_s0, 1024 }
  0x27   :  { %p3084_p2 = scmp.ne.s32.totalorder %s3768_s0, %s3083_s26  ;;  %p3087_p3 = scmp.lt.u32.totalorder %s3083_s26, %s3768_s0 }
  0x29   :  { %p3089_p4 = pnand %p3087_p3, %p3084_p2 }
  0x2b   :  { %3092 = shalt.err (!%p3089_p4)
}
  0x2c   :  { %s3093_s9 = scalar_lea.vmem %s26_s14, 1024  ;;  %p3098_p6 = scmp.lt.s32.totalorder %s26_s14, %s26_s14 }
  0x2d   :  { %p3094_p5 = scmp.ne.s32.totalorder %s26_s14, %s3093_s9  ;;  %p3099_p7 = scmp.lt.s32.totalorder %s3093_s9, %s3093_s9 }
  0x2f   :  { %p3100_p8 = por %p3099_p7, %p3098_p6 }
  0x31   :  { %p3101_p9 = pnand %p3100_p8, %p3094_p5 }
  0x33   :  { %3104 = shalt.err (!%p3101_p9)
}
  0x34   :  { %s3208_s3 = smov 128   ;;  %s3209_s7 = smov 8  }
  0x35   :  { %31 = dma.hbm_to_vmem [thread:$0]  %s3768_s0, 1024, %s26_s14, [#allocation6], %s3208_s3, %s3208_s3, %s3209_s7  }
  0x36   :  { %s3210_s11 = smov [#allocation10]   ;;  %s3211_s13 = smov [#allocation13]  }
  0x37   :  { %s50_s12 = sshll.u32 %s3210_s11, 4  ;;  %s72_s15 = sshll.u32 %s3211_s13, 4  ;;  %s51_s12 = int_to_ptr.vmem [resolvable:$true] %s50_s12  ;;  %s73_s15 = int_to_ptr.vmem [resolvable:$true] %s72_s15 }
  0x38   :  { %s3105_s18 = scalar_lea.hbm %s3770_s2, 48 }
  0x39   :  { %p3106_p10 = scmp.ne.s32.totalorder %s3770_s2, %s3105_s18  ;;  %p3109_p11 = scmp.lt.u32.totalorder %s3105_s18, %s3770_s2 }
  0x3b   :  { %p3111_p12 = pnand %p3109_p11, %p3106_p10 }
  0x3d   :  { %3114 = shalt.err (!%p3111_p12)
}
  0x3e   :  { %s3115_s0 = scalar_lea.vmem %s51_s12, 48  ;;  %s3119_s14 = scalar_lea.vmem %s51_s12, 64 }
  0x3f   :  { %p3116_p13 = scmp.ne.s32.totalorder %s51_s12, %s3115_s0  ;;  %p3120_p0 = scmp.lt.s32.totalorder %s51_s12, %s51_s12 }
  0x40   :  { %p3121_p1 = scmp.lt.s32.totalorder %s3119_s14, %s3115_s0 }
  0x42   :  { %p3122_p2 = por %p3121_p1, %p3120_p0 }
  0x44   :  { %p3123_p3 = pnand %p3122_p2, %p3116_p13 }
  0x46   :  { %3126 = shalt.err (!%p3123_p3)
}
  0x47   :  { %53 = dma.hbm_to_vmem [thread:$0]  %s3770_s2, 48, %s51_s12, [#allocation9]  }
  0x48   :  { %s3127_s26 = scalar_lea.hbm %s3772_s4, 16 }
  0x49   :  { %p3128_p4 = scmp.ne.s32.totalorder %s3772_s4, %s3127_s26  ;;  %p3131_p5 = scmp.lt.u32.totalorder %s3127_s26, %s3772_s4 }
  0x4b   :  { %p3133_p6 = pnand %p3131_p5, %p3128_p4 }
  0x4d   :  { %3136 = shalt.err (!%p3133_p6)
}
  0x4e   :  { %s3137_s9 = scalar_lea.vmem %s73_s15, 16  ;;  %s3141_s8 = scalar_lea.vmem %s73_s15, 32 }
  0x4f   :  { %p3138_p7 = scmp.ne.s32.totalorder %s73_s15, %s3137_s9  ;;  %p3142_p8 = scmp.lt.s32.totalorder %s73_s15, %s73_s15 }
  0x50   :  { %p3143_p9 = scmp.lt.s32.totalorder %s3141_s8, %s3137_s9 }
  0x52   :  { %p3144_p10 = por %p3143_p9, %p3142_p8 }
  0x54   :  { %p3145_p11 = pnand %p3144_p10, %p3138_p7 }
  0x56   :  { %3148 = shalt.err (!%p3145_p11)
}
  0x57   :  { %75 = dma.hbm_to_vmem [thread:$0]  %s3772_s4, 16, %s73_s15, [#allocation12]  }
  0x58   :  { %s3212_s11 = smov [#allocation14]   ;;  %s3149_s17 = scalar_lea.hbm %s3773_s5, 128 }
  0x59   :  { %s82_s12 = sshll.u32 %s3212_s11, 4  ;;  %p3150_p12 = scmp.ne.s32.totalorder %s3773_s5, %s3149_s17  ;;  %s83_s12 = int_to_ptr.vmem [resolvable:$true] %s82_s12 }
  0x5a   :  { %p3153_p13 = scmp.lt.u32.totalorder %s3149_s17, %s3773_s5 }
  0x5c   :  { %p3155_p0 = pnand %p3153_p13, %p3150_p12 }
  0x5e   :  { %3158 = shalt.err (!%p3155_p0)
}
  0x5f   :  { %s3159_s1 = scalar_lea.vmem %s83_s12, 128  ;;  %p3164_p2 = scmp.lt.s32.totalorder %s83_s12, %s83_s12 }
  0x60   :  { %p3160_p1 = scmp.ne.s32.totalorder %s83_s12, %s3159_s1  ;;  %p3165_p3 = scmp.lt.s32.totalorder %s3159_s1, %s3159_s1 }
  0x62   :  { %p3166_p4 = por %p3165_p3, %p3164_p2 }
  0x64   :  { %p3167_p5 = pnand %p3166_p4, %p3160_p1 }
  0x66   :  { %3170 = shalt.err (!%p3167_p5)
}
  0x67   :  { %85 = dma.hbm_to_vmem [thread:$0]  %s3773_s5, 128, %s83_s12, [#allocation15]  }
  0x68   :  { %3193 = dma.done.wait [#allocation6], 1024  }
  0x69   :  { %3194 = vsyncadd [#allocation6], 4294966272 }
  0x6a   :  { %3195 = dma.done.wait [#allocation9], 6192  }
  0x6b   :  { %3196 = vsyncadd [#allocation9], 4294961104 }
  0x6c   :  { %3197 = dma.done.wait [#allocation12], 6160  }
  0x6d   :  { %3198 = vsyncadd [#allocation12], 4294961136 }
  0x6e   :  { %3199 = dma.done.wait [#allocation15], 128  }
  0x6f   :  { %3200 = vsyncadd [#allocation15], 4294967168  ;;  %v3213_v0 = vmov 0.0   ;;  %v115_v1 = vld [vmem:[#allocation8 + $0x8] sm:$0xff]  ;;  %v118_v2 = vld [vmem:[#allocation8 + $0x20] sm:$0xff]  ;;  %vm3215_vm0 = vmmov 0  }
  0x70   :  { %299 = vmatprep.mubr.f32.mxu0 %v3213_v0  ;;  %v114_v3 = vld [vmem:[#allocation8] sm:$0xff]  ;;  %v2401_v4 = vpack.c.bf16 %v118_v2, %v115_v1  ;;  %v117_v5 = vld [vmem:[#allocation8 + $0x18] sm:$0xff]  ;;  %v124_v7 = vld [vmem:[#allocation8 + $0x50] sm:$0xff]  ;;  %s3216_s5 = smov [#allocation16]  }
  0x71   :  { %v121_v6 = vld [vmem:[#allocation8 + $0x38] sm:$0xff]  ;;  %v2403_v8 = vpack.c.bf16 %v117_v5, %v114_v3  ;;  %v120_v10 = vld [vmem:[#allocation8 + $0x30] sm:$0xff]  ;;  %v123_v11 = vld [vmem:[#allocation8 + $0x48] sm:$0xff]  ;;  %s1878_s0 = sshll.u32 %s3216_s5, 4  ;;  %s1879_s0 = int_to_ptr.vmem [resolvable:$true] %s1878_s0 }
  0x72   :  { %v2405_v9 = vpack.c.bf16 %v124_v7, %v121_v6  ;;  %v127_v12 = vld [vmem:[#allocation8 + $0x68] sm:$0xff]  ;;  %2402 = vmatprep.subr.bf16.mxu0 %v2401_v4  ;;  %v130_v13 = vld [vmem:[#allocation8 + $0x80] sm:$0xff]  ;;  %v2407_v14 = vpack.c.bf16 %v123_v11, %v120_v10  ;;  %v129_v17 = vld [vmem:[#allocation8 + $0x78] sm:$0xff]  ;;  %s3171_s14 = scalar_lea.vmem %s1879_s0, 1024  ;;  %p3176_p7 = scmp.lt.s32.totalorder %s1879_s0, %s1879_s0 }
  0x73   :  { %2404 = vmatpush1.bf16.msra.mxu0 %v2403_v8  ;;  %v2409_v15 = vpack.c.bf16 %v130_v13, %v127_v12  ;;  %v126_v16 = vld [vmem:[#allocation8 + $0x60] sm:$0xff]  ;;  %v133_v18 = vld [vmem:[#allocation8 + $0x98] sm:$0xff]  ;;  %v136_v19 = vld [vmem:[#allocation8 + $0xb0] sm:$0xff]  ;;  %p3172_p6 = scmp.ne.s32.totalorder %s1879_s0, %s3171_s14  ;;  %p3177_p8 = scmp.lt.s32.totalorder %s3171_s14, %s3171_s14 }
  0x74   :  { %2406 = vmatprep.subr.bf16.mxu0 %v2405_v9  ;;  %v2411_v20 = vpack.c.bf16 %v129_v17, %v126_v16  ;;  %v132_v21 = vld [vmem:[#allocation8 + $0x90] sm:$0xff]  ;;  %v2413_v22 = vpack.c.bf16 %v136_v19, %v133_v18  ;;  %v135_v23 = vld [vmem:[#allocation8 + $0xa8] sm:$0xff]  ;;  %v142_v27 = vld [vmem:[#allocation8 + $0xe0] sm:$0xff] }
  0x75   :  { %v116_v24 = vld [vmem:[#allocation8 + $0x10] sm:$0xff]  ;;  %v119_v25 = vld [vmem:[#allocation8 + $0x28] sm:$0xff]  ;;  %v122_v29 = vld [vmem:[#allocation8 + $0x40] sm:$0xff]  ;;  %v2415_v31 = vpack.c.bf16 %v135_v23, %v132_v21  ;;  %p3178_p9 = por %p3177_p8, %p3176_p7 }
  0x76   :  { %v139_v26 = vld [vmem:[#allocation8 + $0xc8] sm:$0xff]  ;;  %v2433_v28 = vpack.c.bf16 %v119_v25, %v116_v24  ;;  %v125_v30 = vld [vmem:[#allocation8 + $0x58] sm:$0xff]  ;;  %v138_v32 = vld [vmem:[#allocation8 + $0xc0] sm:$0xff] }
  0x77   :  { %2408 = vmatpush1.bf16.msra.mxu0 %v2407_v14  ;;  %v2437_v33 = vpack.c.bf16 %v125_v30, %v122_v29  ;;  %v2417_v34 = vpack.c.bf16 %v142_v27, %v139_v26  ;;  %v141_v35 = vld [vmem:[#allocation8 + $0xd8] sm:$0xff]  ;;  %v3328_v36 = vld [vmem:[#allocation5] sm:$0xff]  ;;  %v128_v37 = vld [vmem:[#allocation8 + $0x70] sm:$0xff]  ;;  %p3179_p10 = pnand %p3178_p9, %p3172_p6 }
  0x78   :  { %2410 = vmatprep.subr.bf16.mxu0 %v2409_v15  ;;  %2434 = vmatprep.subr.bf16.mxu1 %v2433_v28  ;;  %v145_v38 = vld [vmem:[#allocation8 + $0xf8] sm:$0xff]  ;;  %v148_v39 = vld [vmem:[#allocation8 + $0x110] sm:$0xff]  ;;  %v131_v40 = vld [vmem:[#allocation8 + $0x88] sm:$0xff]  ;;  %v2419_v42 = vpack.c.bf16 %v141_v35, %v138_v32 }
  0x79   :  { %2436 = vmatpush3.bf16.msra.mxu1 %v2433_v28  ;;  %2109 = vmatprep.mubr.f32.mxu1 %v3328_v36  ;;  %v2441_v41 = vpack.c.bf16 %v131_v40, %v128_v37  ;;  %v134_v43 = vld [vmem:[#allocation8 + $0xa0] sm:$0xff]  ;;  %v137_v44 = vld [vmem:[#allocation8 + $0xb8] sm:$0xff]  ;;  %v2421_v45 = vpack.c.bf16 %v148_v39, %v145_v38  ;;  %v144_v46 = vld [vmem:[#allocation8 + $0xf0] sm:$0xff]  ;;  %v3214_v40 = vmov 0.0|0.0  }
  0x7a   :  { %2438 = vmatprep.subr.bf16.mxu1 %v2437_v33  ;;  %v147_v47 = vld [vmem:[#allocation8 + $0x108] sm:$0xff]  ;;  %v154_v49 = vld [vmem:[#allocation8 + $0x140] sm:$0xff]  ;;  %v2445_v50 = vpack.c.bf16 %v137_v44, %v134_v43  ;;  %v140_v51 = vld [vmem:[#allocation8 + $0xd0] sm:$0xff] }
  0x7b   :  { %2412 = vmatpush1.bf16.msra.mxu0 %v2411_v20  ;;  %v151_v48 = vld [vmem:[#allocation8 + $0x128] sm:$0xff]  ;;  %v2423_v53 = vpack.c.bf16 %v147_v47, %v144_v46  ;;  %v150_v55 = vld [vmem:[#allocation8 + $0x120] sm:$0xff]  ;;  %v153_v56 = vld [vmem:[#allocation8 + $0x138] sm:$0xff] }
  0x7c   :  { %2414 = vmatprep.subr.bf16.mxu0 %v2413_v22  ;;  %v143_v52 = vld [vmem:[#allocation8 + $0xe8] sm:$0xff]  ;;  %v2425_v54 = vpack.c.bf16 %v154_v49, %v151_v48  ;;  %v157_v57 = vld [vmem:[#allocation8 + $0x158] sm:$0xff]  ;;  %v160_v58 = vld [vmem:[#allocation8 + $0x170] sm:$0xff]  ;;  %v2427_v62 = vpack.c.bf16 %v153_v56, %v150_v55 }
  0x7d   :  { %2440 = vmatpush3.bf16.msra.mxu1 %v2437_v33  ;;  %v2449_v59 = vpack.c.bf16 %v143_v52, %v140_v51  ;;  %v146_v60 = vld [vmem:[#allocation8 + $0x100] sm:$0xff]  ;;  %v149_v61 = vld [vmem:[#allocation8 + $0x118] sm:$0xff]  ;;  %v2429_v63 = vpack.c.bf16 %v160_v58, %v157_v57  ;;  %v156_v1 = vld [vmem:[#allocation8 + $0x150] sm:$0xff] }
  0x7e   :  { %2442 = vmatprep.subr.bf16.mxu1 %v2441_v41  ;;  %v159_v2 = vld [vmem:[#allocation8 + $0x168] sm:$0xff]  ;;  %v2453_v5 = vpack.c.bf16 %v149_v61, %v146_v60  ;;  %v152_v6 = vld [vmem:[#allocation8 + $0x130] sm:$0xff]  ;;  %v165_v11 = vld [vmem:[#allocation11 + $0x18] sm:$0xff] }
  0x7f   :  { %2416 = vmatpush1.bf16.msra.mxu0 %v2415_v31  ;;  %v163_v3 = vld [vmem:[#allocation11 + $0x8] sm:$0xff]  ;;  %v166_v4 = vld [vmem:[#allocation11 + $0x20] sm:$0xff]  ;;  %v2431_v8 = vpack.c.bf16 %v159_v2, %v156_v1  ;;  %v169_v12 = vld [vmem:[#allocation11 + $0x38] sm:$0xff] }
  0x80   :  { %2418 = vmatprep.subr.bf16.mxu0 %v2417_v34  ;;  %v155_v7 = vld [vmem:[#allocation8 + $0x148] sm:$0xff]  ;;  %v3331_v9 = vpack.c.bf16 %v166_v4, %v163_v3  ;;  %v172_v13 = vld [vmem:[#allocation11 + $0x50] sm:$0xff]  ;;  %v158_v15 = vld [vmem:[#allocation8 + $0x160] sm:$0xff] }
  0x81   :  { %2444 = vmatpush3.bf16.msra.mxu1 %v2441_v41  ;;  %v162_v10 = vld [vmem:[#allocation11] sm:$0xff]  ;;  %v2457_v14 = vpack.c.bf16 %v155_v7, %v152_v6  ;;  %v161_v16 = vld [vmem:[#allocation8 + $0x178] sm:$0xff]  ;;  %v3336_v18 = vpack.c.bf16 %v172_v13, %v169_v12  ;;  %v171_v20 = vld [vmem:[#allocation11 + $0x48] sm:$0xff] }
  0x82   :  { %2446 = vmatprep.subr.bf16.mxu1 %v2445_v50  ;;  %v3333_v17 = vpack.c.bf16 %v165_v11, %v162_v10  ;;  %v168_v19 = vld [vmem:[#allocation11 + $0x30] sm:$0xff]  ;;  %v175_v21 = vld [vmem:[#allocation11 + $0x68] sm:$0xff]  ;;  %v178_v22 = vld [vmem:[#allocation11 + $0x80] sm:$0xff]  ;;  %v2461_v23 = vpack.c.bf16 %v161_v16, %v158_v15 }
  0x83   :  { %2420 = vmatpush1.bf16.msra.mxu0 %v2419_v42  ;;  %v211_v24 = vld [vmem:[#allocation5 + $0x8] sm:$0xff]  ;;  %v3341_v25 = vpack.c.bf16 %v171_v20, %v168_v19  ;;  %v3344_v26 = vpack.c.bf16 %v178_v22, %v175_v21  ;;  %v177_v28 = vld [vmem:[#allocation11 + $0x78] sm:$0xff]  ;;  %v184_v30 = vld [vmem:[#allocation11 + $0xb0] sm:$0xff] }
  0x84   :  { %2422 = vmatprep.subr.bf16.mxu0 %v2421_v45  ;;  %v174_v27 = vld [vmem:[#allocation11 + $0x60] sm:$0xff]  ;;  %v181_v29 = vld [vmem:[#allocation11 + $0x98] sm:$0xff]  ;;  %v164_v31 = vld [vmem:[#allocation11 + $0x10] sm:$0xff] }
  0x85   :  { %2448 = vmatpush3.bf16.msra.mxu1 %v2445_v50  ;;  %v167_v32 = vld [vmem:[#allocation11 + $0x28] sm:$0xff]  ;;  %v3348_v34 = vpack.c.bf16 %v177_v28, %v174_v27  ;;  %v3351_v35 = vpack.c.bf16 %v184_v30, %v181_v29  ;;  %v190_v39 = vld [vmem:[#allocation11 + $0xe0] sm:$0xff]  ;;  %v173_v43 = vld [vmem:[#allocation11 + $0x58] sm:$0xff] }
  0x86   :  { %2450 = vmatprep.subr.bf16.mxu1 %v2449_v59  ;;  %v212_v33 = vld [vmem:[#allocation5 + $0x10] sm:$0xff]  ;;  %v3354_v41 = vpack.c.bf16 %v167_v32, %v164_v31  ;;  %v170_v42 = vld [vmem:[#allocation11 + $0x40] sm:$0xff]  ;;  %v213_v44 = vld [vmem:[#allocation5 + $0x18] sm:$0xff] }
  0x87   :  { %2424 = vmatpush1.bf16.msra.mxu0 %v2423_v53  ;;  %v183_v37 = vld [vmem:[#allocation11 + $0xa8] sm:$0xff]  ;;  %v186_v47 = vld [vmem:[#allocation11 + $0xc0] sm:$0xff]  ;;  %v189_v48 = vld [vmem:[#allocation11 + $0xd8] sm:$0xff]  ;;  %v3364_v51 = vpack.c.bf16 %v173_v43, %v170_v42 }
  0x88   :  { %2426 = vmatprep.subr.bf16.mxu0 %v2425_v54  ;;  %v187_v38 = vld [vmem:[#allocation11 + $0xc8] sm:$0xff]  ;;  %v193_v49 = vld [vmem:[#allocation11 + $0xf8] sm:$0xff]  ;;  %v196_v50 = vld [vmem:[#allocation11 + $0x110] sm:$0xff]  ;;  %v3369_v55 = vpack.c.bf16 %v189_v48, %v186_v47 }
  0x89   :  { %2452 = vmatpush3.bf16.msra.mxu1 %v2449_v59  ;;  %v3361_v46 = vpack.c.bf16 %v190_v39, %v187_v38  ;;  %v176_v52 = vld [vmem:[#allocation11 + $0x70] sm:$0xff]  ;;  %v179_v53 = vld [vmem:[#allocation11 + $0x88] sm:$0xff]  ;;  %v214_v54 = vld [vmem:[#allocation5 + $0x20] sm:$0xff]  ;;  %v3372_v56 = vpack.c.bf16 %v196_v50, %v193_v49 }
  0x8a   :  { %2454 = vmatprep.subr.bf16.mxu1 %v2453_v5  ;;  %v192_v57 = vld [vmem:[#allocation11 + $0xf0] sm:$0xff]  ;;  %v195_v58 = vld [vmem:[#allocation11 + $0x108] sm:$0xff]  ;;  %v202_v60 = vld [vmem:[#allocation11 + $0x140] sm:$0xff]  ;;  %v3375_v61 = vpack.c.bf16 %v179_v53, %v176_v52 }
  0x8b   :  { %2428 = vmatpush1.bf16.msra.mxu0 %v2427_v62  ;;  %v199_v59 = vld [vmem:[#allocation11 + $0x128] sm:$0xff]  ;;  %v182_v62 = vld [vmem:[#allocation11 + $0xa0] sm:$0xff]  ;;  %v3380_v2 = vpack.c.bf16 %v195_v58, %v192_v57  ;;  %v201_v6 = vld [vmem:[#allocation11 + $0x138] sm:$0xff] }
  0x8c   :  { %2430 = vmatprep.subr.bf16.mxu0 %v2429_v63  ;;  %v185_v63 = vld [vmem:[#allocation11 + $0xb8] sm:$0xff]  ;;  %v215_v1 = vld [vmem:[#allocation5 + $0x28] sm:$0xff]  ;;  %v216_v3 = vld [vmem:[#allocation5 + $0x30] sm:$0xff]  ;;  %v3383_v4 = vpack.c.bf16 %v202_v60, %v199_v59 }
  0x8d   :  { %2456 = vmatpush3.bf16.msra.mxu1 %v2453_v5  ;;  %v198_v5 = vld [vmem:[#allocation11 + $0x120] sm:$0xff]  ;;  %v205_v7 = vld [vmem:[#allocation11 + $0x158] sm:$0xff]  ;;  %v3386_v10 = vpack.c.bf16 %v185_v63, %v182_v62  ;;  %v188_v11 = vld [vmem:[#allocation11 + $0xd0] sm:$0xff] }
  0x8e   :  { %2458 = vmatprep.subr.bf16.mxu1 %v2457_v14  ;;  %v191_v12 = vld [vmem:[#allocation11 + $0xe8] sm:$0xff]  ;;  %v3391_v13 = vpack.c.bf16 %v201_v6, %v198_v5  ;;  %v204_v16 = vld [vmem:[#allocation11 + $0x150] sm:$0xff]  ;;  %v194_v21 = vld [vmem:[#allocation11 + $0x100] sm:$0xff] }
  0x8f   :  { %2432 = vmatpush1.bf16.msra.mxu0 %v2431_v8  ;;  %v208_v8 = vld [vmem:[#allocation11 + $0x170] sm:$0xff]  ;;  %v207_v19 = vld [vmem:[#allocation11 + $0x168] sm:$0xff]  ;;  %v3397_v20 = vpack.c.bf16 %v191_v12, %v188_v11  ;;  %v197_v22 = vld [vmem:[#allocation11 + $0x118] sm:$0xff] }
  0x90   :  { %2466 = vmatprep.subr.bf16.mxu0 %v3331_v9  ;;  %v3394_v15 = vpack.c.bf16 %v208_v8, %v205_v7  ;;  %v200_v27 = vld [vmem:[#allocation11 + $0x130] sm:$0xff]  ;;  %v203_v28 = vld [vmem:[#allocation11 + $0x148] sm:$0xff]  ;;  %v206_v31 = vld [vmem:[#allocation11 + $0x160] sm:$0xff] }
  0x91   :  { %2460 = vmatpush3.bf16.msra.mxu1 %v2457_v14  ;;  %v217_v14 = vld [vmem:[#allocation5 + $0x38] sm:$0xff]  ;;  %v3413_v29 = vld [vmem:[#allocation14] sm:$0xff]  ;;  %v3417_v30 = vpack.c.bf16 %v203_v28, %v200_v27  ;;  %v218_v39 = vld [vmem:[#allocation10] sm:$0x7] }
  0x92   :  { %300 = vmatmul.mubr.f32.vlgmr.msra.gmra.mrb[0].mxu0 %v3328_v36  ;;  %2462 = vmatprep.subr.bf16.mxu1 %v2461_v23  ;;  %v180_v36 = vld [vmem:[#allocation11 + $0x90] sm:$0xff]  ;;  %v209_v32 = vld [vmem:[#allocation11 + $0x178] sm:$0xff] }
  0x93   :  { %2468 = vmatpush1.bf16.msra.mxu0 %v3333_v17  ;;  %305 = vmatprep.mubr.f32.mxu0 %v3213_v0  ;;  %v3358_v45 = vpack.c.bf16 %v183_v37, %v180_v36  ;;  %v220_v36 = vlaneseq }
  0x94   :  { %2470 = vmatprep.subr.bf16.mxu0 %v3336_v18 }
  0x95   :  { %2464 = vmatpush3.bf16.msra.mxu1 %v2461_v23  ;;  %v3404_v23 = vpack.c.bf16 %v207_v19, %v204_v16  ;;  %v221_v37 = vshrl.u32 %v220_v36, 7 }
  0x96   :  { %306 = vmatmul.mubr.f32.gmra.mrb[2].mxu0 %v211_v24  ;;  %2497 = vmatprep.subr.bf16.mxu1 %v3214_v40 }
  0x97   :  { %2472 = vmatpush1.bf16.msra.mxu0 %v3341_v25  ;;  %311 = vmatprep.mubr.f32.mxu0 %v3213_v0  ;;  %v230_v38 = vsub.s32 2, %v221_v37 }
  0x98   :  { %2474 = vmatprep.subr.bf16.mxu0 %v3344_v26  ;;  %2110 = vmatmul.mubr.f32.vlgmr.msra.gmra.mrb[0].mxu1 %v211_v24  ;;  %v3408_v24 = vpack.c.bf16 %v197_v22, %v194_v21 }
  0x99   :  { %2499 = vmatpush3.bf16.msra.mxu1 %v3354_v41  ;;  %2112 = vmatprep.mubr.f32.mxu1 %v212_v33  ;;  %v231_v42 = vrot.slane %v218_v39, %v230_v38 }
  0x9a   :  { %312 = vmatmul.mubr.f32.gmra.mrb[4].mxu0 %v212_v33  ;;  %2500 = vmatprep.subr.bf16.mxu1 %v3214_v40  ;;  %v3425_v33 = vpack.c.bf16 %v209_v32, %v206_v31  ;;  %v3483_v31 = vld [vmem:[#allocation13] ss:$0 sm:$0xff] }
  0x9b   :  { %2476 = vmatpush1.bf16.msra.mxu0 %v3348_v34  ;;  %317 = vmatprep.mubr.f32.mxu0 %v3213_v0 }
  0x9c   :  { %2478 = vmatprep.subr.bf16.mxu0 %v3351_v35  ;;  %2113 = vmatmul.mubr.f32.gmra.mrb[2].mxu1 %v213_v44 }
  0x9d   :  { %2502 = vmatpush3.bf16.msra.mxu1 %v3364_v51  ;;  %2115 = vmatprep.mubr.f32.mxu1 %v214_v54 }
  0x9e   :  { %318 = vmatmul.mubr.f32.gmra.mrb[6].mxu0 %v213_v44  ;;  %2503 = vmatprep.subr.bf16.mxu1 %v3214_v40 }
  0x9f   :  { %2480 = vmatpush1.bf16.msra.mxu0 %v3358_v45  ;;  %323 = vmatprep.mubr.f32.mxu0 %v3213_v0 }
  0xa0   :  { %2482 = vmatprep.subr.bf16.mxu0 %v3361_v46  ;;  %2116 = vmatmul.mubr.f32.gmra.mrb[4].mxu1 %v215_v1 }
  0xa1   :  { %2505 = vmatpush3.bf16.msra.mxu1 %v3375_v61  ;;  %2118 = vmatprep.mubr.f32.mxu1 %v216_v3 }
  0xa2   :  { %324 = vmatmul.mubr.f32.gmra.mrb[8].mxu0 %v214_v54  ;;  %2506 = vmatprep.subr.bf16.mxu1 %v3214_v40 }
  0xa3   :  { %2484 = vmatpush1.bf16.msra.mxu0 %v3369_v55  ;;  %329 = vmatprep.mubr.f32.mxu0 %v3213_v0 }
  0xa4   :  { %2486 = vmatprep.subr.bf16.mxu0 %v3372_v56  ;;  %2119 = vmatmul.mubr.f32.gmra.mrb[6].mxu1 %v217_v14 }
  0xa5   :  { %2508 = vmatpush3.bf16.msra.mxu1 %v3386_v10  ;;  %2153 = vmatprep.mubr.msk.f32.mxu1 %vm3215_vm0, %v3213_v0 }
  0xa6   :  { %330 = vmatmul.mubr.f32.gmra.mrb[10].mxu0 %v215_v1  ;;  %2509 = vmatprep.subr.bf16.mxu1 %v3214_v40  ;;  %v222_v1 = vsub.s32 0, %v221_v37 }
  0xa7   :  { %2488 = vmatpush1.bf16.msra.mxu0 %v3380_v2  ;;  %335 = vmatprep.mubr.f32.mxu0 %v3213_v0 }
  0xa8   :  { %2490 = vmatprep.subr.bf16.mxu0 %v3383_v4  ;;  %v3477_v5 = vrot.slane %v218_v39, %v222_v1 }
  0xa9   :  { %2511 = vmatpush3.bf16.msra.mxu1 %v3397_v20 }
  0xaa   :  { %336 = vmatmul.mubr.f32.gmra.mrb[12].mxu0 %v216_v3  ;;  %2512 = vmatprep.subr.bf16.mxu1 %v3214_v40  ;;  %v226_v3 = vsub.s32 1, %v221_v37 }
  0xab   :  { %2492 = vmatpush1.bf16.msra.mxu0 %v3391_v13  ;;  %341 = vmatprep.mubr.f32.mxu0 %v3213_v0 }
  0xac   :  { %2494 = vmatprep.subr.bf16.mxu0 %v3394_v15  ;;  %v3479_v7 = vrot.slane %v218_v39, %v226_v3 }
  0xad   :  { %2514 = vmatpush3.bf16.msra.mxu1 %v3408_v24 }
  0xae   :  { %342 = vmatmul.mubr.f32.gmra.mrb[14].mxu0 %v217_v14  ;;  %2515 = vmatprep.subr.bf16.mxu1 %v3214_v40 }
  0xaf   :  { %2496 = vmatpush1.bf16.msra.mxu0 %v3404_v23  ;;  %549 = vmatprep.mubr.f32.mxu0 %v3213_v0 }
  0xb0   :  { %2522 = vmatprep.subr.bf16.mxu0 %v3331_v9 }
  0xb1   :  { %2517 = vmatpush3.bf16.msra.mxu1 %v3417_v30 }
  0xb2   :  { %550 = vmatmul.mubr.f32.vlgmr.msra.gmra.mrb[0].mxu0 %v3413_v29  ;;  %2518 = vmatprep.subr.bf16.mxu1 %v3214_v40 }
  0xb3   :  { %2524 = vmatpush1.bf16.msra.mxu0 %v3333_v17  ;;  %719 = vmatprep.mubr.f32.mxu0 %v3213_v0 }
  0xb4   :  { %2526 = vmatprep.subr.bf16.mxu0 %v3336_v18 }
  0xb5   :  { %2520 = vmatpush3.bf16.msra.mxu1 %v3425_v33 }
  0xb6   :  { %2553 = vmatprep.subr.bf16.mxu1 %v3214_v40 }
  0xb7   :  { %2528 = vmatpush1.bf16.msra.mxu0 %v3341_v25 }
  0xb8   :  { %2530 = vmatprep.subr.bf16.mxu0 %v3344_v26  ;;  %2154 = vmatmul.mubr.f32.vlgmr.msra.gmra.mrb[8].mxu1 %v3413_v29 }
  0xb9   :  { %2555 = vmatpush3.bf16.msra.mxu1 %v3354_v41  ;;  %2188 = vmatprep.mubr.msk.f32.mxu1 %vm3215_vm0, %v3213_v0 }
  0xba   :  { %2556 = vmatprep.subr.bf16.mxu1 %v3214_v40 }
  0xbb   :  { %2532 = vmatpush1.bf16.msra.mxu0 %v3348_v34 }
  0xbc   :  { %2534 = vmatprep.subr.bf16.mxu0 %v3351_v35 }
  0xbd   :  { %2558 = vmatpush3.bf16.msra.mxu1 %v3364_v51 }
  0xbe   :  { %2559 = vmatprep.subr.bf16.mxu1 %v3214_v40 }
  0xbf   :  { %2536 = vmatpush1.bf16.msra.mxu0 %v3358_v45 }
  0xc0   :  { %2538 = vmatprep.subr.bf16.mxu0 %v3361_v46 }
  0xc1   :  { %2561 = vmatpush3.bf16.msra.mxu1 %v3375_v61 }
  0xc2   :  { %2562 = vmatprep.subr.bf16.mxu1 %v3214_v40 }
  0xc3   :  { %2540 = vmatpush1.bf16.msra.mxu0 %v3369_v55 }
  0xc4   :  { %2542 = vmatprep.subr.bf16.mxu0 %v3372_v56 }
  0xc5   :  { %2564 = vmatpush3.bf16.msra.mxu1 %v3386_v10 }
  0xc6   :  { %2565 = vmatprep.subr.bf16.mxu1 %v3214_v40 }
  0xc7   :  { %2544 = vmatpush1.bf16.msra.mxu0 %v3380_v2 }
  0xc8   :  { %2546 = vmatprep.subr.bf16.mxu0 %v3383_v4 }
  0xc9   :  { %2567 = vmatpush3.bf16.msra.mxu1 %v3397_v20 }
  0xca   :  { %2568 = vmatprep.subr.bf16.mxu1 %v3214_v40 }
  0xcb   :  { %2548 = vmatpush1.bf16.msra.mxu0 %v3391_v13 }
  0xcc   :  { %2550 = vmatprep.subr.bf16.mxu0 %v3394_v15 }
  0xcd   :  { %2570 = vmatpush3.bf16.msra.mxu1 %v3408_v24 }
  0xce   :  { %2571 = vmatprep.subr.bf16.mxu1 %v3214_v40 }
  0xcf   :  { %2552 = vmatpush1.bf16.msra.mxu0 %v3404_v23 }
  0xd0   :  { %2578 = vmatprep.subr.bf16.mxu0 %v3331_v9 }
  0xd1   :  { %2573 = vmatpush3.bf16.msra.mxu1 %v3417_v30 }
  0xd2   :  { %2574 = vmatprep.subr.bf16.mxu1 %v3214_v40 }
  0xd5   :  { %2576 = vmatpush3.bf16.msra.mxu1 %v3425_v33 }
  0xd6   :  { %2609 = vmatprep.subr.bf16.mxu1 %v3214_v40 }
 0x16b   :  { %v2111_v43 = vpop.f32.mrb[0].mxu1 }
 0x16c   :  { %v3463_v44 = vadd.f32 %v2111_v43, %v231_v42  ;;  %v414_v47 = vpop.f32.mrb[1].mxu1 }
 0x16d   :  { %v415_v38 = vadd.f32 %v414_v47, %v231_v42 }
 0x16f   :  { %v2114_v48 = vpop.f32.mrb[2].mxu1 }
 0x170   :  { %v3465_v49 = vadd.f32 %v2114_v48, %v231_v42  ;;  %v424_v50 = vpop.f32.mrb[3].mxu1 }
 0x171   :  { %v3467_v52 = vadd.f32 %v424_v50, %v231_v42 }
 0x173   :  { %v2117_v53 = vpop.f32.mrb[4].mxu1 }
 0x174   :  { %v3469_v54 = vadd.f32 %v2117_v53, %v231_v42  ;;  %v434_v57 = vpop.f32.mrb[5].mxu1 }
 0x175   :  { %v3471_v58 = vadd.f32 %v434_v57, %v231_v42 }
 0x177   :  { %v2120_v59 = vpop.f32.mrb[6].mxu1 }
 0x178   :  { %v3473_v60 = vadd.f32 %v2120_v59, %v231_v42  ;;  %v444_v62 = vpop.f32.mrb[7].mxu1 }
 0x179   :  { %v3475_v63 = vadd.f32 %v444_v62, %v231_v42 }
 0x185   :  { %v551_v6 = vpop.f32.mrb[0].mxu0 }
 0x186   :  { %v2913_v8 = vadd.f32 %v551_v6, %v3477_v5  ;;  %v553_v11 = vpop.f32.mrb[1].mxu0 }
 0x187   :  { %v2914_v14 = vadd.f32 %v553_v11, %v3479_v7 }
 0x188   :  { %v1901_v12 = vmul.f32 -1.442695, %v2913_v8 }
 0x189   :  { %v1902_v16 = vmul.f32 -1.442695, %v2914_v14 }
 0x18a   :  { %2959 = vpow2.f32 %v1901_v12 }
 0x18b   :  { %v622_v19 = vpop.f32.mrb[8].mxu1  ;;  %2961 = vpow2.f32 %v1902_v16 }
 0x18c   :  { %v2155_v21 = vpop.f32.mrb[9].mxu1  ;;  %v646_v36 = vadd.f32 %v3483_v31, %v622_v19 }
 0x194   :  { %v2960_v22 = vpop.eup %2959 }
 0x195   :  { %v634_v27 = vadd.f32 1.0, %v2960_v22  ;;  %v2962_v28 = vpop.eup %2961 }
 0x196   :  { %v642_v32 = vadd.f32 1.0, %v2962_v28 }
 0x197   :  { %2963 = vrcp.f32 %v634_v27 }
 0x198   :  { %2965 = vrcp.f32 %v642_v32 }
 0x1a1   :  { %v2964_v37 = vpop.eup %2963 }
 0x1a2   :  { %v647_v39 = vmul.f32 %v2964_v37, %v646_v36  ;;  %v2966_v48 = vpop.eup %2965 }
 0x1a3   :  { %v650_v50 = vsub.f32 1.0, %v2966_v48  ;;  %v652_v59 = vmul.f32 %v2966_v48, %v3413_v29 }
 0x1a4   :  { %v648_v43 = vadd.f32 %v647_v39, %v415_v38 }
 0x1a6   :  { %2967 = vtanh.f32 %v648_v43 }
 0x1b0   :  { %v2968_v53 = vpop.eup %2967 }
 0x1b1   :  { %v651_v57 = vmul.f32 %v2968_v53, %v650_v50 }
 0x1b3   :  { %v3487_v62 = vadd.f32 %v652_v59, %v651_v57 }
 0x1b5   :  { %720 = vmatmul.mubr.f32.vlgmr.msra.gmra.mrb[2].mxu0 %v3487_v62  ;;  %1861 = vst [vmem:[#allocation16] sm:$0xff] %v3487_v62  ;;  %2189 = vmatmul.mubr.f32.vlgmr.msra.gmra.mrb[10].mxu1 %v3487_v62 }
 0x1b6   :  { %2580 = vmatpush1.bf16.msra.mxu0 %v3333_v17  ;;  %2611 = vmatpush3.bf16.msra.mxu1 %v3354_v41 }
 0x1b7   :  { %2582 = vmatprep.subr.bf16.mxu0 %v3336_v18  ;;  %2612 = vmatprep.subr.bf16.mxu1 %v3214_v40 }
 0x1b8   :  { %890 = vmatprep.mubr.f32.mxu0 %v3213_v0  ;;  %2223 = vmatprep.mubr.msk.f32.mxu1 %vm3215_vm0, %v3213_v0 }
 0x1ba   :  { %2584 = vmatpush1.bf16.msra.mxu0 %v3341_v25  ;;  %2614 = vmatpush3.bf16.msra.mxu1 %v3364_v51 }
 0x1bb   :  { %2586 = vmatprep.subr.bf16.mxu0 %v3344_v26  ;;  %2615 = vmatprep.subr.bf16.mxu1 %v3214_v40 }
 0x1be   :  { %2588 = vmatpush1.bf16.msra.mxu0 %v3348_v34  ;;  %2617 = vmatpush3.bf16.msra.mxu1 %v3375_v61 }
 0x1bf   :  { %2590 = vmatprep.subr.bf16.mxu0 %v3351_v35  ;;  %2618 = vmatprep.subr.bf16.mxu1 %v3214_v40 }
 0x1c2   :  { %2592 = vmatpush1.bf16.msra.mxu0 %v3358_v45  ;;  %2620 = vmatpush3.bf16.msra.mxu1 %v3386_v10 }
 0x1c3   :  { %2594 = vmatprep.subr.bf16.mxu0 %v3361_v46  ;;  %2621 = vmatprep.subr.bf16.mxu1 %v3214_v40 }
 0x1c6   :  { %2596 = vmatpush1.bf16.msra.mxu0 %v3369_v55  ;;  %2623 = vmatpush3.bf16.msra.mxu1 %v3397_v20 }
 0x1c7   :  { %2598 = vmatprep.subr.bf16.mxu0 %v3372_v56  ;;  %2624 = vmatprep.subr.bf16.mxu1 %v3214_v40 }
 0x1ca   :  { %2600 = vmatpush1.bf16.msra.mxu0 %v3380_v2  ;;  %2626 = vmatpush3.bf16.msra.mxu1 %v3408_v24 }
 0x1cb   :  { %2602 = vmatprep.subr.bf16.mxu0 %v3383_v4  ;;  %2627 = vmatprep.subr.bf16.mxu1 %v3214_v40 }
 0x1ce   :  { %2604 = vmatpush1.bf16.msra.mxu0 %v3391_v13  ;;  %2629 = vmatpush3.bf16.msra.mxu1 %v3417_v30 }
 0x1cf   :  { %2606 = vmatprep.subr.bf16.mxu0 %v3394_v15  ;;  %2630 = vmatprep.subr.bf16.mxu1 %v3214_v40 }
 0x1d2   :  { %2608 = vmatpush1.bf16.msra.mxu0 %v3404_v23  ;;  %2632 = vmatpush3.bf16.msra.mxu1 %v3425_v33 }
 0x1d3   :  { %2634 = vmatprep.subr.bf16.mxu0 %v3331_v9  ;;  %2665 = vmatprep.subr.bf16.mxu1 %v3214_v40 }
 0x288   :  { %v721_v29 = vpop.f32.mrb[2].mxu0  ;;  %v792_v42 = vpop.f32.mrb[10].mxu1 }
 0x289   :  { %v2915_v47 = vadd.f32 %v721_v29, %v3477_v5  ;;  %v723_v1 = vpop.f32.mrb[3].mxu0  ;;  %v2190_v3 = vpop.f32.mrb[11].mxu1  ;;  %v816_v21 = vadd.f32 %v3483_v31, %v792_v42 }
 0x28a   :  { %v2916_v8 = vadd.f32 %v723_v1, %v3479_v7 }
 0x28b   :  { %v1903_v6 = vmul.f32 -1.442695, %v2915_v47 }
 0x28c   :  { %v1904_v11 = vmul.f32 -1.442695, %v2916_v8 }
 0x28d   :  { %2969 = vpow2.f32 %v1903_v6 }
 0x28e   :  { %2971 = vpow2.f32 %v1904_v11 }
 0x297   :  { %v2970_v12 = vpop.eup %2969 }
 0x298   :  { %v804_v14 = vadd.f32 1.0, %v2970_v12  ;;  %v2972_v16 = vpop.eup %2971 }
 0x299   :  { %v812_v19 = vadd.f32 1.0, %v2972_v16 }
 0x29a   :  { %2973 = vrcp.f32 %v804_v14 }
 0x29b   :  { %2975 = vrcp.f32 %v812_v19 }
 0x2a4   :  { %v2974_v22 = vpop.eup %2973 }
 0x2a5   :  { %v817_v27 = vmul.f32 %v2974_v22, %v816_v21  ;;  %v2976_v32 = vpop.eup %2975 }
 0x2a6   :  { %v820_v36 = vsub.f32 1.0, %v2976_v32  ;;  %v822_v39 = vmul.f32 %v2976_v32, %v3487_v62 }
 0x2a7   :  { %v818_v28 = vadd.f32 %v817_v27, %v3463_v44 }
 0x2a9   :  { %2977 = vtanh.f32 %v818_v28 }
 0x2b3   :  { %v2978_v37 = vpop.eup %2977 }
 0x2b4   :  { %v821_v38 = vmul.f32 %v2978_v37, %v820_v36 }
 0x2b6   :  { %v3532_v43 = vadd.f32 %v822_v39, %v821_v38 }
 0x2b8   :  { %891 = vmatmul.mubr.f32.vlgmr.msra.gmra.mrb[4].mxu0 %v3532_v43  ;;  %1862 = vst [vmem:[#allocation16 + $0x8] sm:$0xff] %v3532_v43  ;;  %2224 = vmatmul.mubr.f32.vlgmr.msra.gmra.mrb[12].mxu1 %v3532_v43 }
 0x2b9   :  { %2636 = vmatpush1.bf16.msra.mxu0 %v3333_v17  ;;  %2667 = vmatpush3.bf16.msra.mxu1 %v3354_v41 }
 0x2ba   :  { %2638 = vmatprep.subr.bf16.mxu0 %v3336_v18  ;;  %2668 = vmatprep.subr.bf16.mxu1 %v3214_v40 }
 0x2bb   :  { %1061 = vmatprep.mubr.f32.mxu0 %v3213_v0  ;;  %2258 = vmatprep.mubr.msk.f32.mxu1 %vm3215_vm0, %v3213_v0 }
 0x2bd   :  { %2640 = vmatpush1.bf16.msra.mxu0 %v3341_v25  ;;  %2670 = vmatpush3.bf16.msra.mxu1 %v3364_v51 }
 0x2be   :  { %2642 = vmatprep.subr.bf16.mxu0 %v3344_v26  ;;  %2671 = vmatprep.subr.bf16.mxu1 %v3214_v40 }
 0x2c1   :  { %2644 = vmatpush1.bf16.msra.mxu0 %v3348_v34  ;;  %2673 = vmatpush3.bf16.msra.mxu1 %v3375_v61 }
 0x2c2   :  { %2646 = vmatprep.subr.bf16.mxu0 %v3351_v35  ;;  %2674 = vmatprep.subr.bf16.mxu1 %v3214_v40 }
 0x2c5   :  { %2648 = vmatpush1.bf16.msra.mxu0 %v3358_v45  ;;  %2676 = vmatpush3.bf16.msra.mxu1 %v3386_v10 }
 0x2c6   :  { %2650 = vmatprep.subr.bf16.mxu0 %v3361_v46  ;;  %2677 = vmatprep.subr.bf16.mxu1 %v3214_v40 }
 0x2c9   :  { %2652 = vmatpush1.bf16.msra.mxu0 %v3369_v55  ;;  %2679 = vmatpush3.bf16.msra.mxu1 %v3397_v20 }
 0x2ca   :  { %2654 = vmatprep.subr.bf16.mxu0 %v3372_v56  ;;  %2680 = vmatprep.subr.bf16.mxu1 %v3214_v40 }
 0x2cd   :  { %2656 = vmatpush1.bf16.msra.mxu0 %v3380_v2  ;;  %2682 = vmatpush3.bf16.msra.mxu1 %v3408_v24 }
 0x2ce   :  { %2658 = vmatprep.subr.bf16.mxu0 %v3383_v4  ;;  %2683 = vmatprep.subr.bf16.mxu1 %v3214_v40 }
 0x2d1   :  { %2660 = vmatpush1.bf16.msra.mxu0 %v3391_v13  ;;  %2685 = vmatpush3.bf16.msra.mxu1 %v3417_v30 }
 0x2d2   :  { %2662 = vmatprep.subr.bf16.mxu0 %v3394_v15  ;;  %2686 = vmatprep.subr.bf16.mxu1 %v3214_v40 }
 0x2d5   :  { %2664 = vmatpush1.bf16.msra.mxu0 %v3404_v23  ;;  %2688 = vmatpush3.bf16.msra.mxu1 %v3425_v33 }
 0x2d6   :  { %2690 = vmatprep.subr.bf16.mxu0 %v3331_v9  ;;  %2721 = vmatprep.subr.bf16.mxu1 %v3214_v40 }
 0x38b   :  { %v892_v44 = vpop.f32.mrb[4].mxu0  ;;  %v963_v48 = vpop.f32.mrb[12].mxu1 }
 0x38c   :  { %v2917_v50 = vadd.f32 %v892_v44, %v3477_v5  ;;  %v894_v53 = vpop.f32.mrb[5].mxu0  ;;  %v2225_v57 = vpop.f32.mrb[13].mxu1  ;;  %v987_v6 = vadd.f32 %v3483_v31, %v963_v48 }
 0x38d   :  { %v2918_v62 = vadd.f32 %v894_v53, %v3479_v7 }
 0x38e   :  { %v1905_v59 = vmul.f32 -1.442695, %v2917_v50 }
 0x38f   :  { %v1906_v29 = vmul.f32 -1.442695, %v2918_v62 }
 0x390   :  { %2979 = vpow2.f32 %v1905_v59 }
 0x391   :  { %2981 = vpow2.f32 %v1906_v29 }
 0x39a   :  { %v2980_v42 = vpop.eup %2979 }
 0x39b   :  { %v975_v47 = vadd.f32 1.0, %v2980_v42  ;;  %v2982_v1 = vpop.eup %2981 }
 0x39c   :  { %v983_v3 = vadd.f32 1.0, %v2982_v1 }
 0x39d   :  { %2983 = vrcp.f32 %v975_v47 }
 0x39e   :  { %2985 = vrcp.f32 %v983_v3 }
 0x3a7   :  { %v2984_v8 = vpop.eup %2983 }
 0x3a8   :  { %v988_v11 = vmul.f32 %v2984_v8, %v987_v6  ;;  %v2986_v14 = vpop.eup %2985 }
 0x3a9   :  { %v991_v16 = vsub.f32 1.0, %v2986_v14  ;;  %v993_v22 = vmul.f32 %v2986_v14, %v3532_v43 }
 0x3aa   :  { %v989_v12 = vadd.f32 %v988_v11, %v3467_v52 }
 0x3ac   :  { %2987 = vtanh.f32 %v989_v12 }
 0x3b6   :  { %v2988_v19 = vpop.eup %2987 }
 0x3b7   :  { %v992_v21 = vmul.f32 %v2988_v19, %v991_v16 }
 0x3b9   :  { %v3577_v27 = vadd.f32 %v993_v22, %v992_v21 }
 0x3bb   :  { %1062 = vmatmul.mubr.f32.vlgmr.msra.gmra.mrb[6].mxu0 %v3577_v27  ;;  %1863 = vst [vmem:[#allocation16 + $0x10] sm:$0xff] %v3577_v27  ;;  %2259 = vmatmul.mubr.f32.vlgmr.msra.gmra.mrb[14].mxu1 %v3577_v27 }
 0x3bc   :  { %2692 = vmatpush1.bf16.msra.mxu0 %v3333_v17  ;;  %2723 = vmatpush3.bf16.msra.mxu1 %v3354_v41 }
 0x3bd   :  { %2694 = vmatprep.subr.bf16.mxu0 %v3336_v18  ;;  %2724 = vmatprep.subr.bf16.mxu1 %v3214_v40 }
 0x3be   :  { %1232 = vmatprep.mubr.f32.mxu0 %v3213_v0  ;;  %2293 = vmatprep.mubr.msk.f32.mxu1 %vm3215_vm0, %v3213_v0 }
 0x3c0   :  { %2696 = vmatpush1.bf16.msra.mxu0 %v3341_v25  ;;  %2726 = vmatpush3.bf16.msra.mxu1 %v3364_v51 }
 0x3c1   :  { %2698 = vmatprep.subr.bf16.mxu0 %v3344_v26  ;;  %2727 = vmatprep.subr.bf16.mxu1 %v3214_v40 }
 0x3c4   :  { %2700 = vmatpush1.bf16.msra.mxu0 %v3348_v34  ;;  %2729 = vmatpush3.bf16.msra.mxu1 %v3375_v61 }
 0x3c5   :  { %2702 = vmatprep.subr.bf16.mxu0 %v3351_v35  ;;  %2730 = vmatprep.subr.bf16.mxu1 %v3214_v40 }
 0x3c8   :  { %2704 = vmatpush1.bf16.msra.mxu0 %v3358_v45  ;;  %2732 = vmatpush3.bf16.msra.mxu1 %v3386_v10 }
 0x3c9   :  { %2706 = vmatprep.subr.bf16.mxu0 %v3361_v46  ;;  %2733 = vmatprep.subr.bf16.mxu1 %v3214_v40 }
 0x3cc   :  { %2708 = vmatpush1.bf16.msra.mxu0 %v3369_v55  ;;  %2735 = vmatpush3.bf16.msra.mxu1 %v3397_v20 }
 0x3cd   :  { %2710 = vmatprep.subr.bf16.mxu0 %v3372_v56  ;;  %2736 = vmatprep.subr.bf16.mxu1 %v3214_v40 }
 0x3d0   :  { %2712 = vmatpush1.bf16.msra.mxu0 %v3380_v2  ;;  %2738 = vmatpush3.bf16.msra.mxu1 %v3408_v24 }
 0x3d1   :  { %2714 = vmatprep.subr.bf16.mxu0 %v3383_v4  ;;  %2739 = vmatprep.subr.bf16.mxu1 %v3214_v40 }
 0x3d4   :  { %2716 = vmatpush1.bf16.msra.mxu0 %v3391_v13  ;;  %2741 = vmatpush3.bf16.msra.mxu1 %v3417_v30 }
 0x3d5   :  { %2718 = vmatprep.subr.bf16.mxu0 %v3394_v15  ;;  %2742 = vmatprep.subr.bf16.mxu1 %v3214_v40 }
 0x3d8   :  { %2720 = vmatpush1.bf16.msra.mxu0 %v3404_v23  ;;  %2744 = vmatpush3.bf16.msra.mxu1 %v3425_v33 }
 0x3d9   :  { %2746 = vmatprep.subr.bf16.mxu0 %v3331_v9  ;;  %2777 = vmatprep.subr.bf16.mxu1 %v3214_v40 }
 0x48e   :  { %v1063_v52 = vpop.f32.mrb[6].mxu0  ;;  %v1134_v28 = vpop.f32.mrb[14].mxu1 }
 0x48f   :  { %v2919_v32 = vadd.f32 %v1063_v52, %v3477_v5  ;;  %v1065_v36 = vpop.f32.mrb[7].mxu0  ;;  %v2260_v37 = vpop.f32.mrb[15].mxu1  ;;  %v1158_v57 = vadd.f32 %v3483_v31, %v1134_v28 }
 0x490   :  { %v2920_v39 = vadd.f32 %v1065_v36, %v3479_v7 }
 0x491   :  { %v1907_v38 = vmul.f32 -1.442695, %v2919_v32 }
 0x492   :  { %v1908_v43 = vmul.f32 -1.442695, %v2920_v39 }
 0x493   :  { %2989 = vpow2.f32 %v1907_v38 }
 0x494   :  { %2991 = vpow2.f32 %v1908_v43 }
 0x49d   :  { %v2990_v44 = vpop.eup %2989 }
 0x49e   :  { %v1146_v48 = vadd.f32 1.0, %v2990_v44  ;;  %v2992_v50 = vpop.eup %2991 }
 0x49f   :  { %v1154_v53 = vadd.f32 1.0, %v2992_v50 }
 0x4a0   :  { %2993 = vrcp.f32 %v1146_v48 }
 0x4a1   :  { %2995 = vrcp.f32 %v1154_v53 }
 0x4aa   :  { %v2994_v59 = vpop.eup %2993 }
 0x4ab   :  { %v1159_v62 = vmul.f32 %v2994_v59, %v1158_v57  ;;  %v2996_v42 = vpop.eup %2995 }
 0x4ac   :  { %v1162_v47 = vsub.f32 1.0, %v2996_v42  ;;  %v1164_v6 = vmul.f32 %v2996_v42, %v3577_v27 }
 0x4ad   :  { %v1160_v29 = vadd.f32 %v1159_v62, %v3465_v49 }
 0x4af   :  { %2997 = vtanh.f32 %v1160_v29 }
 0x4b9   :  { %v2998_v1 = vpop.eup %2997 }
 0x4ba   :  { %v1163_v3 = vmul.f32 %v2998_v1, %v1162_v47 }
 0x4bc   :  { %v3622_v8 = vadd.f32 %v1164_v6, %v1163_v3 }
 0x4be   :  { %1233 = vmatmul.mubr.f32.vlgmr.msra.gmra.mrb[8].mxu0 %v3622_v8  ;;  %1864 = vst [vmem:[#allocation16 + $0x18] sm:$0xff] %v3622_v8  ;;  %2294 = vmatmul.mubr.f32.vlgmr.msra.gmra.mrb[16].mxu1 %v3622_v8 }
 0x4bf   :  { %2748 = vmatpush1.bf16.msra.mxu0 %v3333_v17  ;;  %2779 = vmatpush3.bf16.msra.mxu1 %v3354_v41 }
 0x4c0   :  { %2750 = vmatprep.subr.bf16.mxu0 %v3336_v18  ;;  %2780 = vmatprep.subr.bf16.mxu1 %v3214_v40 }
 0x4c1   :  { %1403 = vmatprep.mubr.f32.mxu0 %v3213_v0  ;;  %2328 = vmatprep.mubr.msk.f32.mxu1 %vm3215_vm0, %v3213_v0 }
 0x4c3   :  { %2752 = vmatpush1.bf16.msra.mxu0 %v3341_v25  ;;  %2782 = vmatpush3.bf16.msra.mxu1 %v3364_v51 }
 0x4c4   :  { %2754 = vmatprep.subr.bf16.mxu0 %v3344_v26  ;;  %2783 = vmatprep.subr.bf16.mxu1 %v3214_v40 }
 0x4c7   :  { %2756 = vmatpush1.bf16.msra.mxu0 %v3348_v34  ;;  %2785 = vmatpush3.bf16.msra.mxu1 %v3375_v61 }
 0x4c8   :  { %2758 = vmatprep.subr.bf16.mxu0 %v3351_v35  ;;  %2786 = vmatprep.subr.bf16.mxu1 %v3214_v40 }
 0x4cb   :  { %2760 = vmatpush1.bf16.msra.mxu0 %v3358_v45  ;;  %2788 = vmatpush3.bf16.msra.mxu1 %v3386_v10 }
 0x4cc   :  { %2762 = vmatprep.subr.bf16.mxu0 %v3361_v46  ;;  %2789 = vmatprep.subr.bf16.mxu1 %v3214_v40 }
 0x4cf   :  { %2764 = vmatpush1.bf16.msra.mxu0 %v3369_v55  ;;  %2791 = vmatpush3.bf16.msra.mxu1 %v3397_v20 }
 0x4d0   :  { %2766 = vmatprep.subr.bf16.mxu0 %v3372_v56  ;;  %2792 = vmatprep.subr.bf16.mxu1 %v3214_v40 }
 0x4d3   :  { %2768 = vmatpush1.bf16.msra.mxu0 %v3380_v2  ;;  %2794 = vmatpush3.bf16.msra.mxu1 %v3408_v24 }
 0x4d4   :  { %2770 = vmatprep.subr.bf16.mxu0 %v3383_v4  ;;  %2795 = vmatprep.subr.bf16.mxu1 %v3214_v40 }
 0x4d7   :  { %2772 = vmatpush1.bf16.msra.mxu0 %v3391_v13  ;;  %2797 = vmatpush3.bf16.msra.mxu1 %v3417_v30 }
 0x4d8   :  { %2774 = vmatprep.subr.bf16.mxu0 %v3394_v15  ;;  %2798 = vmatprep.subr.bf16.mxu1 %v3214_v40 }
 0x4db   :  { %2776 = vmatpush1.bf16.msra.mxu0 %v3404_v23  ;;  %2800 = vmatpush3.bf16.msra.mxu1 %v3425_v33 }
 0x4dc   :  { %2802 = vmatprep.subr.bf16.mxu0 %v3331_v9  ;;  %2833 = vmatprep.subr.bf16.mxu1 %v3214_v40 }
 0x591   :  { %v1234_v49 = vpop.f32.mrb[8].mxu0  ;;  %v1305_v11 = vpop.f32.mrb[16].mxu1 }
 0x592   :  { %v2921_v12 = vadd.f32 %v1234_v49, %v3477_v5  ;;  %v1236_v14 = vpop.f32.mrb[9].mxu0  ;;  %v2295_v16 = vpop.f32.mrb[17].mxu1  ;;  %v1329_v36 = vadd.f32 %v3483_v31, %v1305_v11 }
 0x593   :  { %v2922_v21 = vadd.f32 %v1236_v14, %v3479_v7 }
 0x594   :  { %v1909_v19 = vmul.f32 -1.442695, %v2921_v12 }
 0x595   :  { %v1910_v22 = vmul.f32 -1.442695, %v2922_v21 }
 0x596   :  { %2999 = vpow2.f32 %v1909_v19 }
 0x597   :  { %3001 = vpow2.f32 %v1910_v22 }
 0x5a0   :  { %v3000_v27 = vpop.eup %2999 }
 0x5a1   :  { %v1317_v52 = vadd.f32 1.0, %v3000_v27  ;;  %v3002_v28 = vpop.eup %3001 }
 0x5a2   :  { %v1325_v32 = vadd.f32 1.0, %v3002_v28 }
 0x5a3   :  { %3003 = vrcp.f32 %v1317_v52 }
 0x5a4   :  { %3005 = vrcp.f32 %v1325_v32 }
 0x5ad   :  { %v3004_v37 = vpop.eup %3003 }
 0x5ae   :  { %v1330_v38 = vmul.f32 %v3004_v37, %v1329_v36  ;;  %v3006_v43 = vpop.eup %3005 }
 0x5af   :  { %v1333_v44 = vsub.f32 1.0, %v3006_v43  ;;  %v1335_v53 = vmul.f32 %v3006_v43, %v3622_v8 }
 0x5b0   :  { %v1331_v39 = vadd.f32 %v1330_v38, %v3471_v58 }
 0x5b2   :  { %3007 = vtanh.f32 %v1331_v39 }
 0x5bc   :  { %v3008_v48 = vpop.eup %3007 }
 0x5bd   :  { %v1334_v50 = vmul.f32 %v3008_v48, %v1333_v44 }
 0x5bf   :  { %v3667_v57 = vadd.f32 %v1335_v53, %v1334_v50 }
 0x5c1   :  { %1404 = vmatmul.mubr.f32.vlgmr.msra.gmra.mrb[10].mxu0 %v3667_v57  ;;  %1865 = vst [vmem:[#allocation16 + $0x20] sm:$0xff] %v3667_v57  ;;  %2329 = vmatmul.mubr.f32.vlgmr.msra.gmra.mrb[18].mxu1 %v3667_v57 }
 0x5c2   :  { %2804 = vmatpush1.bf16.msra.mxu0 %v3333_v17  ;;  %2835 = vmatpush3.bf16.msra.mxu1 %v3354_v41 }
 0x5c3   :  { %2806 = vmatprep.subr.bf16.mxu0 %v3336_v18  ;;  %2836 = vmatprep.subr.bf16.mxu1 %v3214_v40 }
 0x5c4   :  { %1574 = vmatprep.mubr.f32.mxu0 %v3213_v0  ;;  %2363 = vmatprep.mubr.msk.f32.mxu1 %vm3215_vm0, %v3213_v0 }
 0x5c6   :  { %2808 = vmatpush1.bf16.msra.mxu0 %v3341_v25  ;;  %2838 = vmatpush3.bf16.msra.mxu1 %v3364_v51 }
 0x5c7   :  { %2810 = vmatprep.subr.bf16.mxu0 %v3344_v26  ;;  %2839 = vmatprep.subr.bf16.mxu1 %v3214_v40 }
 0x5ca   :  { %2812 = vmatpush1.bf16.msra.mxu0 %v3348_v34  ;;  %2841 = vmatpush3.bf16.msra.mxu1 %v3375_v61 }
 0x5cb   :  { %2814 = vmatprep.subr.bf16.mxu0 %v3351_v35  ;;  %2842 = vmatprep.subr.bf16.mxu1 %v3214_v40 }
 0x5ce   :  { %2816 = vmatpush1.bf16.msra.mxu0 %v3358_v45  ;;  %2844 = vmatpush3.bf16.msra.mxu1 %v3386_v10 }
 0x5cf   :  { %2818 = vmatprep.subr.bf16.mxu0 %v3361_v46  ;;  %2845 = vmatprep.subr.bf16.mxu1 %v3214_v40 }
 0x5d2   :  { %2820 = vmatpush1.bf16.msra.mxu0 %v3369_v55  ;;  %2847 = vmatpush3.bf16.msra.mxu1 %v3397_v20 }
 0x5d3   :  { %2822 = vmatprep.subr.bf16.mxu0 %v3372_v56  ;;  %2848 = vmatprep.subr.bf16.mxu1 %v3214_v40 }
 0x5d6   :  { %2824 = vmatpush1.bf16.msra.mxu0 %v3380_v2  ;;  %2850 = vmatpush3.bf16.msra.mxu1 %v3408_v24 }
 0x5d7   :  { %2826 = vmatprep.subr.bf16.mxu0 %v3383_v4  ;;  %2851 = vmatprep.subr.bf16.mxu1 %v3214_v40 }
 0x5da   :  { %2828 = vmatpush1.bf16.msra.mxu0 %v3391_v13  ;;  %2853 = vmatpush3.bf16.msra.mxu1 %v3417_v30 }
 0x5db   :  { %2830 = vmatprep.subr.bf16.mxu0 %v3394_v15  ;;  %2854 = vmatprep.subr.bf16.mxu1 %v3214_v40 }
 0x5de   :  { %2832 = vmatpush1.bf16.msra.mxu0 %v3404_v23  ;;  %2856 = vmatpush3.bf16.msra.mxu1 %v3425_v33 }
 0x5df   :  { %2858 = vmatprep.subr.bf16.mxu0 %v3331_v9  ;;  %2889 = vmatprep.subr.bf16.mxu1 %v3214_v40 }
 0x694   :  { %v1405_v58 = vpop.f32.mrb[10].mxu0  ;;  %v1476_v59 = vpop.f32.mrb[18].mxu1 }
 0x695   :  { %v2923_v62 = vadd.f32 %v1405_v58, %v3477_v5  ;;  %v1407_v29 = vpop.f32.mrb[11].mxu0  ;;  %v2330_v42 = vpop.f32.mrb[19].mxu1  ;;  %v1500_v9 = vadd.f32 %v3483_v31, %v1476_v59 }
 0x696   :  { %v2924_v1 = vadd.f32 %v1407_v29, %v3479_v7 }
 0x697   :  { %v1911_v47 = vmul.f32 -1.442695, %v2923_v62 }
 0x698   :  { %v1912_v3 = vmul.f32 -1.442695, %v2924_v1 }
 0x699   :  { %3009 = vpow2.f32 %v1911_v47 }
 0x69a   :  { %3011 = vpow2.f32 %v1912_v3 }
 0x6a3   :  { %v3010_v6 = vpop.eup %3009 }
 0x6a4   :  { %v1488_v8 = vadd.f32 1.0, %v3010_v6  ;;  %v3012_v49 = vpop.eup %3011 }
 0x6a5   :  { %v1496_v11 = vadd.f32 1.0, %v3012_v49 }
 0x6a6   :  { %3013 = vrcp.f32 %v1488_v8 }
 0x6a7   :  { %3015 = vrcp.f32 %v1496_v11 }
 0x6b0   :  { %v3014_v12 = vpop.eup %3013 }
 0x6b1   :  { %v1501_v14 = vmul.f32 %v3014_v12, %v1500_v9  ;;  %v3016_v19 = vpop.eup %3015 }
 0x6b2   :  { %v1504_v21 = vsub.f32 1.0, %v3016_v19  ;;  %v1506_v52 = vmul.f32 %v3016_v19, %v3667_v57 }
 0x6b3   :  { %v1502_v16 = vadd.f32 %v1501_v14, %v3469_v54 }
 0x6b5   :  { %3017 = vtanh.f32 %v1502_v16 }
 0x6bf   :  { %v3018_v22 = vpop.eup %3017 }
 0x6c0   :  { %v1505_v27 = vmul.f32 %v3018_v22, %v1504_v21 }
 0x6c2   :  { %v1507_v28 = vadd.f32 %v1506_v52, %v1505_v27 }
 0x6c4   :  { %1575 = vmatmul.mubr.f32.vlgmr.msra.gmra.mrb[12].mxu0 %v1507_v28  ;;  %1866 = vst [vmem:[#allocation16 + $0x28] sm:$0xff] %v1507_v28  ;;  %2364 = vmatmul.mubr.f32.vlgmr.msra.gmra.mrb[20].mxu1 %v1507_v28 }
 0x6c5   :  { %2860 = vmatpush1.bf16.msra.mxu0 %v3333_v17  ;;  %2891 = vmatpush3.bf16.msra.mxu1 %v3354_v41 }
 0x6c6   :  { %2862 = vmatprep.subr.bf16.mxu0 %v3336_v18  ;;  %2892 = vmatprep.subr.bf16.mxu1 %v3214_v40 }
 0x6c7   :  { %1745 = vmatprep.mubr.f32.mxu0 %v3213_v0  ;;  %2398 = vmatprep.mubr.msk.f32.mxu1 %vm3215_vm0, %v3213_v0 }
 0x6c9   :  { %2864 = vmatpush1.bf16.msra.mxu0 %v3341_v25  ;;  %2894 = vmatpush3.bf16.msra.mxu1 %v3364_v51 }
 0x6ca   :  { %2866 = vmatprep.subr.bf16.mxu0 %v3344_v26  ;;  %2895 = vmatprep.subr.bf16.mxu1 %v3214_v40 }
 0x6cd   :  { %2868 = vmatpush1.bf16.msra.mxu0 %v3348_v34  ;;  %2897 = vmatpush3.bf16.msra.mxu1 %v3375_v61 }
 0x6ce   :  { %2870 = vmatprep.subr.bf16.mxu0 %v3351_v35  ;;  %2898 = vmatprep.subr.bf16.mxu1 %v3214_v40 }
 0x6d1   :  { %2872 = vmatpush1.bf16.msra.mxu0 %v3358_v45  ;;  %2900 = vmatpush3.bf16.msra.mxu1 %v3386_v10 }
 0x6d2   :  { %2874 = vmatprep.subr.bf16.mxu0 %v3361_v46  ;;  %2901 = vmatprep.subr.bf16.mxu1 %v3214_v40 }
 0x6d5   :  { %2876 = vmatpush1.bf16.msra.mxu0 %v3369_v55  ;;  %2903 = vmatpush3.bf16.msra.mxu1 %v3397_v20 }
 0x6d6   :  { %2878 = vmatprep.subr.bf16.mxu0 %v3372_v56  ;;  %2904 = vmatprep.subr.bf16.mxu1 %v3214_v40 }
 0x6d9   :  { %2880 = vmatpush1.bf16.msra.mxu0 %v3380_v2  ;;  %2906 = vmatpush3.bf16.msra.mxu1 %v3408_v24 }
 0x6da   :  { %2882 = vmatprep.subr.bf16.mxu0 %v3383_v4  ;;  %2907 = vmatprep.subr.bf16.mxu1 %v3214_v40 }
 0x6dd   :  { %2884 = vmatpush1.bf16.msra.mxu0 %v3391_v13  ;;  %2909 = vmatpush3.bf16.msra.mxu1 %v3417_v30 }
 0x6de   :  { %2886 = vmatprep.subr.bf16.mxu0 %v3394_v15  ;;  %2910 = vmatprep.subr.bf16.mxu1 %v3214_v40 }
 0x6e1   :  { %2888 = vmatpush1.bf16.msra.mxu0 %v3404_v23  ;;  %2912 = vmatpush3.bf16.msra.mxu1 %v3425_v33 }
 0x797   :  { %v1576_v0 = vpop.f32.mrb[12].mxu0  ;;  %v1647_v17 = vpop.f32.mrb[20].mxu1 }
 0x798   :  { %v2925_v18 = vadd.f32 %v1576_v0, %v3477_v5  ;;  %v1578_v25 = vpop.f32.mrb[13].mxu0  ;;  %v2365_v26 = vpop.f32.mrb[21].mxu1  ;;  %v1671_v55 = vadd.f32 %v3483_v31, %v1647_v17 }
 0x799   :  { %v2926_v35 = vadd.f32 %v1578_v25, %v3479_v7 }
 0x79a   :  { %v1913_v34 = vmul.f32 -1.442695, %v2925_v18 }
 0x79b   :  { %v1914_v41 = vmul.f32 -1.442695, %v2926_v35 }
 0x79c   :  { %3019 = vpow2.f32 %v1913_v34 }
 0x79d   :  { %3021 = vpow2.f32 %v1914_v41 }
 0x7a6   :  { %v3020_v45 = vpop.eup %3019 }
 0x7a7   :  { %v1659_v46 = vadd.f32 1.0, %v3020_v45  ;;  %v3022_v40 = vpop.eup %3021 }
 0x7a8   :  { %v1667_v51 = vadd.f32 1.0, %v3022_v40 }
 0x7a9   :  { %3023 = vrcp.f32 %v1659_v46 }
 0x7aa   :  { %3025 = vrcp.f32 %v1667_v51 }
 0x7b3   :  { %v3024_v56 = vpop.eup %3023 }
 0x7b4   :  { %v1672_v61 = vmul.f32 %v3024_v56, %v1671_v55  ;;  %v3026_v4 = vpop.eup %3025 }
 0x7b5   :  { %v1675_v10 = vsub.f32 1.0, %v3026_v4  ;;  %v1677_v20 = vmul.f32 %v3026_v4, %v1507_v28 }
 0x7b6   :  { %v1673_v2 = vadd.f32 %v1672_v61, %v3475_v63 }
 0x7b8   :  { %3027 = vtanh.f32 %v1673_v2 }
 0x7c2   :  { %v3028_v13 = vpop.eup %3027 }
 0x7c3   :  { %v1676_v15 = vmul.f32 %v3028_v13, %v1675_v10 }
 0x7c5   :  { %v1678_v23 = vadd.f32 %v1677_v20, %v1676_v15 }
 0x7c7   :  { %1746 = vmatmul.mubr.f32.vlgmr.msra.gmra.mrb[14].mxu0 %v1678_v23  ;;  %1867 = vst [vmem:[#allocation16 + $0x30] sm:$0xff] %v1678_v23  ;;  %2399 = vmatmul.mubr.f32.vlgmr.msra.gmra.mrb[22].mxu1 %v1678_v23 }
 0x89a   :  { %v1747_v24 = vpop.f32.mrb[14].mxu0  ;;  %v1818_v30 = vpop.f32.mrb[22].mxu1 }
 0x89b   :  { %v2927_v33 = vadd.f32 %v1747_v24, %v3477_v5  ;;  %v1749_v54 = vpop.f32.mrb[15].mxu0  ;;  %v2400_v32 = vpop.f32.mrb[23].mxu1  ;;  %v1842_v48 = vadd.f32 %v3483_v31, %v1818_v30 }
 0x89c   :  { %v2928_v37 = vadd.f32 %v1749_v54, %v3479_v7 }
 0x89d   :  { %v1915_v36 = vmul.f32 -1.442695, %v2927_v33 }
 0x89e   :  { %v1916_v63 = vmul.f32 -1.442695, %v2928_v37 }
 0x89f   :  { %3029 = vpow2.f32 %v1915_v36 }
 0x8a0   :  { %3031 = vpow2.f32 %v1916_v63 }
 0x8a9   :  { %v3030_v38 = vpop.eup %3029 }
 0x8aa   :  { %v1830_v39 = vadd.f32 1.0, %v3030_v38  ;;  %v3032_v43 = vpop.eup %3031 }
 0x8ab   :  { %v1838_v44 = vadd.f32 1.0, %v3032_v43 }
 0x8ac   :  { %3033 = vrcp.f32 %v1830_v39 }
 0x8ad   :  { %3035 = vrcp.f32 %v1838_v44 }
 0x8b6   :  { %v3034_v50 = vpop.eup %3033 }
 0x8b7   :  { %v1843_v53 = vmul.f32 %v3034_v50, %v1842_v48  ;;  %v3036_v57 = vpop.eup %3035 }
 0x8b8   :  { %v1846_v58 = vsub.f32 1.0, %v3036_v57  ;;  %v1848_v62 = vmul.f32 %v3036_v57, %v1678_v23 }
 0x8b9   :  { %v1844_v5 = vadd.f32 %v1843_v53, %v3473_v60 }
 0x8bb   :  { %3037 = vtanh.f32 %v1844_v5 }
 0x8c5   :  { %v3038_v59 = vpop.eup %3037 }
 0x8c6   :  { %v1847_v7 = vmul.f32 %v3038_v59, %v1846_v58 }
 0x8c8   :  { %v1849_v29 = vadd.f32 %v1848_v62, %v1847_v7 }
 0x8ca   :  { %1868 = vst [vmem:[#allocation16 + $0x38] sm:$0xff] %v1849_v29 }
 0x8cb   :  { %3182 = shalt.err (!%p3179_p10)
}
 0x8cc   :  { %s3183_s24 = scalar_lea.hbm %s3774_s6, 1024 }
 0x8cd   :  { %p3184_p11 = scmp.ne.s32.totalorder %s3774_s6, %s3183_s24  ;;  %p3187_p12 = scmp.lt.u32.totalorder %s3183_s24, %s3774_s6 }
 0x8cf   :  { %p3189_p13 = pnand %p3187_p12, %p3184_p11 }
 0x8d1   :  { %3192 = shalt.err (!%p3189_p13)
}
 0x8d2   :  { %1884 = dma.vmem_to_hbm [thread:$0]  %s1879_s0, 1024, %s3774_s6, [#allocation7], %s3208_s3, %s3208_s3, %s3209_s7  }
 0x8d3   :  { %3201 = dma.done.wait [#allocation7], 1024  }
 0x8d4   :  { %3202 = vsyncadd [#allocation7], 4294966272 }
 0x8d5   :  { %1888 = vsyncpa [#allocation6], 1 }
 0x8d6   :  { %1889 = vsyncpa [#allocation9], 1 }
 0x8d7   :  { %1890 = vsyncpa [#allocation12], 1 }
 0x8d8   :  { %1891 = vsyncpa [#allocation15], 1 }
 0x8d9   :  { %1892 = vsyncpa [#allocation7], 1 }

</bundles_post_ra>
